<compile_context>
chip_gen: v7x
topology: tpu7x:2x2x1
jax: 0.10.0
libtpu: 0.0.40
codegen_flags: <defaults>
</compile_context>

<pallas_src>
import functools

import jax
import jax.numpy as jnp
from jax.experimental import pallas as pl
from jax.experimental.pallas import tpu as pltpu

CLAMP = 1.0


# --------------------------------------------------------------------------
# Fused kernel: Haar + all InvBlockExp blocks + final concat, per batch element.
# --------------------------------------------------------------------------
def _fused_forward_kernel(x_ref, kfw_ref, kfb_ref, hgw_ref, hgb_ref, o_ref,
                          xps_ref, xp1_ref, xp2_ref, p1_ref, p2_ref,
                          *, C, S1, S2, Hh, Wh, nblk):
    # x_ref  : (1, Hh, 2, Wh, 2*C)   element (0, h, hp, w, wp*C + c) = x[2h+hp, 2w+wp, c]
    # kfw_ref: (nblk, 9*S2, 2*S1)    [K | F] fused along Cout, im2col 2-D form
    # kfb_ref: (nblk, 1, 2*S1)
    # hgw_ref: (nblk, 9*S1, 2*S2)    [H | G]
    # hgb_ref: (nblk, 1, 2*S2)
    # o_ref  : (1, Hh, Wh, 4*C)      [y1 | y2] channel slices
    # scratch: xps (Hh,Wh,4C), xp1 (Hh+2,Wh+2,S1), xp2 (Hh+2,Wh+2,S2),
    #          p1 (Hh*Wh, 9*S1), p2 (Hh*Wh, 9*S2)

    # ---- Haar downsampling (band-major channel order = PyTorch's
    #      reshape -> transpose(1,2) -> reshape after the grouped conv) ----
    top = x_ref[0, :, 0:1, :, :].reshape(Hh, Wh, 2 * C)   # rows 2h
    bot = x_ref[0, :, 1:2, :, :].reshape(Hh, Wh, 2 * C)   # rows 2h+1
    a = top[:, :, :C]     # x[2h,   2w,   :]
    b = top[:, :, C:]     # x[2h,   2w+1, :]
    c = bot[:, :, :C]     # x[2h+1, 2w,   :]
    d = bot[:, :, C:]     # x[2h+1, 2w+1, :]
    xps_ref[:, :, 0 * C:1 * C] = (a + b + c + d) * 0.25   # LL
    xps_ref[:, :, 1 * C:2 * C] = (a - b + c - d) * 0.25   # HL
    xps_ref[:, :, 2 * C:3 * C] = (a + b - c - d) * 0.25   # LH
    xps_ref[:, :, 3 * C:4 * C] = (a - b - c + d) * 0.25   # HH

    y1 = xps_ref[:, :, :S1]          # (Hh, Wh, S1)
    y2 = xps_ref[:, :, S1:]          # (Hh, Wh, S2)

    # Zero the padded conv-input buffers once (only their interior is rewritten
    # afterwards, so the 1-px halo stays zero for every block / grid step).
    xp1_ref[...] = jnp.zeros_like(xp1_ref)
    xp2_ref[...] = jnp.zeros_like(xp2_ref)

    def conv3x3(xpad_ref, patch_ref, w2d, b2d, cin, cout2):
        # xpad_ref already holds the zero-padded input; build the im2col patch
        # in VMEM and run a single MXU matmul with K = 9*cin.
        for t in range(9):
            kh, kw = t // 3, t % 3
            tap = xpad_ref[kh:kh + Hh, kw:kw + Wh, :]            # (Hh, Wh, cin)
            patch_ref[:, t * cin:(t + 1) * cin] = tap.reshape(Hh * Wh, cin)
        out = jnp.dot(patch_ref[...], w2d,
                      preferred_element_type=jnp.float32) + b2d  # (Hh*Wh, cout2)
        return out.reshape(Hh, Wh, cout2)

    for blk in range(nblk):
        # ---- y1 = x1 * exp(clamp*(2*sigmoid(K(x2)) - 1)) + F(x2) ----
        xp2_ref[1:1 + Hh, 1:1 + Wh, :] = y2
        kf = conv3x3(xp2_ref, p2_ref, kfw_ref[blk], kfb_ref[blk], S2, 2 * S1)
        s2 = CLAMP * (jax.nn.sigmoid(kf[:, :, :S1]) * 2.0 - 1.0)
        y1 = y1 * jnp.exp(s2) + kf[:, :, S1:]
        # ---- y2 = x2 * exp(clamp*(2*sigmoid(H(y1)) - 1)) + G(y1) ----
        xp1_ref[1:1 + Hh, 1:1 + Wh, :] = y1
        hg = conv3x3(xp1_ref, p1_ref, hgw_ref[blk], hgb_ref[blk], S1, 2 * S2)
        s1 = CLAMP * (jax.nn.sigmoid(hg[:, :, :S2]) * 2.0 - 1.0)
        y2 = y2 * jnp.exp(s1) + hg[:, :, S2:]

    # ---- fused torch.cat((y1, y2), 1): channel slices of one output ref ----
    o_ref[0, :, :, :S1] = y1.astype(o_ref.dtype)
    o_ref[0, :, :, S1:] = y2.astype(o_ref.dtype)


# --------------------------------------------------------------------------
# Wrapper: NCHW in / NCHW out, one pallas_call for the whole forward.
# --------------------------------------------------------------------------
def inv_rescale_net_forward(x_nchw, params_list, channel_out):
    B, C, H, W = x_nchw.shape
    Hh, Wh = H // 2, W // 2
    Ctot = 4 * C
    S1 = channel_out
    S2 = Ctot - channel_out
    nblk = len(params_list)

    # NCHW -> NHWC, then fold the 2x2 Haar neighbourhood into (hp, wp*C+c).
    x = jnp.transpose(x_nchw, (0, 2, 3, 1))
    x_r = x.reshape(B, Hh, 2, Wh, 2 * C)          # free row-major reshape

    # Pre-fuse subnet weights along Cout and reshape to im2col 2-D form.
    def w2d(w):                                   # (3,3,cin,cout) -> (9*cin,cout)
        return w.reshape(9 * w.shape[2], w.shape[3])

    kf_w = jnp.stack([jnp.concatenate([w2d(p["K_w"]), w2d(p["F_w"])], axis=1)
                      for p in params_list])      # (nblk, 9*S2, 2*S1)
    kf_b = jnp.stack([jnp.concatenate([p["K_b"], p["F_b"]], axis=1)
                      for p in params_list])      # (nblk, 1, 2*S1)
    hg_w = jnp.stack([jnp.concatenate([w2d(p["H_w"]), w2d(p["G_w"])], axis=1)
                      for p in params_list])      # (nblk, 9*S1, 2*S2)
    hg_b = jnp.stack([jnp.concatenate([p["H_b"], p["G_b"]], axis=1)
                      for p in params_list])      # (nblk, 1, 2*S2)

    kernel = functools.partial(_fused_forward_kernel, C=C, S1=S1, S2=S2,
                               Hh=Hh, Wh=Wh, nblk=nblk)

    flops = int(2 * B * nblk * Hh * Wh * (9 * S2 * 2 * S1 + 9 * S1 * 2 * S2))
    transc = int(2 * B * nblk * Hh * Wh * (S1 + S2))
    bytes_acc = int(4 * (x_r.size + kf_w.size + kf_b.size + hg_w.size
                         + hg_b.size + B * Hh * Wh * Ctot))

    out_nhwc = pl.pallas_call(
        kernel,
        out_shape=jax.ShapeDtypeStruct((B, Hh, Wh, Ctot), x.dtype),
        grid=(B,),
        in_specs=[
            pl.BlockSpec((1, Hh, 2, Wh, 2 * C), lambda i: (i, 0, 0, 0, 0)),
            pl.BlockSpec((nblk, 9 * S2, 2 * S1), lambda i: (0, 0, 0)),
            pl.BlockSpec((nblk, 1, 2 * S1), lambda i: (0, 0, 0)),
            pl.BlockSpec((nblk, 9 * S1, 2 * S2), lambda i: (0, 0, 0)),
            pl.BlockSpec((nblk, 1, 2 * S2), lambda i: (0, 0, 0)),
        ],
        out_specs=pl.BlockSpec((1, Hh, Wh, Ctot), lambda i: (i, 0, 0, 0)),
        scratch_shapes=[
            pltpu.VMEM((Hh, Wh, Ctot), jnp.float32),        # Haar result
            pltpu.VMEM((Hh + 2, Wh + 2, S1), jnp.float32),  # padded y1
            pltpu.VMEM((Hh + 2, Wh + 2, S2), jnp.float32),  # padded y2
            pltpu.VMEM((Hh * Wh, 9 * S1), jnp.float32),     # im2col patch (H/G)
            pltpu.VMEM((Hh * Wh, 9 * S2), jnp.float32),     # im2col patch (K/F)
        ],
        compiler_params=pltpu.CompilerParams(
            dimension_semantics=("parallel",)),
        cost_estimate=pl.CostEstimate(flops=flops, transcendentals=transc,
                                      bytes_accessed=bytes_acc),
    )(x_r, kf_w, kf_b, hg_w, hg_b)

    # NHWC -> NCHW to match the PyTorch module (layout glue outside the kernel).
    return jnp.transpose(out_nhwc, (0, 3, 1, 2))


# --------------------------------------------------------------------------
# Pure-JAX reference (independent of Pallas) for a sanity check.
# Note: residual kernel-vs-reference divergence comes from the MXU's default
# f32 matmul precision inside the kernel vs Precision.HIGHEST here.
# --------------------------------------------------------------------------
def _conv_ref(xin, w, bia):
    Ho, Wo = xin.shape[1], xin.shape[2]
    xp = jnp.pad(xin, ((0, 0), (1, 1), (1, 1), (0, 0)))
    out = jnp.zeros(xin.shape[:3] + (w.shape[-1],), jnp.float32)
    for kh in range(3):
        for kw in range(3):
            out = out + jnp.einsum(
                "bhwc,co->bhwo",
                xp[:, kh:kh + Ho, kw:kw + Wo, :], w[kh, kw],
                precision=jax.lax.Precision.HIGHEST)
    return out + bia[0]


def reference_forward(x_nchw, params_list, channel_out):
    x = jnp.transpose(x_nchw, (0, 2, 3, 1))
    B, H, W, C = x.shape
    xr = x.reshape(B, H // 2, 2, W // 2, 2, C)
    a = xr[:, :, 0, :, 0, :]
    b = xr[:, :, 0, :, 1, :]
    c = xr[:, :, 1, :, 0, :]
    d = xr[:, :, 1, :, 1, :]
    x_ps = jnp.concatenate(
        [(a + b + c + d) * 0.25, (a - b + c - d) * 0.25,
         (a + b - c - d) * 0.25, (a - b - c + d) * 0.25], axis=-1)
    y1, y2 = x_ps[..., :channel_out], x_ps[..., channel_out:]
    for p in params_list:
        s2 = CLAMP * (jax.nn.sigmoid(_conv_ref(y2, p["K_w"], p["K_b"])) * 2 - 1)
        ny1 = y1 * jnp.exp(s2) + _conv_ref(y2, p["F_w"], p["F_b"])
        s1 = CLAMP * (jax.nn.sigmoid(_conv_ref(ny1, p["H_w"], p["H_b"])) * 2 - 1)
        ny2 = y2 * jnp.exp(s1) + _conv_ref(ny1, p["G_w"], p["G_b"])
        y1, y2 = ny1, ny2
    return jnp.transpose(jnp.concatenate([y1, y2], axis=-1), (0, 3, 1, 2))


# --------------------------------------------------------------------------
def make_block_params(key, split1, split2, scale=0.1):
    ks = jax.random.split(key, 8)

    def w(k, cin, cout):
        return scale * jax.random.normal(k, (3, 3, cin, cout), jnp.float32)

    def bb(k, cout):
        return scale * jax.random.normal(k, (1, cout), jnp.float32)

    return {
        "F_w": w(ks[0], split2, split1), "F_b": bb(ks[1], split1),
        "G_w": w(ks[2], split1, split2), "G_b": bb(ks[3], split2),
        "H_w": w(ks[4], split1, split2), "H_b": bb(ks[5], split2),
        "K_w": w(ks[6], split2, split1), "K_b": bb(ks[7], split1),
    }


if __name__ == "__main__":
    # Small config: channel_in=4, channel_out=3, down_num=1, block_num=[2], Haar.
    B, C_in, H, W = 2, 4, 16, 16
    channel_out = 3
    block_num = 2

    key = jax.random.PRNGKey(0)
    kx, kp = jax.random.split(key)
    x = jax.random.normal(kx, (B, C_in, H, W), jnp.float32)   # NCHW like PyTorch

    current_channel = C_in * 4                  # after Haar downsampling
    split1 = channel_out
    split2 = current_channel - channel_out
    block_keys = jax.random.split(kp, block_num)
    params_list = [make_block_params(k, split1, split2) for k in block_keys]

    out = inv_rescale_net_forward(x, params_list, channel_out)
    out = jax.block_until_ready(out)

    assert out.shape == (B, current_channel, H // 2, W // 2), out.shape

    ref = jax.block_until_ready(reference_forward(x, params_list, channel_out))
    assert jnp.allclose(out, ref, rtol=2e-2, atol=2e-2), (
        float(jnp.max(jnp.abs(out - ref))))

    print("KERNEL_OK")
</pallas_src>

<mosaic_0001>
module attributes {stable_mosaic.version = 11 : i64} {
  func.func @_fused_forward_kernel(%arg0: i32, %arg1: memref<1x8x2x8x8xf32, #tpu.memory_space<vmem>>, %arg2: memref<2x117x6xf32, #tpu.memory_space<vmem>>, %arg3: memref<2x1x6xf32, #tpu.memory_space<vmem>>, %arg4: memref<2x27x26xf32, #tpu.memory_space<vmem>>, %arg5: memref<2x1x26xf32, #tpu.memory_space<vmem>>, %arg6: memref<1x8x8x16xf32, #tpu.memory_space<vmem>>, %arg7: memref<8x8x16xf32, #tpu.memory_space<vmem>>, %arg8: memref<10x10x3xf32, #tpu.memory_space<vmem>>, %arg9: memref<10x10x13xf32, #tpu.memory_space<vmem>>, %arg10: memref<64x27xf32, #tpu.memory_space<vmem>>, %arg11: memref<64x117xf32, #tpu.memory_space<vmem>>) attributes {dimension_semantics = [#tpu.dimension_semantics<parallel>], iteration_bounds = array<i64: 2>, scalar_prefetch = 0 : i64, scratch_operands = 5 : i64, tpu.core_type = #tpu.core_type<tc>, window_params = [{transform_indices = @transform_0, window_bounds = array<i64: 1, 8, 2, 8, 8>}, {pipeline_mode = #tpu.pipeline_mode<synchronous>, transform_indices = @transform_1, window_bounds = array<i64: 2, 117, 6>}, {pipeline_mode = #tpu.pipeline_mode<synchronous>, transform_indices = @transform_2, window_bounds = array<i64: 2, 1, 6>}, {pipeline_mode = #tpu.pipeline_mode<synchronous>, transform_indices = @transform_3, window_bounds = array<i64: 2, 27, 26>}, {pipeline_mode = #tpu.pipeline_mode<synchronous>, transform_indices = @transform_4, window_bounds = array<i64: 2, 1, 26>}, {transform_indices = @transform_5, window_bounds = array<i64: 1, 8, 8, 16>}]} {
    %c0 = arith.constant 0 : index
    %c0_0 = arith.constant 0 : index
    %c0_1 = arith.constant 0 : index
    %c0_2 = arith.constant 0 : index
    %c0_3 = arith.constant 0 : index
    %0 = vector.load %arg1[%c0, %c0_0, %c0_1, %c0_2, %c0_3] : memref<1x8x2x8x8xf32, #tpu.memory_space<vmem>>, vector<1x8x1x8x8xf32>
    %1 = vector.shape_cast %0 : vector<1x8x1x8x8xf32> to vector<8x1x8x8xf32>
    %2 = vector.shape_cast %1 : vector<8x1x8x8xf32> to vector<8x8x8xf32>
    %c0_4 = arith.constant 0 : index
    %c0_5 = arith.constant 0 : index
    %c1 = arith.constant 1 : index
    %c0_6 = arith.constant 0 : index
    %c0_7 = arith.constant 0 : index
    %3 = vector.load %arg1[%c0_4, %c0_5, %c1, %c0_6, %c0_7] : memref<1x8x2x8x8xf32, #tpu.memory_space<vmem>>, vector<1x8x1x8x8xf32>
    %4 = vector.shape_cast %3 : vector<1x8x1x8x8xf32> to vector<8x1x8x8xf32>
    %5 = vector.shape_cast %4 : vector<8x1x8x8xf32> to vector<8x8x8xf32>
    %6 = vector.extract_strided_slice %2 {offsets = [0, 0, 0], sizes = [8, 8, 4], strides = [1, 1, 1]} : vector<8x8x8xf32> to vector<8x8x4xf32>
    %7 = vector.extract_strided_slice %2 {offsets = [0, 0, 4], sizes = [8, 8, 4], strides = [1, 1, 1]} : vector<8x8x8xf32> to vector<8x8x4xf32>
    %8 = vector.extract_strided_slice %5 {offsets = [0, 0, 0], sizes = [8, 8, 4], strides = [1, 1, 1]} : vector<8x8x8xf32> to vector<8x8x4xf32>
    %9 = vector.extract_strided_slice %5 {offsets = [0, 0, 4], sizes = [8, 8, 4], strides = [1, 1, 1]} : vector<8x8x8xf32> to vector<8x8x4xf32>
    %10 = arith.addf %6, %7 : vector<8x8x4xf32>
    %11 = arith.addf %10, %8 : vector<8x8x4xf32>
    %12 = arith.addf %11, %9 : vector<8x8x4xf32>
    %cst = arith.constant 2.500000e-01 : f32
    %13 = vector.broadcast %cst : f32 to vector<8x8x4xf32>
    %14 = arith.mulf %12, %13 : vector<8x8x4xf32>
    %c0_8 = arith.constant 0 : index
    %c0_9 = arith.constant 0 : index
    %c0_10 = arith.constant 0 : index
    %15 = vector.load %arg7[%c0_8, %c0_9, %c0_10] : memref<8x8x16xf32, #tpu.memory_space<vmem>>, vector<8x8x4xf32>
    tpu.vector_store %arg7[%c0_8, %c0_9, %c0_10], %14 {strides = array<i32>} : memref<8x8x16xf32, #tpu.memory_space<vmem>>, vector<8x8x4xf32>,
    %16 = arith.subf %6, %7 : vector<8x8x4xf32>
    %17 = arith.addf %16, %8 : vector<8x8x4xf32>
    %18 = arith.subf %17, %9 : vector<8x8x4xf32>
    %cst_11 = arith.constant 2.500000e-01 : f32
    %19 = vector.broadcast %cst_11 : f32 to vector<8x8x4xf32>
    %20 = arith.mulf %18, %19 : vector<8x8x4xf32>
    %c0_12 = arith.constant 0 : index
    %c0_13 = arith.constant 0 : index
    %c4 = arith.constant 4 : index
    %21 = vector.load %arg7[%c0_12, %c0_13, %c4] : memref<8x8x16xf32, #tpu.memory_space<vmem>>, vector<8x8x4xf32>
    tpu.vector_store %arg7[%c0_12, %c0_13, %c4], %20 {strides = array<i32>} : memref<8x8x16xf32, #tpu.memory_space<vmem>>, vector<8x8x4xf32>,
    %22 = arith.addf %6, %7 : vector<8x8x4xf32>
    %23 = arith.subf %22, %8 : vector<8x8x4xf32>
    %24 = arith.subf %23, %9 : vector<8x8x4xf32>
    %cst_14 = arith.constant 2.500000e-01 : f32
    %25 = vector.broadcast %cst_14 : f32 to vector<8x8x4xf32>
    %26 = arith.mulf %24, %25 : vector<8x8x4xf32>
    %c0_15 = arith.constant 0 : index
    %c0_16 = arith.constant 0 : index
    %c8 = arith.constant 8 : index
    %27 = vector.load %arg7[%c0_15, %c0_16, %c8] : memref<8x8x16xf32, #tpu.memory_space<vmem>>, vector<8x8x4xf32>
    tpu.vector_store %arg7[%c0_15, %c0_16, %c8], %26 {strides = array<i32>} : memref<8x8x16xf32, #tpu.memory_space<vmem>>, vector<8x8x4xf32>,
    %28 = arith.subf %6, %7 : vector<8x8x4xf32>
    %29 = arith.subf %28, %8 : vector<8x8x4xf32>
    %30 = arith.addf %29, %9 : vector<8x8x4xf32>
    %cst_17 = arith.constant 2.500000e-01 : f32
    %31 = vector.broadcast %cst_17 : f32 to vector<8x8x4xf32>
    %32 = arith.mulf %30, %31 : vector<8x8x4xf32>
    %c0_18 = arith.constant 0 : index
    %c0_19 = arith.constant 0 : index
    %c12 = arith.constant 12 : index
    %33 = vector.load %arg7[%c0_18, %c0_19, %c12] : memref<8x8x16xf32, #tpu.memory_space<vmem>>, vector<8x8x4xf32>
    tpu.vector_store %arg7[%c0_18, %c0_19, %c12], %32 {strides = array<i32>} : memref<8x8x16xf32, #tpu.memory_space<vmem>>, vector<8x8x4xf32>,
    %c0_20 = arith.constant 0 : index
    %c0_21 = arith.constant 0 : index
    %c0_22 = arith.constant 0 : index
    %34 = vector.load %arg7[%c0_20, %c0_21, %c0_22] : memref<8x8x16xf32, #tpu.memory_space<vmem>>, vector<8x8x3xf32>
    %c0_23 = arith.constant 0 : index
    %c0_24 = arith.constant 0 : index
    %c3 = arith.constant 3 : index
    %35 = vector.load %arg7[%c0_23, %c0_24, %c3] : memref<8x8x16xf32, #tpu.memory_space<vmem>>, vector<8x8x13xf32>
    %cst_25 = arith.constant 0.000000e+00 : f32
    %36 = vector.broadcast %cst_25 : f32 to vector<10x10x3xf32>
    %c0_26 = arith.constant 0 : index
    %c0_27 = arith.constant 0 : index
    %c0_28 = arith.constant 0 : index
    %37 = vector.load %arg8[%c0_26, %c0_27, %c0_28] : memref<10x10x3xf32, #tpu.memory_space<vmem>>, vector<10x10x3xf32>
    tpu.vector_store %arg8[%c0_26, %c0_27, %c0_28], %36 {strides = array<i32>} : memref<10x10x3xf32, #tpu.memory_space<vmem>>, vector<10x10x3xf32>,
    %cst_29 = arith.constant 0.000000e+00 : f32
    %38 = vector.broadcast %cst_29 : f32 to vector<10x10x13xf32>
    %c0_30 = arith.constant 0 : index
    %c0_31 = arith.constant 0 : index
    %c0_32 = arith.constant 0 : index
    %39 = vector.load %arg9[%c0_30, %c0_31, %c0_32] : memref<10x10x13xf32, #tpu.memory_space<vmem>>, vector<10x10x13xf32>
    tpu.vector_store %arg9[%c0_30, %c0_31, %c0_32], %38 {strides = array<i32>} : memref<10x10x13xf32, #tpu.memory_space<vmem>>, vector<10x10x13xf32>,
    %c1_33 = arith.constant 1 : index
    %c1_34 = arith.constant 1 : index
    %c0_35 = arith.constant 0 : index
    %40 = vector.load %arg9[%c1_33, %c1_34, %c0_35] : memref<10x10x13xf32, #tpu.memory_space<vmem>>, vector<8x8x13xf32>
    tpu.vector_store %arg9[%c1_33, %c1_34, %c0_35], %35 {strides = array<i32>} : memref<10x10x13xf32, #tpu.memory_space<vmem>>, vector<8x8x13xf32>,
    %c0_36 = arith.constant 0 : index
    %c0_37 = arith.constant 0 : index
    %c0_38 = arith.constant 0 : index
    %41 = vector.load %arg2[%c0_36, %c0_37, %c0_38] : memref<2x117x6xf32, #tpu.memory_space<vmem>>, vector<1x117x6xf32>
    %42 = vector.shape_cast %41 : vector<1x117x6xf32> to vector<117x6xf32>
    %c0_39 = arith.constant 0 : index
    %c0_40 = arith.constant 0 : index
    %c0_41 = arith.constant 0 : index
    %43 = vector.load %arg3[%c0_39, %c0_40, %c0_41] : memref<2x1x6xf32, #tpu.memory_space<vmem>>, vector<1x1x6xf32>
    %44 = vector.shape_cast %43 : vector<1x1x6xf32> to vector<1x6xf32>
    %c0_42 = arith.constant 0 : index
    %c0_43 = arith.constant 0 : index
    %c0_44 = arith.constant 0 : index
    %45 = vector.load %arg9[%c0_42, %c0_43, %c0_44] : memref<10x10x13xf32, #tpu.memory_space<vmem>>, vector<8x8x13xf32>
    %46 = vector.shape_cast %45 : vector<8x8x13xf32> to vector<64x13xf32>
    %c0_45 = arith.constant 0 : index
    %c0_46 = arith.constant 0 : index
    %47 = vector.load %arg11[%c0_45, %c0_46] : memref<64x117xf32, #tpu.memory_space<vmem>>, vector<64x13xf32>
    tpu.vector_store %arg11[%c0_45, %c0_46], %46 {strides = array<i32>} : memref<64x117xf32, #tpu.memory_space<vmem>>, vector<64x13xf32>,
    %c0_47 = arith.constant 0 : index
    %c1_48 = arith.constant 1 : index
    %c0_49 = arith.constant 0 : index
    %48 = vector.load %arg9[%c0_47, %c1_48, %c0_49] : memref<10x10x13xf32, #tpu.memory_space<vmem>>, vector<8x8x13xf32>
    %49 = vector.shape_cast %48 : vector<8x8x13xf32> to vector<64x13xf32>
    %c0_50 = arith.constant 0 : index
    %c13 = arith.constant 13 : index
    %50 = vector.load %arg11[%c0_50, %c13] : memref<64x117xf32, #tpu.memory_space<vmem>>, vector<64x13xf32>
    tpu.vector_store %arg11[%c0_50, %c13], %49 {strides = array<i32>} : memref<64x117xf32, #tpu.memory_space<vmem>>, vector<64x13xf32>,
    %c0_51 = arith.constant 0 : index
    %c2 = arith.constant 2 : index
    %c0_52 = arith.constant 0 : index
    %51 = vector.load %arg9[%c0_51, %c2, %c0_52] : memref<10x10x13xf32, #tpu.memory_space<vmem>>, vector<8x8x13xf32>
    %52 = vector.shape_cast %51 : vector<8x8x13xf32> to vector<64x13xf32>
    %c0_53 = arith.constant 0 : index
    %c26 = arith.constant 26 : index
    %53 = vector.load %arg11[%c0_53, %c26] : memref<64x117xf32, #tpu.memory_space<vmem>>, vector<64x13xf32>
    tpu.vector_store %arg11[%c0_53, %c26], %52 {strides = array<i32>} : memref<64x117xf32, #tpu.memory_space<vmem>>, vector<64x13xf32>,
    %c1_54 = arith.constant 1 : index
    %c0_55 = arith.constant 0 : index
    %c0_56 = arith.constant 0 : index
    %54 = vector.load %arg9[%c1_54, %c0_55, %c0_56] : memref<10x10x13xf32, #tpu.memory_space<vmem>>, vector<8x8x13xf32>
    %55 = vector.shape_cast %54 : vector<8x8x13xf32> to vector<64x13xf32>
    %c0_57 = arith.constant 0 : index
    %c39 = arith.constant 39 : index
    %56 = vector.load %arg11[%c0_57, %c39] : memref<64x117xf32, #tpu.memory_space<vmem>>, vector<64x13xf32>
    tpu.vector_store %arg11[%c0_57, %c39], %55 {strides = array<i32>} : memref<64x117xf32, #tpu.memory_space<vmem>>, vector<64x13xf32>,
    %c1_58 = arith.constant 1 : index
    %c1_59 = arith.constant 1 : index
    %c0_60 = arith.constant 0 : index
    %57 = vector.load %arg9[%c1_58, %c1_59, %c0_60] : memref<10x10x13xf32, #tpu.memory_space<vmem>>, vector<8x8x13xf32>
    %58 = vector.shape_cast %57 : vector<8x8x13xf32> to vector<64x13xf32>
    %c0_61 = arith.constant 0 : index
    %c52 = arith.constant 52 : index
    %59 = vector.load %arg11[%c0_61, %c52] : memref<64x117xf32, #tpu.memory_space<vmem>>, vector<64x13xf32>
    tpu.vector_store %arg11[%c0_61, %c52], %58 {strides = array<i32>} : memref<64x117xf32, #tpu.memory_space<vmem>>, vector<64x13xf32>,
    %c1_62 = arith.constant 1 : index
    %c2_63 = arith.constant 2 : index
    %c0_64 = arith.constant 0 : index
    %60 = vector.load %arg9[%c1_62, %c2_63, %c0_64] : memref<10x10x13xf32, #tpu.memory_space<vmem>>, vector<8x8x13xf32>
    %61 = vector.shape_cast %60 : vector<8x8x13xf32> to vector<64x13xf32>
    %c0_65 = arith.constant 0 : index
    %c65 = arith.constant 65 : index
    %62 = vector.load %arg11[%c0_65, %c65] : memref<64x117xf32, #tpu.memory_space<vmem>>, vector<64x13xf32>
    tpu.vector_store %arg11[%c0_65, %c65], %61 {strides = array<i32>} : memref<64x117xf32, #tpu.memory_space<vmem>>, vector<64x13xf32>,
    %c2_66 = arith.constant 2 : index
    %c0_67 = arith.constant 0 : index
    %c0_68 = arith.constant 0 : index
    %63 = vector.load %arg9[%c2_66, %c0_67, %c0_68] : memref<10x10x13xf32, #tpu.memory_space<vmem>>, vector<8x8x13xf32>
    %64 = vector.shape_cast %63 : vector<8x8x13xf32> to vector<64x13xf32>
    %c0_69 = arith.constant 0 : index
    %c78 = arith.constant 78 : index
    %65 = vector.load %arg11[%c0_69, %c78] : memref<64x117xf32, #tpu.memory_space<vmem>>, vector<64x13xf32>
    tpu.vector_store %arg11[%c0_69, %c78], %64 {strides = array<i32>} : memref<64x117xf32, #tpu.memory_space<vmem>>, vector<64x13xf32>,
    %c2_70 = arith.constant 2 : index
    %c1_71 = arith.constant 1 : index
    %c0_72 = arith.constant 0 : index
    %66 = vector.load %arg9[%c2_70, %c1_71, %c0_72] : memref<10x10x13xf32, #tpu.memory_space<vmem>>, vector<8x8x13xf32>
    %67 = vector.shape_cast %66 : vector<8x8x13xf32> to vector<64x13xf32>
    %c0_73 = arith.constant 0 : index
    %c91 = arith.constant 91 : index
    %68 = vector.load %arg11[%c0_73, %c91] : memref<64x117xf32, #tpu.memory_space<vmem>>, vector<64x13xf32>
    tpu.vector_store %arg11[%c0_73, %c91], %67 {strides = array<i32>} : memref<64x117xf32, #tpu.memory_space<vmem>>, vector<64x13xf32>,
    %c2_74 = arith.constant 2 : index
    %c2_75 = arith.constant 2 : index
    %c0_76 = arith.constant 0 : index
    %69 = vector.load %arg9[%c2_74, %c2_75, %c0_76] : memref<10x10x13xf32, #tpu.memory_space<vmem>>, vector<8x8x13xf32>
    %70 = vector.shape_cast %69 : vector<8x8x13xf32> to vector<64x13xf32>
    %c0_77 = arith.constant 0 : index
    %c104 = arith.constant 104 : index
    %71 = vector.load %arg11[%c0_77, %c104] : memref<64x117xf32, #tpu.memory_space<vmem>>, vector<64x13xf32>
    tpu.vector_store %arg11[%c0_77, %c104], %70 {strides = array<i32>} : memref<64x117xf32, #tpu.memory_space<vmem>>, vector<64x13xf32>,
    %c0_78 = arith.constant 0 : index
    %c0_79 = arith.constant 0 : index
    %72 = vector.load %arg11[%c0_78, %c0_79] : memref<64x117xf32, #tpu.memory_space<vmem>>, vector<64x117xf32>
    %cst_80 = arith.constant dense<0.000000e+00> : vector<64x6xf32>
    %73 = tpu.matmul %72, %42, %cst_80 {dimension_numbers = #tpu.dot_dimension_numbers<[1], [0], [0], [1], [0, 0, 1, 1], [], []>} : vector<64x117xf32>, vector<117x6xf32>, vector<64x6xf32> -> vector<64x6xf32>
    %74 = vector.broadcast %44 : vector<1x6xf32> to vector<64x6xf32>
    %75 = arith.addf %73, %74 : vector<64x6xf32>
    %76 = vector.shape_cast %75 : vector<64x6xf32> to vector<8x8x6xf32>
    %77 = vector.extract_strided_slice %76 {offsets = [0, 0, 0], sizes = [8, 8, 3], strides = [1, 1, 1]} : vector<8x8x6xf32> to vector<8x8x3xf32>
    %78 = arith.negf %77 : vector<8x8x3xf32>
    %79 = math.exp %78 : vector<8x8x3xf32>
    %cst_81 = arith.constant 1.000000e+00 : f32
    %80 = vector.broadcast %cst_81 : f32 to vector<8x8x3xf32>
    %81 = arith.addf %80, %79 : vector<8x8x3xf32>
    %82 = arith.divf %80, %81 : vector<8x8x3xf32>
    %cst_82 = arith.constant 2.000000e+00 : f32
    %83 = vector.broadcast %cst_82 : f32 to vector<8x8x3xf32>
    %84 = arith.mulf %82, %83 : vector<8x8x3xf32>
    %cst_83 = arith.constant 1.000000e+00 : f32
    %85 = vector.broadcast %cst_83 : f32 to vector<8x8x3xf32>
    %86 = arith.subf %84, %85 : vector<8x8x3xf32>
    %cst_84 = arith.constant 1.000000e+00 : f32
    %87 = vector.broadcast %cst_84 : f32 to vector<8x8x3xf32>
    %88 = arith.mulf %87, %86 : vector<8x8x3xf32>
    %89 = math.exp %88 : vector<8x8x3xf32>
    %90 = arith.mulf %34, %89 : vector<8x8x3xf32>
    %91 = vector.extract_strided_slice %76 {offsets = [0, 0, 3], sizes = [8, 8, 3], strides = [1, 1, 1]} : vector<8x8x6xf32> to vector<8x8x3xf32>
    %92 = arith.addf %90, %91 : vector<8x8x3xf32>
    %c1_85 = arith.constant 1 : index
    %c1_86 = arith.constant 1 : index
    %c0_87 = arith.constant 0 : index
    %93 = vector.load %arg8[%c1_85, %c1_86, %c0_87] : memref<10x10x3xf32, #tpu.memory_space<vmem>>, vector<8x8x3xf32>
    tpu.vector_store %arg8[%c1_85, %c1_86, %c0_87], %92 {strides = array<i32>} : memref<10x10x3xf32, #tpu.memory_space<vmem>>, vector<8x8x3xf32>,
    %c0_88 = arith.constant 0 : index
    %c0_89 = arith.constant 0 : index
    %c0_90 = arith.constant 0 : index
    %94 = vector.load %arg4[%c0_88, %c0_89, %c0_90] : memref<2x27x26xf32, #tpu.memory_space<vmem>>, vector<1x27x26xf32>
    %95 = vector.shape_cast %94 : vector<1x27x26xf32> to vector<27x26xf32>
    %c0_91 = arith.constant 0 : index
    %c0_92 = arith.constant 0 : index
    %c0_93 = arith.constant 0 : index
    %96 = vector.load %arg5[%c0_91, %c0_92, %c0_93] : memref<2x1x26xf32, #tpu.memory_space<vmem>>, vector<1x1x26xf32>
    %97 = vector.shape_cast %96 : vector<1x1x26xf32> to vector<1x26xf32>
    %c0_94 = arith.constant 0 : index
    %c0_95 = arith.constant 0 : index
    %c0_96 = arith.constant 0 : index
    %98 = vector.load %arg8[%c0_94, %c0_95, %c0_96] : memref<10x10x3xf32, #tpu.memory_space<vmem>>, vector<8x8x3xf32>
    %99 = vector.shape_cast %98 : vector<8x8x3xf32> to vector<64x3xf32>
    %c0_97 = arith.constant 0 : index
    %c0_98 = arith.constant 0 : index
    %100 = vector.load %arg10[%c0_97, %c0_98] : memref<64x27xf32, #tpu.memory_space<vmem>>, vector<64x3xf32>
    tpu.vector_store %arg10[%c0_97, %c0_98], %99 {strides = array<i32>} : memref<64x27xf32, #tpu.memory_space<vmem>>, vector<64x3xf32>,
    %c0_99 = arith.constant 0 : index
    %c1_100 = arith.constant 1 : index
    %c0_101 = arith.constant 0 : index
    %101 = vector.load %arg8[%c0_99, %c1_100, %c0_101] : memref<10x10x3xf32, #tpu.memory_space<vmem>>, vector<8x8x3xf32>
    %102 = vector.shape_cast %101 : vector<8x8x3xf32> to vector<64x3xf32>
    %c0_102 = arith.constant 0 : index
    %c3_103 = arith.constant 3 : index
    %103 = vector.load %arg10[%c0_102, %c3_103] : memref<64x27xf32, #tpu.memory_space<vmem>>, vector<64x3xf32>
    tpu.vector_store %arg10[%c0_102, %c3_103], %102 {strides = array<i32>} : memref<64x27xf32, #tpu.memory_space<vmem>>, vector<64x3xf32>,
    %c0_104 = arith.constant 0 : index
    %c2_105 = arith.constant 2 : index
    %c0_106 = arith.constant 0 : index
    %104 = vector.load %arg8[%c0_104, %c2_105, %c0_106] : memref<10x10x3xf32, #tpu.memory_space<vmem>>, vector<8x8x3xf32>
    %105 = vector.shape_cast %104 : vector<8x8x3xf32> to vector<64x3xf32>
    %c0_107 = arith.constant 0 : index
    %c6 = arith.constant 6 : index
    %106 = vector.load %arg10[%c0_107, %c6] : memref<64x27xf32, #tpu.memory_space<vmem>>, vector<64x3xf32>
    tpu.vector_store %arg10[%c0_107, %c6], %105 {strides = array<i32>} : memref<64x27xf32, #tpu.memory_space<vmem>>, vector<64x3xf32>,
    %c1_108 = arith.constant 1 : index
    %c0_109 = arith.constant 0 : index
    %c0_110 = arith.constant 0 : index
    %107 = vector.load %arg8[%c1_108, %c0_109, %c0_110] : memref<10x10x3xf32, #tpu.memory_space<vmem>>, vector<8x8x3xf32>
    %108 = vector.shape_cast %107 : vector<8x8x3xf32> to vector<64x3xf32>
    %c0_111 = arith.constant 0 : index
    %c9 = arith.constant 9 : index
    %109 = vector.load %arg10[%c0_111, %c9] : memref<64x27xf32, #tpu.memory_space<vmem>>, vector<64x3xf32>
    tpu.vector_store %arg10[%c0_111, %c9], %108 {strides = array<i32>} : memref<64x27xf32, #tpu.memory_space<vmem>>, vector<64x3xf32>,
    %c1_112 = arith.constant 1 : index
    %c1_113 = arith.constant 1 : index
    %c0_114 = arith.constant 0 : index
    %110 = vector.load %arg8[%c1_112, %c1_113, %c0_114] : memref<10x10x3xf32, #tpu.memory_space<vmem>>, vector<8x8x3xf32>
    %111 = vector.shape_cast %110 : vector<8x8x3xf32> to vector<64x3xf32>
    %c0_115 = arith.constant 0 : index
    %c12_116 = arith.constant 12 : index
    %112 = vector.load %arg10[%c0_115, %c12_116] : memref<64x27xf32, #tpu.memory_space<vmem>>, vector<64x3xf32>
    tpu.vector_store %arg10[%c0_115, %c12_116], %111 {strides = array<i32>} : memref<64x27xf32, #tpu.memory_space<vmem>>, vector<64x3xf32>,
    %c1_117 = arith.constant 1 : index
    %c2_118 = arith.constant 2 : index
    %c0_119 = arith.constant 0 : index
    %113 = vector.load %arg8[%c1_117, %c2_118, %c0_119] : memref<10x10x3xf32, #tpu.memory_space<vmem>>, vector<8x8x3xf32>
    %114 = vector.shape_cast %113 : vector<8x8x3xf32> to vector<64x3xf32>
    %c0_120 = arith.constant 0 : index
    %c15 = arith.constant 15 : index
    %115 = vector.load %arg10[%c0_120, %c15] : memref<64x27xf32, #tpu.memory_space<vmem>>, vector<64x3xf32>
    tpu.vector_store %arg10[%c0_120, %c15], %114 {strides = array<i32>} : memref<64x27xf32, #tpu.memory_space<vmem>>, vector<64x3xf32>,
    %c2_121 = arith.constant 2 : index
    %c0_122 = arith.constant 0 : index
    %c0_123 = arith.constant 0 : index
    %116 = vector.load %arg8[%c2_121, %c0_122, %c0_123] : memref<10x10x3xf32, #tpu.memory_space<vmem>>, vector<8x8x3xf32>
    %117 = vector.shape_cast %116 : vector<8x8x3xf32> to vector<64x3xf32>
    %c0_124 = arith.constant 0 : index
    %c18 = arith.constant 18 : index
    %118 = vector.load %arg10[%c0_124, %c18] : memref<64x27xf32, #tpu.memory_space<vmem>>, vector<64x3xf32>
    tpu.vector_store %arg10[%c0_124, %c18], %117 {strides = array<i32>} : memref<64x27xf32, #tpu.memory_space<vmem>>, vector<64x3xf32>,
    %c2_125 = arith.constant 2 : index
    %c1_126 = arith.constant 1 : index
    %c0_127 = arith.constant 0 : index
    %119 = vector.load %arg8[%c2_125, %c1_126, %c0_127] : memref<10x10x3xf32, #tpu.memory_space<vmem>>, vector<8x8x3xf32>
    %120 = vector.shape_cast %119 : vector<8x8x3xf32> to vector<64x3xf32>
    %c0_128 = arith.constant 0 : index
    %c21 = arith.constant 21 : index
    %121 = vector.load %arg10[%c0_128, %c21] : memref<64x27xf32, #tpu.memory_space<vmem>>, vector<64x3xf32>
    tpu.vector_store %arg10[%c0_128, %c21], %120 {strides = array<i32>} : memref<64x27xf32, #tpu.memory_space<vmem>>, vector<64x3xf32>,
    %c2_129 = arith.constant 2 : index
    %c2_130 = arith.constant 2 : index
    %c0_131 = arith.constant 0 : index
    %122 = vector.load %arg8[%c2_129, %c2_130, %c0_131] : memref<10x10x3xf32, #tpu.memory_space<vmem>>, vector<8x8x3xf32>
    %123 = vector.shape_cast %122 : vector<8x8x3xf32> to vector<64x3xf32>
    %c0_132 = arith.constant 0 : index
    %c24 = arith.constant 24 : index
    %124 = vector.load %arg10[%c0_132, %c24] : memref<64x27xf32, #tpu.memory_space<vmem>>, vector<64x3xf32>
    tpu.vector_store %arg10[%c0_132, %c24], %123 {strides = array<i32>} : memref<64x27xf32, #tpu.memory_space<vmem>>, vector<64x3xf32>,
    %c0_133 = arith.constant 0 : index
    %c0_134 = arith.constant 0 : index
    %125 = vector.load %arg10[%c0_133, %c0_134] : memref<64x27xf32, #tpu.memory_space<vmem>>, vector<64x27xf32>
    %cst_135 = arith.constant dense<0.000000e+00> : vector<64x26xf32>
    %126 = tpu.matmul %125, %95, %cst_135 {dimension_numbers = #tpu.dot_dimension_numbers<[1], [0], [0], [1], [0, 0, 1, 1], [], []>} : vector<64x27xf32>, vector<27x26xf32>, vector<64x26xf32> -> vector<64x26xf32>
    %127 = vector.broadcast %97 : vector<1x26xf32> to vector<64x26xf32>
    %128 = arith.addf %126, %127 : vector<64x26xf32>
    %129 = vector.shape_cast %128 : vector<64x26xf32> to vector<8x8x26xf32>
    %130 = vector.extract_strided_slice %129 {offsets = [0, 0, 0], sizes = [8, 8, 13], strides = [1, 1, 1]} : vector<8x8x26xf32> to vector<8x8x13xf32>
    %131 = arith.negf %130 : vector<8x8x13xf32>
    %132 = math.exp %131 : vector<8x8x13xf32>
    %cst_136 = arith.constant 1.000000e+00 : f32
    %133 = vector.broadcast %cst_136 : f32 to vector<8x8x13xf32>
    %134 = arith.addf %133, %132 : vector<8x8x13xf32>
    %135 = arith.divf %133, %134 : vector<8x8x13xf32>
    %cst_137 = arith.constant 2.000000e+00 : f32
    %136 = vector.broadcast %cst_137 : f32 to vector<8x8x13xf32>
    %137 = arith.mulf %135, %136 : vector<8x8x13xf32>
    %cst_138 = arith.constant 1.000000e+00 : f32
    %138 = vector.broadcast %cst_138 : f32 to vector<8x8x13xf32>
    %139 = arith.subf %137, %138 : vector<8x8x13xf32>
    %cst_139 = arith.constant 1.000000e+00 : f32
    %140 = vector.broadcast %cst_139 : f32 to vector<8x8x13xf32>
    %141 = arith.mulf %140, %139 : vector<8x8x13xf32>
    %142 = math.exp %141 : vector<8x8x13xf32>
    %143 = arith.mulf %35, %142 : vector<8x8x13xf32>
    %144 = vector.extract_strided_slice %129 {offsets = [0, 0, 13], sizes = [8, 8, 13], strides = [1, 1, 1]} : vector<8x8x26xf32> to vector<8x8x13xf32>
    %145 = arith.addf %143, %144 : vector<8x8x13xf32>
    %c1_140 = arith.constant 1 : index
    %c1_141 = arith.constant 1 : index
    %c0_142 = arith.constant 0 : index
    %146 = vector.load %arg9[%c1_140, %c1_141, %c0_142] : memref<10x10x13xf32, #tpu.memory_space<vmem>>, vector<8x8x13xf32>
    tpu.vector_store %arg9[%c1_140, %c1_141, %c0_142], %145 {strides = array<i32>} : memref<10x10x13xf32, #tpu.memory_space<vmem>>, vector<8x8x13xf32>,
    %c1_143 = arith.constant 1 : index
    %c0_144 = arith.constant 0 : index
    %c0_145 = arith.constant 0 : index
    %147 = vector.load %arg2[%c1_143, %c0_144, %c0_145] : memref<2x117x6xf32, #tpu.memory_space<vmem>>, vector<1x117x6xf32>
    %148 = vector.shape_cast %147 : vector<1x117x6xf32> to vector<117x6xf32>
    %c1_146 = arith.constant 1 : index
    %c0_147 = arith.constant 0 : index
    %c0_148 = arith.constant 0 : index
    %149 = vector.load %arg3[%c1_146, %c0_147, %c0_148] : memref<2x1x6xf32, #tpu.memory_space<vmem>>, vector<1x1x6xf32>
    %150 = vector.shape_cast %149 : vector<1x1x6xf32> to vector<1x6xf32>
    %c0_149 = arith.constant 0 : index
    %c0_150 = arith.constant 0 : index
    %c0_151 = arith.constant 0 : index
    %151 = vector.load %arg9[%c0_149, %c0_150, %c0_151] : memref<10x10x13xf32, #tpu.memory_space<vmem>>, vector<8x8x13xf32>
    %152 = vector.shape_cast %151 : vector<8x8x13xf32> to vector<64x13xf32>
    %c0_152 = arith.constant 0 : index
    %c0_153 = arith.constant 0 : index
    %153 = vector.load %arg11[%c0_152, %c0_153] : memref<64x117xf32, #tpu.memory_space<vmem>>, vector<64x13xf32>
    tpu.vector_store %arg11[%c0_152, %c0_153], %152 {strides = array<i32>} : memref<64x117xf32, #tpu.memory_space<vmem>>, vector<64x13xf32>,
    %c0_154 = arith.constant 0 : index
    %c1_155 = arith.constant 1 : index
    %c0_156 = arith.constant 0 : index
    %154 = vector.load %arg9[%c0_154, %c1_155, %c0_156] : memref<10x10x13xf32, #tpu.memory_space<vmem>>, vector<8x8x13xf32>
    %155 = vector.shape_cast %154 : vector<8x8x13xf32> to vector<64x13xf32>
    %c0_157 = arith.constant 0 : index
    %c13_158 = arith.constant 13 : index
    %156 = vector.load %arg11[%c0_157, %c13_158] : memref<64x117xf32, #tpu.memory_space<vmem>>, vector<64x13xf32>
    tpu.vector_store %arg11[%c0_157, %c13_158], %155 {strides = array<i32>} : memref<64x117xf32, #tpu.memory_space<vmem>>, vector<64x13xf32>,
    %c0_159 = arith.constant 0 : index
    %c2_160 = arith.constant 2 : index
    %c0_161 = arith.constant 0 : index
    %157 = vector.load %arg9[%c0_159, %c2_160, %c0_161] : memref<10x10x13xf32, #tpu.memory_space<vmem>>, vector<8x8x13xf32>
    %158 = vector.shape_cast %157 : vector<8x8x13xf32> to vector<64x13xf32>
    %c0_162 = arith.constant 0 : index
    %c26_163 = arith.constant 26 : index
    %159 = vector.load %arg11[%c0_162, %c26_163] : memref<64x117xf32, #tpu.memory_space<vmem>>, vector<64x13xf32>
    tpu.vector_store %arg11[%c0_162, %c26_163], %158 {strides = array<i32>} : memref<64x117xf32, #tpu.memory_space<vmem>>, vector<64x13xf32>,
    %c1_164 = arith.constant 1 : index
    %c0_165 = arith.constant 0 : index
    %c0_166 = arith.constant 0 : index
    %160 = vector.load %arg9[%c1_164, %c0_165, %c0_166] : memref<10x10x13xf32, #tpu.memory_space<vmem>>, vector<8x8x13xf32>
    %161 = vector.shape_cast %160 : vector<8x8x13xf32> to vector<64x13xf32>
    %c0_167 = arith.constant 0 : index
    %c39_168 = arith.constant 39 : index
    %162 = vector.load %arg11[%c0_167, %c39_168] : memref<64x117xf32, #tpu.memory_space<vmem>>, vector<64x13xf32>
    tpu.vector_store %arg11[%c0_167, %c39_168], %161 {strides = array<i32>} : memref<64x117xf32, #tpu.memory_space<vmem>>, vector<64x13xf32>,
    %c1_169 = arith.constant 1 : index
    %c1_170 = arith.constant 1 : index
    %c0_171 = arith.constant 0 : index
    %163 = vector.load %arg9[%c1_169, %c1_170, %c0_171] : memref<10x10x13xf32, #tpu.memory_space<vmem>>, vector<8x8x13xf32>
    %164 = vector.shape_cast %163 : vector<8x8x13xf32> to vector<64x13xf32>
    %c0_172 = arith.constant 0 : index
    %c52_173 = arith.constant 52 : index
    %165 = vector.load %arg11[%c0_172, %c52_173] : memref<64x117xf32, #tpu.memory_space<vmem>>, vector<64x13xf32>
    tpu.vector_store %arg11[%c0_172, %c52_173], %164 {strides = array<i32>} : memref<64x117xf32, #tpu.memory_space<vmem>>, vector<64x13xf32>,
    %c1_174 = arith.constant 1 : index
    %c2_175 = arith.constant 2 : index
    %c0_176 = arith.constant 0 : index
    %166 = vector.load %arg9[%c1_174, %c2_175, %c0_176] : memref<10x10x13xf32, #tpu.memory_space<vmem>>, vector<8x8x13xf32>
    %167 = vector.shape_cast %166 : vector<8x8x13xf32> to vector<64x13xf32>
    %c0_177 = arith.constant 0 : index
    %c65_178 = arith.constant 65 : index
    %168 = vector.load %arg11[%c0_177, %c65_178] : memref<64x117xf32, #tpu.memory_space<vmem>>, vector<64x13xf32>
    tpu.vector_store %arg11[%c0_177, %c65_178], %167 {strides = array<i32>} : memref<64x117xf32, #tpu.memory_space<vmem>>, vector<64x13xf32>,
    %c2_179 = arith.constant 2 : index
    %c0_180 = arith.constant 0 : index
    %c0_181 = arith.constant 0 : index
    %169 = vector.load %arg9[%c2_179, %c0_180, %c0_181] : memref<10x10x13xf32, #tpu.memory_space<vmem>>, vector<8x8x13xf32>
    %170 = vector.shape_cast %169 : vector<8x8x13xf32> to vector<64x13xf32>
    %c0_182 = arith.constant 0 : index
    %c78_183 = arith.constant 78 : index
    %171 = vector.load %arg11[%c0_182, %c78_183] : memref<64x117xf32, #tpu.memory_space<vmem>>, vector<64x13xf32>
    tpu.vector_store %arg11[%c0_182, %c78_183], %170 {strides = array<i32>} : memref<64x117xf32, #tpu.memory_space<vmem>>, vector<64x13xf32>,
    %c2_184 = arith.constant 2 : index
    %c1_185 = arith.constant 1 : index
    %c0_186 = arith.constant 0 : index
    %172 = vector.load %arg9[%c2_184, %c1_185, %c0_186] : memref<10x10x13xf32, #tpu.memory_space<vmem>>, vector<8x8x13xf32>
    %173 = vector.shape_cast %172 : vector<8x8x13xf32> to vector<64x13xf32>
    %c0_187 = arith.constant 0 : index
    %c91_188 = arith.constant 91 : index
    %174 = vector.load %arg11[%c0_187, %c91_188] : memref<64x117xf32, #tpu.memory_space<vmem>>, vector<64x13xf32>
    tpu.vector_store %arg11[%c0_187, %c91_188], %173 {strides = array<i32>} : memref<64x117xf32, #tpu.memory_space<vmem>>, vector<64x13xf32>,
    %c2_189 = arith.constant 2 : index
    %c2_190 = arith.constant 2 : index
    %c0_191 = arith.constant 0 : index
    %175 = vector.load %arg9[%c2_189, %c2_190, %c0_191] : memref<10x10x13xf32, #tpu.memory_space<vmem>>, vector<8x8x13xf32>
    %176 = vector.shape_cast %175 : vector<8x8x13xf32> to vector<64x13xf32>
    %c0_192 = arith.constant 0 : index
    %c104_193 = arith.constant 104 : index
    %177 = vector.load %arg11[%c0_192, %c104_193] : memref<64x117xf32, #tpu.memory_space<vmem>>, vector<64x13xf32>
    tpu.vector_store %arg11[%c0_192, %c104_193], %176 {strides = array<i32>} : memref<64x117xf32, #tpu.memory_space<vmem>>, vector<64x13xf32>,
    %c0_194 = arith.constant 0 : index
    %c0_195 = arith.constant 0 : index
    %178 = vector.load %arg11[%c0_194, %c0_195] : memref<64x117xf32, #tpu.memory_space<vmem>>, vector<64x117xf32>
    %cst_196 = arith.constant dense<0.000000e+00> : vector<64x6xf32>
    %179 = tpu.matmul %178, %148, %cst_196 {dimension_numbers = #tpu.dot_dimension_numbers<[1], [0], [0], [1], [0, 0, 1, 1], [], []>} : vector<64x117xf32>, vector<117x6xf32>, vector<64x6xf32> -> vector<64x6xf32>
    %180 = vector.broadcast %150 : vector<1x6xf32> to vector<64x6xf32>
    %181 = arith.addf %179, %180 : vector<64x6xf32>
    %182 = vector.shape_cast %181 : vector<64x6xf32> to vector<8x8x6xf32>
    %183 = vector.extract_strided_slice %182 {offsets = [0, 0, 0], sizes = [8, 8, 3], strides = [1, 1, 1]} : vector<8x8x6xf32> to vector<8x8x3xf32>
    %184 = arith.negf %183 : vector<8x8x3xf32>
    %185 = math.exp %184 : vector<8x8x3xf32>
    %cst_197 = arith.constant 1.000000e+00 : f32
    %186 = vector.broadcast %cst_197 : f32 to vector<8x8x3xf32>
    %187 = arith.addf %186, %185 : vector<8x8x3xf32>
    %188 = arith.divf %186, %187 : vector<8x8x3xf32>
    %cst_198 = arith.constant 2.000000e+00 : f32
    %189 = vector.broadcast %cst_198 : f32 to vector<8x8x3xf32>
    %190 = arith.mulf %188, %189 : vector<8x8x3xf32>
    %cst_199 = arith.constant 1.000000e+00 : f32
    %191 = vector.broadcast %cst_199 : f32 to vector<8x8x3xf32>
    %192 = arith.subf %190, %191 : vector<8x8x3xf32>
    %cst_200 = arith.constant 1.000000e+00 : f32
    %193 = vector.broadcast %cst_200 : f32 to vector<8x8x3xf32>
    %194 = arith.mulf %193, %192 : vector<8x8x3xf32>
    %195 = math.exp %194 : vector<8x8x3xf32>
    %196 = arith.mulf %92, %195 : vector<8x8x3xf32>
    %197 = vector.extract_strided_slice %182 {offsets = [0, 0, 3], sizes = [8, 8, 3], strides = [1, 1, 1]} : vector<8x8x6xf32> to vector<8x8x3xf32>
    %198 = arith.addf %196, %197 : vector<8x8x3xf32>
    %c1_201 = arith.constant 1 : index
    %c1_202 = arith.constant 1 : index
    %c0_203 = arith.constant 0 : index
    %199 = vector.load %arg8[%c1_201, %c1_202, %c0_203] : memref<10x10x3xf32, #tpu.memory_space<vmem>>, vector<8x8x3xf32>
    tpu.vector_store %arg8[%c1_201, %c1_202, %c0_203], %198 {strides = array<i32>} : memref<10x10x3xf32, #tpu.memory_space<vmem>>, vector<8x8x3xf32>,
    %c1_204 = arith.constant 1 : index
    %c0_205 = arith.constant 0 : index
    %c0_206 = arith.constant 0 : index
    %200 = vector.load %arg4[%c1_204, %c0_205, %c0_206] : memref<2x27x26xf32, #tpu.memory_space<vmem>>, vector<1x27x26xf32>
    %201 = vector.shape_cast %200 : vector<1x27x26xf32> to vector<27x26xf32>
    %c1_207 = arith.constant 1 : index
    %c0_208 = arith.constant 0 : index
    %c0_209 = arith.constant 0 : index
    %202 = vector.load %arg5[%c1_207, %c0_208, %c0_209] : memref<2x1x26xf32, #tpu.memory_space<vmem>>, vector<1x1x26xf32>
    %203 = vector.shape_cast %202 : vector<1x1x26xf32> to vector<1x26xf32>
    %c0_210 = arith.constant 0 : index
    %c0_211 = arith.constant 0 : index
    %c0_212 = arith.constant 0 : index
    %204 = vector.load %arg8[%c0_210, %c0_211, %c0_212] : memref<10x10x3xf32, #tpu.memory_space<vmem>>, vector<8x8x3xf32>
    %205 = vector.shape_cast %204 : vector<8x8x3xf32> to vector<64x3xf32>
    %c0_213 = arith.constant 0 : index
    %c0_214 = arith.constant 0 : index
    %206 = vector.load %arg10[%c0_213, %c0_214] : memref<64x27xf32, #tpu.memory_space<vmem>>, vector<64x3xf32>
    tpu.vector_store %arg10[%c0_213, %c0_214], %205 {strides = array<i32>} : memref<64x27xf32, #tpu.memory_space<vmem>>, vector<64x3xf32>,
    %c0_215 = arith.constant 0 : index
    %c1_216 = arith.constant 1 : index
    %c0_217 = arith.constant 0 : index
    %207 = vector.load %arg8[%c0_215, %c1_216, %c0_217] : memref<10x10x3xf32, #tpu.memory_space<vmem>>, vector<8x8x3xf32>
    %208 = vector.shape_cast %207 : vector<8x8x3xf32> to vector<64x3xf32>
    %c0_218 = arith.constant 0 : index
    %c3_219 = arith.constant 3 : index
    %209 = vector.load %arg10[%c0_218, %c3_219] : memref<64x27xf32, #tpu.memory_space<vmem>>, vector<64x3xf32>
    tpu.vector_store %arg10[%c0_218, %c3_219], %208 {strides = array<i32>} : memref<64x27xf32, #tpu.memory_space<vmem>>, vector<64x3xf32>,
    %c0_220 = arith.constant 0 : index
    %c2_221 = arith.constant 2 : index
    %c0_222 = arith.constant 0 : index
    %210 = vector.load %arg8[%c0_220, %c2_221, %c0_222] : memref<10x10x3xf32, #tpu.memory_space<vmem>>, vector<8x8x3xf32>
    %211 = vector.shape_cast %210 : vector<8x8x3xf32> to vector<64x3xf32>
    %c0_223 = arith.constant 0 : index
    %c6_224 = arith.constant 6 : index
    %212 = vector.load %arg10[%c0_223, %c6_224] : memref<64x27xf32, #tpu.memory_space<vmem>>, vector<64x3xf32>
    tpu.vector_store %arg10[%c0_223, %c6_224], %211 {strides = array<i32>} : memref<64x27xf32, #tpu.memory_space<vmem>>, vector<64x3xf32>,
    %c1_225 = arith.constant 1 : index
    %c0_226 = arith.constant 0 : index
    %c0_227 = arith.constant 0 : index
    %213 = vector.load %arg8[%c1_225, %c0_226, %c0_227] : memref<10x10x3xf32, #tpu.memory_space<vmem>>, vector<8x8x3xf32>
    %214 = vector.shape_cast %213 : vector<8x8x3xf32> to vector<64x3xf32>
    %c0_228 = arith.constant 0 : index
    %c9_229 = arith.constant 9 : index
    %215 = vector.load %arg10[%c0_228, %c9_229] : memref<64x27xf32, #tpu.memory_space<vmem>>, vector<64x3xf32>
    tpu.vector_store %arg10[%c0_228, %c9_229], %214 {strides = array<i32>} : memref<64x27xf32, #tpu.memory_space<vmem>>, vector<64x3xf32>,
    %c1_230 = arith.constant 1 : index
    %c1_231 = arith.constant 1 : index
    %c0_232 = arith.constant 0 : index
    %216 = vector.load %arg8[%c1_230, %c1_231, %c0_232] : memref<10x10x3xf32, #tpu.memory_space<vmem>>, vector<8x8x3xf32>
    %217 = vector.shape_cast %216 : vector<8x8x3xf32> to vector<64x3xf32>
    %c0_233 = arith.constant 0 : index
    %c12_234 = arith.constant 12 : index
    %218 = vector.load %arg10[%c0_233, %c12_234] : memref<64x27xf32, #tpu.memory_space<vmem>>, vector<64x3xf32>
    tpu.vector_store %arg10[%c0_233, %c12_234], %217 {strides = array<i32>} : memref<64x27xf32, #tpu.memory_space<vmem>>, vector<64x3xf32>,
    %c1_235 = arith.constant 1 : index
    %c2_236 = arith.constant 2 : index
    %c0_237 = arith.constant 0 : index
    %219 = vector.load %arg8[%c1_235, %c2_236, %c0_237] : memref<10x10x3xf32, #tpu.memory_space<vmem>>, vector<8x8x3xf32>
    %220 = vector.shape_cast %219 : vector<8x8x3xf32> to vector<64x3xf32>
    %c0_238 = arith.constant 0 : index
    %c15_239 = arith.constant 15 : index
    %221 = vector.load %arg10[%c0_238, %c15_239] : memref<64x27xf32, #tpu.memory_space<vmem>>, vector<64x3xf32>
    tpu.vector_store %arg10[%c0_238, %c15_239], %220 {strides = array<i32>} : memref<64x27xf32, #tpu.memory_space<vmem>>, vector<64x3xf32>,
    %c2_240 = arith.constant 2 : index
    %c0_241 = arith.constant 0 : index
    %c0_242 = arith.constant 0 : index
    %222 = vector.load %arg8[%c2_240, %c0_241, %c0_242] : memref<10x10x3xf32, #tpu.memory_space<vmem>>, vector<8x8x3xf32>
    %223 = vector.shape_cast %222 : vector<8x8x3xf32> to vector<64x3xf32>
    %c0_243 = arith.constant 0 : index
    %c18_244 = arith.constant 18 : index
    %224 = vector.load %arg10[%c0_243, %c18_244] : memref<64x27xf32, #tpu.memory_space<vmem>>, vector<64x3xf32>
    tpu.vector_store %arg10[%c0_243, %c18_244], %223 {strides = array<i32>} : memref<64x27xf32, #tpu.memory_space<vmem>>, vector<64x3xf32>,
    %c2_245 = arith.constant 2 : index
    %c1_246 = arith.constant 1 : index
    %c0_247 = arith.constant 0 : index
    %225 = vector.load %arg8[%c2_245, %c1_246, %c0_247] : memref<10x10x3xf32, #tpu.memory_space<vmem>>, vector<8x8x3xf32>
    %226 = vector.shape_cast %225 : vector<8x8x3xf32> to vector<64x3xf32>
    %c0_248 = arith.constant 0 : index
    %c21_249 = arith.constant 21 : index
    %227 = vector.load %arg10[%c0_248, %c21_249] : memref<64x27xf32, #tpu.memory_space<vmem>>, vector<64x3xf32>
    tpu.vector_store %arg10[%c0_248, %c21_249], %226 {strides = array<i32>} : memref<64x27xf32, #tpu.memory_space<vmem>>, vector<64x3xf32>,
    %c2_250 = arith.constant 2 : index
    %c2_251 = arith.constant 2 : index
    %c0_252 = arith.constant 0 : index
    %228 = vector.load %arg8[%c2_250, %c2_251, %c0_252] : memref<10x10x3xf32, #tpu.memory_space<vmem>>, vector<8x8x3xf32>
    %229 = vector.shape_cast %228 : vector<8x8x3xf32> to vector<64x3xf32>
    %c0_253 = arith.constant 0 : index
    %c24_254 = arith.constant 24 : index
    %230 = vector.load %arg10[%c0_253, %c24_254] : memref<64x27xf32, #tpu.memory_space<vmem>>, vector<64x3xf32>
    tpu.vector_store %arg10[%c0_253, %c24_254], %229 {strides = array<i32>} : memref<64x27xf32, #tpu.memory_space<vmem>>, vector<64x3xf32>,
    %c0_255 = arith.constant 0 : index
    %c0_256 = arith.constant 0 : index
    %231 = vector.load %arg10[%c0_255, %c0_256] : memref<64x27xf32, #tpu.memory_space<vmem>>, vector<64x27xf32>
    %cst_257 = arith.constant dense<0.000000e+00> : vector<64x26xf32>
    %232 = tpu.matmul %231, %201, %cst_257 {dimension_numbers = #tpu.dot_dimension_numbers<[1], [0], [0], [1], [0, 0, 1, 1], [], []>} : vector<64x27xf32>, vector<27x26xf32>, vector<64x26xf32> -> vector<64x26xf32>
    %233 = vector.broadcast %203 : vector<1x26xf32> to vector<64x26xf32>
    %234 = arith.addf %232, %233 : vector<64x26xf32>
    %235 = vector.shape_cast %234 : vector<64x26xf32> to vector<8x8x26xf32>
    %236 = vector.extract_strided_slice %235 {offsets = [0, 0, 0], sizes = [8, 8, 13], strides = [1, 1, 1]} : vector<8x8x26xf32> to vector<8x8x13xf32>
    %237 = arith.negf %236 : vector<8x8x13xf32>
    %238 = math.exp %237 : vector<8x8x13xf32>
    %cst_258 = arith.constant 1.000000e+00 : f32
    %239 = vector.broadcast %cst_258 : f32 to vector<8x8x13xf32>
    %240 = arith.addf %239, %238 : vector<8x8x13xf32>
    %241 = arith.divf %239, %240 : vector<8x8x13xf32>
    %cst_259 = arith.constant 2.000000e+00 : f32
    %242 = vector.broadcast %cst_259 : f32 to vector<8x8x13xf32>
    %243 = arith.mulf %241, %242 : vector<8x8x13xf32>
    %cst_260 = arith.constant 1.000000e+00 : f32
    %244 = vector.broadcast %cst_260 : f32 to vector<8x8x13xf32>
    %245 = arith.subf %243, %244 : vector<8x8x13xf32>
    %cst_261 = arith.constant 1.000000e+00 : f32
    %246 = vector.broadcast %cst_261 : f32 to vector<8x8x13xf32>
    %247 = arith.mulf %246, %245 : vector<8x8x13xf32>
    %248 = math.exp %247 : vector<8x8x13xf32>
    %249 = arith.mulf %145, %248 : vector<8x8x13xf32>
    %250 = vector.extract_strided_slice %235 {offsets = [0, 0, 13], sizes = [8, 8, 13], strides = [1, 1, 1]} : vector<8x8x26xf32> to vector<8x8x13xf32>
    %251 = arith.addf %249, %250 : vector<8x8x13xf32>
    %c0_262 = arith.constant 0 : index
    %c0_263 = arith.constant 0 : index
    %c0_264 = arith.constant 0 : index
    %c0_265 = arith.constant 0 : index
    %252 = vector.load %arg6[%c0_262, %c0_263, %c0_264, %c0_265] : memref<1x8x8x16xf32, #tpu.memory_space<vmem>>, vector<1x8x8x3xf32>
    %253 = vector.shape_cast %252 : vector<1x8x8x3xf32> to vector<8x8x3xf32>
    %254 = vector.shape_cast %198 : vector<8x8x3xf32> to vector<1x8x8x3xf32>
    tpu.vector_store %arg6[%c0_262, %c0_263, %c0_264, %c0_265], %254 {strides = array<i32>} : memref<1x8x8x16xf32, #tpu.memory_space<vmem>>, vector<1x8x8x3xf32>,
    %c0_266 = arith.constant 0 : index
    %c0_267 = arith.constant 0 : index
    %c0_268 = arith.constant 0 : index
    %c3_269 = arith.constant 3 : index
    %255 = vector.load %arg6[%c0_266, %c0_267, %c0_268, %c3_269] : memref<1x8x8x16xf32, #tpu.memory_space<vmem>>, vector<1x8x8x13xf32>
    %256 = vector.shape_cast %255 : vector<1x8x8x13xf32> to vector<8x8x13xf32>
    %257 = vector.shape_cast %251 : vector<8x8x13xf32> to vector<1x8x8x13xf32>
    tpu.vector_store %arg6[%c0_266, %c0_267, %c0_268, %c3_269], %257 {strides = array<i32>} : memref<1x8x8x16xf32, #tpu.memory_space<vmem>>, vector<1x8x8x13xf32>,
    return
  }
  func.func @transform_0(%arg0: i32) -> (i32, i32, i32, i32, i32) {
    %c0_i32 = arith.constant 0 : i32
    %c0_i32_0 = arith.constant 0 : i32
    %c0_i32_1 = arith.constant 0 : i32
    %c0_i32_2 = arith.constant 0 : i32
    %c0_i32_3 = arith.constant 0 : i32
    return %arg0, %c0_i32, %c0_i32_0, %c0_i32_1, %c0_i32_2 : i32, i32, i32, i32, i32
  }
  func.func @transform_1(%arg0: i32) -> (i32, i32, i32) {
    %c0_i32 = arith.constant 0 : i32
    %c0_i32_0 = arith.constant 0 : i32
    %c0_i32_1 = arith.constant 0 : i32
    %c0_i32_2 = arith.constant 0 : i32
    return %c0_i32, %c0_i32_0, %c0_i32_1 : i32, i32, i32
  }
  func.func @transform_2(%arg0: i32) -> (i32, i32, i32) {
    %c0_i32 = arith.constant 0 : i32
    %c0_i32_0 = arith.constant 0 : i32
    %c0_i32_1 = arith.constant 0 : i32
    %c0_i32_2 = arith.constant 0 : i32
    return %c0_i32, %c0_i32_0, %c0_i32_1 : i32, i32, i32
  }
  func.func @transform_3(%arg0: i32) -> (i32, i32, i32) {
    %c0_i32 = arith.constant 0 : i32
    %c0_i32_0 = arith.constant 0 : i32
    %c0_i32_1 = arith.constant 0 : i32
    %c0_i32_2 = arith.constant 0 : i32
    return %c0_i32, %c0_i32_0, %c0_i32_1 : i32, i32, i32
  }
  func.func @transform_4(%arg0: i32) -> (i32, i32, i32) {
    %c0_i32 = arith.constant 0 : i32
    %c0_i32_0 = arith.constant 0 : i32
    %c0_i32_1 = arith.constant 0 : i32
    %c0_i32_2 = arith.constant 0 : i32
    return %c0_i32, %c0_i32_0, %c0_i32_1 : i32, i32, i32
  }
  func.func @transform_5(%arg0: i32) -> (i32, i32, i32, i32) {
    %c0_i32 = arith.constant 0 : i32
    %c0_i32_0 = arith.constant 0 : i32
    %c0_i32_1 = arith.constant 0 : i32
    %c0_i32_2 = arith.constant 0 : i32
    return %arg0, %c0_i32, %c0_i32_0, %c0_i32_1 : i32, i32, i32, i32
  }
}

</mosaic_0001>

<bundles_post_ra>
// kernel: tpu_custom_call.1
= control target key start
LH: loop header
LB: loop body
LE: loop exit
PB: predicated region body
PF: predicated region fallthrough
CT: control target
= control target key end

     0   :  { %s5766_s0 = inlined_call_operand.vmem [shape: f32[2,8,2,8,8], index: 0, kind: input, shape index: {}]   ;;  %s5767_s1 = inlined_call_operand.vmem [shape: f32[2,117,6], index: 1, kind: input, shape index: {}]   ;;  %s5768_s2 = inlined_call_operand.vmem [shape: f32[2,1,6], index: 2, kind: input, shape index: {}]   ;;  %s5769_s3 = inlined_call_operand.vmem [shape: f32[2,27,26], index: 3, kind: input, shape index: {}]   ;;  %s5770_s4 = inlined_call_operand.vmem [shape: f32[2,1,26], index: 4, kind: input, shape index: {}]   ;;  %s5771_s5 = inlined_call_operand.hbm [shape: f32[2,8,8,16], index: 5, kind: output, shape index: {}]  }
   0x1   :  { %5819 = sst [smem:[#allocation10_spill]] %s5766_s0 }
   0x2   :  { %10 = vsyncpa [#allocation8], 0 }
   0x3   :  { %12 = vsyncpa [#allocation8 + $0x1], 0  ;;  %s4422_s18 = smov 0   ;;  %s4424_s19 = smov 0  }
   0x4   :  { %s4426_s20 = smov 0   ;;  %s4428_s21 = smov 0  }
   0x5 LB: > { %s4443_s22 = sadd.s32 4294967295, %s4365_s21   ;;  %s3619_s23 = sadd.s32 4294967294, %s4365_s21   ;;  %s4365_s21 = sphi %s4428_s21, %s5939_s21   ;;  %s4361_s20 = sphi %s4426_s20, %s5938_s20   ;;  %s4357_s19 = sphi %s4424_s19, %s5937_s19   ;;  %s4353_s18 = sphi %s4422_s18, %s5936_s18  }
   0x6   : > { %s4447_s24 = sadd.s32 1, %s4365_s21   ;;  %s135_s25 = sadd.s32 1, %s4361_s20 }
   0x7   : > { %s132_s26 = ssub.s32 %s4365_s21, %s4447_s24  ;;  %p145_p0 = scmp.ne.s32.totalorder %s4361_s20, %s4357_s19 }
   0x8   : > { %p133_p1 = scmp.eq.s32.totalorder %s132_s26, 0  ;;  %p146_p2 = scmp.eq.s32.totalorder %s4443_s22, 1 }
   0x9   : > { %p151_p3 = scmp.ne.s32.totalorder %s4357_s19, %s4353_s18  ;;  %p152_p4 = scmp.eq.s32.totalorder %s3619_s23, 1 }
   0xa   : > { %s4458_s27 = scalar_select %p133_p1, %s4361_s20, %s135_s25  }
   0xb   : > { %p4460_p5 = por %p146_p2, %p145_p0  ;;  %p4464_p6 = por %p152_p4, %p151_p3 }
   0xc   : > { %p3622_p7 = scmp.ge.s32.totalorder %s4365_s21, 1  ;;  %p190_p8 = scmp.lt.s32.totalorder %s4365_s21, 3 }
   0xe   : > { %p191_p9 = pnand %p3622_p7, %p190_p8 }
   0xf   : > { %p218_p10 = scmp.lt.s32.totalorder (!%p191_p9), %s4443_s22, 1  ;;  %vm578_vm0 = vcmask (!%p191_p9), 105472   ;;  %vm580_vm1 = vcmask (!%p191_p9), 99328   ;;  %v4367_v0 = vmov (!%p191_p9), 0.0   ;;  %s5822_s0 = sld [smem:[#allocation10_spill]] (!%p191_p9)  ;;  %vm336_vm2 = vcmask (!%p191_p9), 31744  }
  0x10   : > { %194 = sbr.rel (%p191_p9) target bundleno = 2787 (0xae3), region = 40  ;;  %579 = vst.msk [vmem:[#allocation4] sm:$0xff] (!%p191_p9), %vm578_vm0, %v4367_v0  ;;  %582 = vst.msk [vmem:[#allocation4 + $0x10] sm:$0xff] (!%p191_p9), %vm578_vm0, %v4367_v0  ;;  %s4368_s10 = smov (!%p191_p9), 124   ;;  %vm713_vm3 = vcmask (!%p191_p9), 212072   ;;  %vm409_vm4 = vcmask (!%p191_p9), 64544  }
  0x11   : > { %581 = vst.msk [vmem:[#allocation4 + $0x8] sm:$0x3] (!%p191_p9), %vm580_vm1, %v4367_v0  ;;  %583 = vst.msk [vmem:[#allocation4 + $0x18] sm:$0x3] (!%p191_p9), %vm580_vm1, %v4367_v0  ;;  %s5785_s11 = smov (!%p191_p9), 13   ;;  %s5772_s12 = smov (!%p191_p9), 8  }
  0x12   : > { %584 = vst.msk [vmem:[#allocation4 + $0x20] sm:$0xff] (!%p191_p9), %vm578_vm0, %v4367_v0  ;;  %586 = vst.msk [vmem:[#allocation4 + $0x30] sm:$0xff] (!%p191_p9), %vm578_vm0, %v4367_v0  ;;  %s4371_s13 = smov (!%p191_p9), 4   ;;  %s5803_s14 = smov (!%p191_p9), 12   ;;  %vm474_vm5 = vcmask (!%p191_p9), 97344   ;;  %vm539_vm6 = vcmask (!%p191_p9), 130144  }
  0x13   : > { %585 = vst.msk [vmem:[#allocation4 + $0x28] sm:$0x3] (!%p191_p9), %vm580_vm1, %v4367_v0  ;;  %587 = vst.msk [vmem:[#allocation4 + $0x38] sm:$0x3] (!%p191_p9), %vm580_vm1, %v4367_v0  ;;  %s5789_s15 = smov (!%p191_p9), 78   ;;  %s5783_s16 = smov (!%p191_p9), 26  }
  0x14   : > { %588 = vst.msk [vmem:[#allocation4 + $0x40] sm:$0xff] (!%p191_p9), %vm578_vm0, %v4367_v0  ;;  %590 = vst.msk [vmem:[#allocation4 + $0x50] sm:$0xff] (!%p191_p9), %vm578_vm0, %v4367_v0  ;;  %s5787_s17 = smov (!%p191_p9), 91   ;;  %s5781_s23 = smov (!%p191_p9), 125   ;;  %vm762_vm7 = vcmask (!%p191_p9), 318672   ;;  %vm1105_vm8 = vcmask (!%p191_p9), 1044480  }
  0x15   : > { %589 = vst.msk [vmem:[#allocation4 + $0x48] sm:$0x3] (!%p191_p9), %vm580_vm1, %v4367_v0  ;;  %591 = vst.msk [vmem:[#allocation4 + $0x58] sm:$0x3] (!%p191_p9), %vm580_vm1, %v4367_v0  ;;  %s5779_s25 = smov (!%p191_p9), 39   ;;  %s5777_s26 = smov (!%p191_p9), 52  }
  0x16   : > { %592 = vst.msk [vmem:[#allocation4 + $0x60] sm:$0xff] (!%p191_p9), %vm578_vm0, %v4367_v0  ;;  %594 = vst.msk [vmem:[#allocation4 + $0x70] sm:$0xff] (!%p191_p9), %vm578_vm0, %v4367_v0  ;;  %vm811_vm9 = vcmask (!%p191_p9), 425272   ;;  %vm5792_vm10 = vcmask (!%p191_p9), 23552   ;;  %vm558_vm11 = vcmask (!%p191_p9), 17408   ;;  %vm860_vm12 = vcmask (!%p191_p9), 531872  }
  0x17   : > { %593 = vst.msk [vmem:[#allocation4 + $0x68] sm:$0x3] %vm580_vm1, %v4367_v0  ;;  %595 = vst.msk [vmem:[#allocation4 + $0x78] sm:$0x3] %vm580_vm1, %v4367_v0  ;;  %s219_s30 = scalar_select %p218_p10, %s4443_s22, 1  ;;  %v657_v18 = vld [vmem:[#allocation4] sm:$0xff] }
  0x18   : > { %596 = vst.msk [vmem:[#allocation4 + $0x80] sm:$0xff] %vm578_vm0, %v4367_v0  ;;  %598 = vst.msk [vmem:[#allocation4 + $0x90] sm:$0xff] %vm578_vm0, %v4367_v0  ;;  %v673_v17 = vld [vmem:[#allocation4 + $0x1] sm:$0xff]  ;;  %s5809_s7 = smov 3   ;;  %s5811_s8 = smov 21   ;;  %vm5796_vm13 = vcmask 638472  }
  0x19   : > { %597 = vst.msk [vmem:[#allocation4 + $0x88] sm:$0x3] %vm580_vm1, %v4367_v0  ;;  %599 = vst.msk [vmem:[#allocation4 + $0x98] sm:$0x3] %vm580_vm1, %v4367_v0  ;;  %s3764_s6 = sshll.u32 %s219_s30, 7  ;;  %s5813_s30 = smov 18  }
  0x1a   : > { %s4517_s9 = scalar_lea.vmem %s5822_s0, %s3764_s6  ;;  %665 = vst.msk [vmem:[#allocation6] sm:$0xff] %vm578_vm0, %v657_v18  ;;  %s5775_s6 = smov 65   ;;  %vm5795_vm14 = vcmask 745072   ;;  %vm5794_vm15 = vcmask 851672   ;;  %vm5793_vm1 = vcmask 958272  }
  0x1b   : > { %v225_v1 = vld [vmem:[%s4517_s9 + $0x20] sm:$0xff]  ;;  %v3626_v3 = vld [vmem:[%s4517_s9 + $0x8] sm:$0xff]  ;;  %v224_v4 = vld [vmem:[%s4517_s9 + $0x10] sm:$0xff]  ;;  %576 = vst.msk [vmem:[#allocation3 + $0x90] sm:$0xff] %vm5792_vm10, %v4367_v0  ;;  %s4390_s0 = smov [#allocation7]  }
  0x1c   : > { %v223_v2 = vld [vmem:[%s4517_s9] sm:$0xff]  ;;  %252 = vrot.lane.b32.xlu1 %v225_v1, %s4368_s10  ;;  %v4524_v5 = vld [vmem:[%s4517_s9 + $0x18] sm:$0xff]  ;;  %v4527_v6 = vld [vmem:[%s4517_s9 + $0x30] sm:$0xff]  ;;  %557 = vst.msk [vmem:[#allocation3] sm:$0xff] %vm5792_vm10, %v4367_v0 }
  0x1d   : > { %248 = vrot.lane.b32.xlu0 %v223_v2, %s4368_s10  ;;  %v4532_v7 = vld [vmem:[%s4517_s9 + $0x28] sm:$0xff]  ;;  %v4535_v8 = vld [vmem:[%s4517_s9 + $0x40] sm:$0xff]  ;;  %v4540_v9 = vld [vmem:[%s4517_s9 + $0x38] sm:$0xff]  ;;  %560 = vst.msk [vmem:[#allocation3 + $0x10] sm:$0xff] %vm5792_vm10, %v4367_v0 }
  0x1e   : > { %v4543_v10 = vld [vmem:[%s4517_s9 + $0x50] sm:$0xff]  ;;  %v4548_v11 = vld [vmem:[%s4517_s9 + $0x48] sm:$0xff]  ;;  %v4551_v12 = vld [vmem:[%s4517_s9 + $0x60] sm:$0xff]  ;;  %562 = vst.msk [vmem:[#allocation3 + $0x20] sm:$0xff] %vm5792_vm10, %v4367_v0 }
  0x1f   : > { %v4556_v13 = vld [vmem:[%s4517_s9 + $0x58] sm:$0xff]  ;;  %v4559_v14 = vld [vmem:[%s4517_s9 + $0x70] sm:$0xff]  ;;  %v4564_v15 = vld [vmem:[%s4517_s9 + $0x68] sm:$0xff]  ;;  %564 = vst.msk [vmem:[#allocation3 + $0x30] sm:$0xff] %vm5792_vm10, %v4367_v0 }
  0x20   : > { %296 = vrot.lane.b32.xlu1 %v3626_v3, %s4368_s10  ;;  %v4567_v16 = vld [vmem:[%s4517_s9 + $0x78] sm:$0xff]  ;;  %566 = vst.msk [vmem:[#allocation3 + $0x40] sm:$0xff] %vm5792_vm10, %v4367_v0  ;;  %568 = vst.msk [vmem:[#allocation3 + $0x50] sm:$0xff] %vm5792_vm10, %v4367_v0  ;;  %s5807_s9 = smov 6  }
  0x21   : > { %250 = vrot.lane.b32.xlu0 %v224_v4, %s4368_s10  ;;  %570 = vst.msk [vmem:[#allocation3 + $0x60] sm:$0xff] %vm5792_vm10, %v4367_v0  ;;  %572 = vst.msk [vmem:[#allocation3 + $0x70] sm:$0xff] %vm5792_vm10, %v4367_v0 }
  0x22   : > { %574 = vst.msk [vmem:[#allocation3 + $0x80] sm:$0xff] %vm5792_vm10, %v4367_v0 }
  0x23   : > { %559 = vst.msk [vmem:[#allocation3 + $0x8] sm:$0x3] %vm558_vm11, %v4367_v0  ;;  %561 = vst.msk [vmem:[#allocation3 + $0x18] sm:$0x3] %vm558_vm11, %v4367_v0 }
  0x24   : > { %298 = vrot.lane.b32.xlu1 %v4524_v5, %s4368_s10  ;;  %563 = vst.msk [vmem:[#allocation3 + $0x28] sm:$0x3] %vm558_vm11, %v4367_v0  ;;  %565 = vst.msk [vmem:[#allocation3 + $0x38] sm:$0x3] %vm558_vm11, %v4367_v0 }
  0x25   : > { %254 = vrot.lane.b32.xlu0 %v4527_v6, %s4368_s10  ;;  %567 = vst.msk [vmem:[#allocation3 + $0x48] sm:$0x3] %vm558_vm11, %v4367_v0  ;;  %569 = vst.msk [vmem:[#allocation3 + $0x58] sm:$0x3] %vm558_vm11, %v4367_v0 }
  0x26   : > { %571 = vst.msk [vmem:[#allocation3 + $0x68] sm:$0x3] %vm558_vm11, %v4367_v0  ;;  %573 = vst.msk [vmem:[#allocation3 + $0x78] sm:$0x3] %vm558_vm11, %v4367_v0 }
  0x27   : > { %575 = vst.msk [vmem:[#allocation3 + $0x88] sm:$0x3] %vm558_vm11, %v4367_v0  ;;  %577 = vst.msk [vmem:[#allocation3 + $0x98] sm:$0x3] %vm558_vm11, %v4367_v0  ;;  %vm4388_vm11 = vmmov 1  }
  0x28   : > { %300 = vrot.lane.b32.xlu1 %v4532_v7, %s4368_s10 }
  0x29   : > { %256 = vrot.lane.b32.xlu0 %v4535_v8, %s4368_s10 }
  0x2c   : > { %302 = vrot.lane.b32.xlu1 %v4540_v9, %s4368_s10 }
  0x2d   : > { %258 = vrot.lane.b32.xlu0 %v4543_v10, %s4368_s10 }
  0x30   : > { %304 = vrot.lane.b32.xlu1 %v4548_v11, %s4368_s10 }
  0x31   : > { %260 = vrot.lane.b32.xlu0 %v4551_v12, %s4368_s10 }
  0x34   : > { %306 = vrot.lane.b32.xlu1 %v4556_v13, %s4368_s10 }
  0x35   : > { %262 = vrot.lane.b32.xlu0 %v4559_v14, %s4368_s10 }
  0x38   : > { %310 = vrot.lane.b32.xlu1 %v4567_v16, %s4368_s10 }
  0x39   : > { %308 = vrot.lane.b32.xlu0 %v4564_v15, %s4368_s10  ;;  %s5801_s10 = smov 15  }
  0x3d   : > { %689 = vrot.lane.b32.xlu0 %v673_v17, %s5785_s11 }
  0x8e   : > { %v253_v19 = vpop.permute.xlu1 %252 }
  0x8f   : > { %v249_v20 = vpop.permute.xlu0 %248  ;;  %v274_v31 = vadd.f32 %v253_v19, %v225_v1  ;;  %v347_v35 = vsub.f32 %v225_v1, %v253_v19 }
  0x90   : > { %v272_v21 = vadd.f32 %v249_v20, %v223_v2  ;;  %v345_v22 = vsub.f32 %v223_v2, %v249_v20 }
  0x91   : > { %v355_v48 = vadd.f32 %v4532_v7, %v347_v35  ;;  %v282_v52 = vadd.f32 %v4532_v7, %v274_v31  ;;  %v420_v58 = vsub.f32 %v274_v31, %v4532_v7  ;;  %v485_v19 = vsub.f32 %v347_v35, %v4532_v7 }
  0x92   : > { %v280_v23 = vadd.f32 %v3626_v3, %v272_v21  ;;  %v353_v24 = vadd.f32 %v3626_v3, %v345_v22  ;;  %v418_v25 = vsub.f32 %v272_v21, %v3626_v3  ;;  %v483_v26 = vsub.f32 %v345_v22, %v3626_v3  ;;  %v297_v27 = vpop.permute.xlu1 %296 }
  0x93   : > { %v251_v28 = vpop.permute.xlu0 %250 }
  0x94   : > { %v273_v29 = vadd.f32 %v251_v28, %v224_v4  ;;  %v346_v30 = vsub.f32 %v224_v4, %v251_v28  ;;  %v426_v32 = vsub.f32 %v418_v25, %v297_v27  ;;  %v361_v33 = vsub.f32 %v353_v24, %v297_v27 }
  0x95   : > { %v320_v34 = vadd.f32 %v297_v27, %v280_v23  ;;  %v491_v38 = vadd.f32 %v483_v26, %v297_v27 }
  0x96   : > { %v281_v36 = vadd.f32 %v4524_v5, %v273_v29  ;;  %v354_v37 = vadd.f32 %v4524_v5, %v346_v30  ;;  %v419_v39 = vsub.f32 %v273_v29, %v4524_v5  ;;  %v299_v40 = vpop.permute.xlu1 %298  ;;  %v434_v41 = vmul.f32 0.25, %v426_v32 }
  0x97   : > { %v369_v42 = vmul.f32 0.25, %v361_v33  ;;  %v255_v43 = vpop.permute.xlu0 %254  ;;  %v328_v44 = vmul.f32 0.25, %v320_v34  ;;  %v484_v49 = vsub.f32 %v346_v30, %v4524_v5  ;;  %v499_v54 = vmul.f32 0.25, %v491_v38 }
  0x98   : > { %v362_v45 = vsub.f32 %v354_v37, %v299_v40  ;;  %450 = vrot.lane.b32.xlu1 %v434_v41, %s5772_s12  ;;  %v348_v46 = vsub.f32 %v4527_v6, %v255_v43  ;;  %v321_v47 = vadd.f32 %v299_v40, %v281_v36  ;;  %v275_v51 = vadd.f32 %v255_v43, %v4527_v6 }
  0x99   : > { %385 = vrot.lane.b32.xlu0 %v369_v42, %s4371_s13  ;;  %337 = vst.msk [vmem:[#allocation2] sm:$0xff] %vm336_vm2, %v328_v44  ;;  %v427_v55 = vsub.f32 %v419_v39, %v299_v40  ;;  %v492_v2 = vadd.f32 %v484_v49, %v299_v40 }
  0x9a   : > { %v370_v50 = vmul.f32 0.25, %v362_v45  ;;  %v301_v53 = vpop.permute.xlu1 %300  ;;  %v329_v57 = vmul.f32 0.25, %v321_v47  ;;  %v283_v60 = vadd.f32 %v4540_v9, %v275_v51  ;;  %v356_v61 = vadd.f32 %v4540_v9, %v348_v46 }
  0x9b   : > { %v257_v56 = vpop.permute.xlu0 %256  ;;  %v363_v59 = vsub.f32 %v355_v48, %v301_v53  ;;  %v322_v63 = vadd.f32 %v301_v53, %v282_v52  ;;  %v435_v4 = vmul.f32 0.25, %v427_v55  ;;  %v428_v5 = vsub.f32 %v420_v58, %v301_v53 }
  0x9c   : > { %515 = vrot.lane.b32.xlu1 %v499_v54, %s5803_s14  ;;  %v349_v62 = vsub.f32 %v4535_v8, %v257_v56  ;;  %338 = vst.msk [vmem:[#allocation2 + $0x8] sm:$0xff] %vm336_vm2, %v329_v57  ;;  %v276_v3 = vadd.f32 %v257_v56, %v4535_v8  ;;  %v421_v20 = vsub.f32 %v275_v51, %v4540_v9  ;;  %v500_v24 = vmul.f32 0.25, %v492_v2 }
  0x9d   : > { %387 = vrot.lane.b32.xlu0 %v370_v50, %s4371_s13  ;;  %v371_v1 = vmul.f32 0.25, %v363_v59  ;;  %v330_v18 = vmul.f32 0.25, %v322_v63  ;;  %v493_v25 = vadd.f32 %v485_v19, %v301_v53  ;;  %v436_v26 = vmul.f32 0.25, %v428_v5 }
  0x9e   : > { %v303_v6 = vpop.permute.xlu1 %302  ;;  %v284_v21 = vadd.f32 %v4548_v11, %v276_v3  ;;  %v357_v23 = vadd.f32 %v4548_v11, %v349_v62  ;;  %v486_v27 = vsub.f32 %v348_v46, %v4540_v9  ;;  %v422_v32 = vsub.f32 %v276_v3, %v4548_v11 }
  0x9f   : > { %v259_v17 = vpop.permute.xlu0 %258  ;;  %v364_v22 = vsub.f32 %v356_v61, %v303_v6  ;;  %339 = vst.msk [vmem:[#allocation2 + $0x10] sm:$0xff] %vm336_vm2, %v330_v18  ;;  %v323_v8 = vadd.f32 %v303_v6, %v283_v60  ;;  %v429_v31 = vsub.f32 %v421_v20, %v303_v6  ;;  %v501_v37 = vmul.f32 0.25, %v493_v25 }
  0xa0   : > { %389 = vrot.lane.b32.xlu1 %v371_v1, %s4371_s13  ;;  %v277_v28 = vadd.f32 %v259_v17, %v4543_v10  ;;  %v350_v33 = vsub.f32 %v4543_v10, %v259_v17  ;;  %v487_v38 = vsub.f32 %v349_v62, %v4548_v11  ;;  %v494_v39 = vadd.f32 %v486_v27, %v303_v6 }
  0xa1   : > { %452 = vrot.lane.b32.xlu0 %v435_v4, %s5772_s12  ;;  %v331_v30 = vmul.f32 0.25, %v323_v8  ;;  %v372_v34 = vmul.f32 0.25, %v364_v22  ;;  %v437_v10 = vmul.f32 0.25, %v429_v31  ;;  %v722_v31 = vld [vmem:[#allocation4 + $0x2] sm:$0xff] }
  0xa2   : > { %v305_v7 = vpop.permute.xlu1 %304  ;;  %v285_v36 = vadd.f32 %v4556_v13, %v277_v28  ;;  %v358_v44 = vadd.f32 %v4556_v13, %v350_v33  ;;  %v502_v53 = vmul.f32 0.25, %v494_v39  ;;  %v423_v54 = vsub.f32 %v277_v28, %v4556_v13 }
  0xa3   : > { %v261_v29 = vpop.permute.xlu0 %260  ;;  %v365_v35 = vsub.f32 %v357_v23, %v305_v7  ;;  %340 = vst.msk [vmem:[#allocation2 + $0x18] sm:$0xff] %vm336_vm2, %v331_v30  ;;  %v324_v9 = vadd.f32 %v305_v7, %v284_v21  ;;  %v430_v43 = vsub.f32 %v422_v32, %v305_v7  ;;  %v495_v55 = vadd.f32 %v487_v38, %v305_v7  ;;  %v926_v30 = vld [vmem:[#allocation4 + $0x90] sm:$0xff] }
  0xa4   : > { %454 = vrot.lane.b32.xlu1 %v436_v26, %s5772_s12  ;;  %v278_v40 = vadd.f32 %v261_v29, %v4551_v12  ;;  %v351_v11 = vsub.f32 %v4551_v12, %v261_v29  ;;  %v488_v63 = vsub.f32 %v350_v33, %v4556_v13  ;;  %v975_v32 = vld [vmem:[#allocation4 + $0x91] sm:$0xff] }
  0xa5   : > { %517 = vrot.lane.b32.xlu0 %v500_v24, %s5803_s14  ;;  %v332_v42 = vmul.f32 0.25, %v324_v9  ;;  %v373_v47 = vmul.f32 0.25, %v365_v35  ;;  %v438_v56 = vmul.f32 0.25, %v430_v43  ;;  %v503_v1 = vmul.f32 0.25, %v495_v55 }
  0xa6   : > { %v307_v45 = vpop.permute.xlu1 %306  ;;  %v286_v48 = vadd.f32 %v4564_v15, %v278_v40  ;;  %v359_v57 = vadd.f32 %v4564_v15, %v351_v11  ;;  %v424_v2 = vsub.f32 %v278_v40, %v4564_v15  ;;  %v489_v13 = vsub.f32 %v351_v11, %v4564_v15 }
  0xa7   : > { %v263_v41 = vpop.permute.xlu0 %262  ;;  %341 = vst.msk [vmem:[#allocation2 + $0x20] sm:$0xff] %vm336_vm2, %v332_v42  ;;  %v325_v49 = vadd.f32 %v307_v45, %v285_v36  ;;  %v366_v12 = vsub.f32 %v358_v44, %v307_v45  ;;  %v431_v5 = vsub.f32 %v423_v54, %v307_v45  ;;  %v496_v18 = vadd.f32 %v488_v63, %v307_v45 }
  0xa8   : > { %v279_v46 = vadd.f32 %v263_v41, %v4559_v14  ;;  %519 = vrot.lane.b32.xlu1 %v501_v37, %s5803_s14  ;;  %v352_v3 = vsub.f32 %v4559_v14, %v263_v41 }
  0xa9   : > { %391 = vrot.lane.b32.xlu0 %v372_v34, %s4371_s13  ;;  %v333_v52 = vmul.f32 0.25, %v325_v49  ;;  %v374_v4 = vmul.f32 0.25, %v366_v12  ;;  %v439_v19 = vmul.f32 0.25, %v431_v5  ;;  %v504_v23 = vmul.f32 0.25, %v496_v18  ;;  %v641_v18 = vld [vmem:[%s5767_s1] sm:$0xff] }
  0xaa   : > { %v287_v50 = vadd.f32 %v4567_v16, %v279_v46  ;;  %v311_v59 = vpop.permute.xlu1 %310  ;;  %v360_v14 = vadd.f32 %v4567_v16, %v352_v3  ;;  %v425_v22 = vsub.f32 %v279_v46, %v4567_v16  ;;  %v490_v25 = vsub.f32 %v352_v3, %v4567_v16 }
  0xab   : > { %v309_v51 = vpop.permute.xlu0 %308  ;;  %342 = vst.msk [vmem:[#allocation2 + $0x28] sm:$0xff] %vm336_vm2, %v333_v52 }
  0xac   : > { %393 = vrot.lane.b32.xlu1 %v373_v47, %s4371_s13  ;;  %v326_v58 = vadd.f32 %v309_v51, %v286_v48  ;;  %v327_v62 = vadd.f32 %v311_v59, %v287_v50  ;;  %v367_v6 = vsub.f32 %v359_v57, %v309_v51  ;;  %v432_v21 = vsub.f32 %v424_v2, %v309_v51 }
  0xad   : > { %456 = vrot.lane.b32.xlu0 %v437_v10, %s5772_s12  ;;  %v497_v24 = vadd.f32 %v489_v13, %v309_v51  ;;  %v368_v15 = vsub.f32 %v360_v14, %v311_v59  ;;  %v433_v7 = vsub.f32 %v425_v22, %v311_v59  ;;  %v498_v29 = vadd.f32 %v490_v25, %v311_v59  ;;  %v642_v14 = vld [vmem:[%s5767_s1 + $0x8] sm:$0xff] }
  0xae   : > { %v334_v61 = vmul.f32 0.25, %v326_v58  ;;  %v335_v17 = vmul.f32 0.25, %v327_v62  ;;  %v375_v20 = vmul.f32 0.25, %v367_v6  ;;  %v440_v8 = vmul.f32 0.25, %v432_v21 }
  0xaf   : > { %v690_v60 = vpop.permute.xlu0 %689  ;;  %v505_v26 = vmul.f32 0.25, %v497_v24  ;;  %v376_v27 = vmul.f32 0.25, %v368_v15  ;;  %v441_v28 = vmul.f32 0.25, %v433_v7  ;;  %v506_v16 = vmul.f32 0.25, %v498_v29 }
  0xb0   : > { %714 = vst.msk [vmem:[#allocation6] sm:$0xff] %vm713_vm3, %v690_v60  ;;  %458 = vrot.lane.b32.xlu1 %v438_v56, %s5772_s12  ;;  %v3960_v22 = vpack.c.bf16 %v642_v14, %v641_v18 }
  0xb1   : > { %521 = vrot.lane.b32.xlu0 %v502_v53, %s5803_s14  ;;  %343 = vst.msk [vmem:[#allocation2 + $0x30] sm:$0xff] %vm336_vm2, %v334_v61  ;;  %344 = vst.msk [vmem:[#allocation2 + $0x38] sm:$0xff] %vm336_vm2, %v335_v17  ;;  %vm5791_vm2 = vcmask 957440  }
  0xb2   : > { %3961 = vmatprep.subr.bf16.mxu0 %v3960_v22 }
  0xb3   : > { %3963 = vmatpush3.bf16.msra.mxu0 %v3960_v22 }
  0xb4   : > { %523 = vrot.lane.b32.xlu1 %v503_v1, %s5803_s14 }
  0xb5   : > { %395 = vrot.lane.b32.xlu0 %v374_v4, %s4371_s13 }
  0xb8   : > { %397 = vrot.lane.b32.xlu1 %v375_v20, %s4371_s13 }
  0xb9   : > { %460 = vrot.lane.b32.xlu0 %v439_v19, %s5772_s12 }
  0xbc   : > { %462 = vrot.lane.b32.xlu1 %v440_v8, %s5772_s12  ;;  %v644_v8 = vld [vmem:[%s5767_s1 + $0x18] sm:$0xff] }
  0xbd   : > { %525 = vrot.lane.b32.xlu0 %v504_v23, %s5803_s14  ;;  %v643_v23 = vld [vmem:[%s5767_s1 + $0x10] sm:$0xff] }
  0xbe   : > { %v3964_v25 = vpack.c.bf16 %v644_v8, %v643_v23 }
  0xc0   : > { %527 = vrot.lane.b32.xlu1 %v505_v26, %s5803_s14  ;;  %3965 = vmatprep.subr.bf16.mxu0 %v3964_v25  ;;  %v645_v26 = vld [vmem:[%s5767_s1 + $0x20] sm:$0xff] }
  0xc1   : > { %399 = vrot.lane.b32.xlu0 %v376_v27, %s4371_s13  ;;  %3967 = vmatpush3.bf16.msra.mxu0 %v3964_v25  ;;  %v646_v27 = vld [vmem:[%s5767_s1 + $0x28] sm:$0xff]  ;;  %s5773_s13 = smov 104  }
  0xc2   : > { %v3968_v29 = vpack.c.bf16 %v646_v27, %v645_v26 }
  0xc4   : > { %949 = vrot.lane.b32.xlu1 %v926_v30, %s5789_s15  ;;  %3969 = vmatprep.subr.bf16.mxu0 %v3968_v29  ;;  %v647_v30 = vld [vmem:[%s5767_s1 + $0x30] sm:$0xff] }
  0xc5   : > { %464 = vrot.lane.b32.xlu0 %v441_v28, %s5772_s12  ;;  %3971 = vmatpush3.bf16.msra.mxu0 %v3968_v29  ;;  %s5805_s12 = smov 9  }
  0xc8   : > { %529 = vrot.lane.b32.xlu1 %v506_v16, %s5803_s14  ;;  %v648_v16 = vld [vmem:[%s5767_s1 + $0x38] sm:$0xff] }
  0xc9   : > { %738 = vrot.lane.b32.xlu0 %v722_v31, %s5783_s16 }
  0xcc   : > { %998 = vrot.lane.b32.xlu1 %v975_v32, %s5787_s17 }
 0x10a   : > { %v451_v33 = vpop.permute.xlu1 %450 }
 0x10b   : > { %v386_v34 = vpop.permute.xlu0 %385 }
 0x10c   : > { %410 = vst.msk [vmem:[#allocation2] sm:$0xff] %vm409_vm4, %v386_v34  ;;  %v649_v34 = vld [vmem:[%s5767_s1 + $0x40] sm:$0xff] }
 0x10d   : > { %475 = vst.msk [vmem:[#allocation2] sm:$0xff] %vm474_vm5, %v451_v33  ;;  %v3972_v33 = vpack.c.bf16 %v648_v16, %v647_v30 }
 0x10e   : > { %v516_v35 = vpop.permute.xlu1 %515 }
 0x10f   : > { %v388_v36 = vpop.permute.xlu0 %387  ;;  %540 = vst.msk [vmem:[#allocation2] sm:$0xff] %vm539_vm6, %v516_v35  ;;  %3973 = vmatprep.subr.bf16.mxu0 %v3972_v33  ;;  %v650_v35 = vld [vmem:[%s5767_s1 + $0x48] sm:$0xff] }
 0x110   : > { %411 = vst.msk [vmem:[#allocation2 + $0x8] sm:$0xff] %vm409_vm4, %v388_v36  ;;  %3975 = vmatpush3.bf16.msra.mxu0 %v3972_v33 }
 0x112   : > { %v390_v9 = vpop.permute.xlu1 %389 }
 0x113   : > { %v453_v37 = vpop.permute.xlu0 %452  ;;  %412 = vst.msk [vmem:[#allocation2 + $0x10] sm:$0xff] %vm409_vm4, %v390_v9  ;;  %v3976_v9 = vpack.c.bf16 %v650_v35, %v649_v34 }
 0x114   : > { %476 = vst.msk [vmem:[#allocation2 + $0x8] sm:$0xff] %vm474_vm5, %v453_v37  ;;  %v651_v37 = vld [vmem:[%s5767_s1 + $0x50] sm:$0xff] }
 0x115   : > { %3977 = vmatprep.subr.bf16.mxu0 %v3976_v9 }
 0x116   : > { %v455_v38 = vpop.permute.xlu1 %454  ;;  %v4653_v40 = vld [vmem:[#allocation2] sm:$0xff]  ;;  %3979 = vmatpush3.bf16.msra.mxu0 %v3976_v9 }
 0x117   : > { %v518_v39 = vpop.permute.xlu0 %517  ;;  %477 = vst.msk [vmem:[#allocation2 + $0x10] sm:$0xff] %vm474_vm5, %v455_v38  ;;  %608 = vrot.lane.b32.xlu0 %v4653_v40, %s5781_s23  ;;  %v652_v38 = vld [vmem:[%s5767_s1 + $0x58] sm:$0xff] }
 0x118   : > { %541 = vst.msk [vmem:[#allocation2 + $0x8] sm:$0xff] %vm539_vm6, %v518_v39 }
 0x11a   : > { %v520_v41 = vpop.permute.xlu1 %519 }
 0x11b   : > { %v392_v42 = vpop.permute.xlu0 %391  ;;  %542 = vst.msk [vmem:[#allocation2 + $0x10] sm:$0xff] %vm539_vm6, %v520_v41  ;;  %v3980_v41 = vpack.c.bf16 %v652_v38, %v651_v37 }
 0x11c   : > { %413 = vst.msk [vmem:[#allocation2 + $0x18] sm:$0xff] %vm409_vm4, %v392_v42  ;;  %v653_v42 = vld [vmem:[%s5767_s1 + $0x60] sm:$0xff] }
 0x11d   : > { %3981 = vmatprep.subr.bf16.mxu0 %v3980_v41 }
 0x11e   : > { %v394_v44 = vpop.permute.xlu1 %393  ;;  %3983 = vmatpush3.bf16.msra.mxu0 %v3980_v41 }
 0x11f   : > { %v4661_v10 = vld [vmem:[#allocation2 + $0x8] sm:$0xff]  ;;  %v457_v43 = vpop.permute.xlu0 %456  ;;  %414 = vst.msk [vmem:[#allocation2 + $0x20] sm:$0xff] %vm409_vm4, %v394_v44 }
 0x120   : > { %610 = vrot.lane.b32.xlu1 %v4661_v10, %s5781_s23  ;;  %478 = vst.msk [vmem:[#allocation2 + $0x18] sm:$0xff] %vm474_vm5, %v457_v43  ;;  %v654_v43 = vld [vmem:[%s5767_s1 + $0x68] sm:$0xff] }
 0x122   : > { %v4667_v45 = vld [vmem:[#allocation2 + $0x10] sm:$0xff]  ;;  %v459_v47 = vpop.permute.xlu1 %458 }
 0x123   : > { %v522_v46 = vpop.permute.xlu0 %521  ;;  %612 = vrot.lane.b32.xlu0 %v4667_v45, %s5781_s23  ;;  %479 = vst.msk [vmem:[#allocation2 + $0x20] sm:$0xff] %vm474_vm5, %v459_v47 }
 0x124   : > { %543 = vst.msk [vmem:[#allocation2 + $0x18] sm:$0xff] %vm539_vm6, %v522_v46 }
 0x126   : > { %v524_v48 = vpop.permute.xlu1 %523 }
 0x127   : > { %v396_v11 = vpop.permute.xlu0 %395  ;;  %544 = vst.msk [vmem:[#allocation2 + $0x20] sm:$0xff] %vm539_vm6, %v524_v48  ;;  %v3984_v48 = vpack.c.bf16 %v654_v43, %v653_v42 }
 0x128   : > { %415 = vst.msk [vmem:[#allocation2 + $0x28] sm:$0xff] %vm409_vm4, %v396_v11  ;;  %v655_v11 = vld [vmem:[%s5767_s1 + $0x70] sm:$0x1f] }
 0x129   : > { %3985 = vmatprep.subr.bf16.mxu0 %v3984_v48 }
 0x12a   : > { %v398_v51 = vpop.permute.xlu1 %397  ;;  %3987 = vmatpush3.bf16.msra.mxu0 %v3984_v48 }
 0x12b   : > { %v4675_v49 = vld [vmem:[#allocation2 + $0x18] sm:$0xff]  ;;  %v461_v50 = vpop.permute.xlu0 %460  ;;  %416 = vst.msk [vmem:[#allocation2 + $0x30] sm:$0xff] %vm409_vm4, %v398_v51  ;;  %3864 = vmatprep.subr.msk.mxu0 %vm1105_vm8, %v655_v11 }
 0x12c   : > { %614 = vrot.lane.b32.xlu1 %v4675_v49, %s5781_s23  ;;  %480 = vst.msk [vmem:[#allocation2 + $0x28] sm:$0xff] %vm474_vm5, %v461_v50 }
 0x12e   : > { %v552_v52 = vld [vmem:[#allocation2 + $0x20] sm:$0xff]  ;;  %v463_v54 = vpop.permute.xlu1 %462  ;;  %3865 = vmatpush3.msk.msra.mxu0 %vm1105_vm8, %v655_v11 }
 0x12f   : > { %v526_v53 = vpop.permute.xlu0 %525  ;;  %616 = vrot.lane.b32.xlu0 %v552_v52, %s5781_s23  ;;  %481 = vst.msk [vmem:[#allocation2 + $0x30] sm:$0xff] %vm474_vm5, %v463_v54 }
 0x130   : > { %545 = vst.msk [vmem:[#allocation2 + $0x28] sm:$0xff] %vm539_vm6, %v526_v53 }
 0x132   : > { %v528_v55 = vpop.permute.xlu1 %527 }
 0x133   : > { %v400_v56 = vpop.permute.xlu0 %399  ;;  %546 = vst.msk [vmem:[#allocation2 + $0x30] sm:$0xff] %vm539_vm6, %v528_v55 }
 0x134   : > { %417 = vst.msk [vmem:[#allocation2 + $0x38] sm:$0xff] %vm409_vm4, %v400_v56  ;;  %vm1412_vm4 = vcmask 48152  }
 0x136   : > { %v4686_v12 = vpop.permute.xlu1 %949 }
 0x137   : > { %v553_v57 = vld [vmem:[#allocation2 + $0x28] sm:$0xff]  ;;  %v465_v58 = vpop.permute.xlu0 %464 }
 0x138   : > { %618 = vrot.lane.b32.xlu1 %v553_v57, %s5781_s23  ;;  %482 = vst.msk [vmem:[#allocation2 + $0x38] sm:$0xff] %vm474_vm5, %v465_v58  ;;  %vm1461_vm5 = vcmask 72752  }
 0x13a   : > { %v530_v59 = vpop.permute.xlu1 %529  ;;  %v554_v60 = vld [vmem:[#allocation2 + $0x30] sm:$0xff] }
 0x13b   : > { %v739_v61 = vpop.permute.xlu0 %738  ;;  %547 = vst.msk [vmem:[#allocation2 + $0x38] sm:$0xff] %vm539_vm6, %v530_v59  ;;  %620 = vrot.lane.b32.xlu0 %v554_v60, %s5781_s23  ;;  %v1024_v60 = vld [vmem:[#allocation4 + $0x92] sm:$0xff]  ;;  %vm1804_vm6 = vcmask 1042432  }
 0x13c   : > { %763 = vst.msk [vmem:[#allocation6] sm:$0xff] %vm762_vm7, %v739_v61 }
 0x13e   : > { %v4695_v1 = vpop.permute.xlu1 %998 }
 0x142   : > { %v555_v62 = vld [vmem:[#allocation2 + $0x38] sm:$0xff] }
 0x143   : > { %622 = vrot.lane.b32.xlu1 %v555_v62, %s5781_s23 }
 0x189   : > { %v609_v63 = vpop.permute.xlu0 %608 }
 0x18a   : > { %633 = vst.msk [vmem:[#allocation4 + $0x11] sm:$0xff] %vm578_vm0, %v609_v63 }
 0x191   : > { %v771_v3 = vld [vmem:[#allocation4 + $0x10] sm:$0xff] }
 0x192   : > { %v611_v2 = vpop.permute.xlu1 %610  ;;  %v674_v4 = vld [vmem:[#allocation4 + $0x11] sm:$0xff]  ;;  %787 = vrot.lane.b32.xlu0 %v771_v3, %s5779_s25  ;;  %666 = vst.msk [vmem:[#allocation6 + $0x8] sm:$0xff] %vm578_vm0, %v771_v3 }
 0x193   : > { %634 = vst.msk [vmem:[#allocation4 + $0x21] sm:$0xff] %vm578_vm0, %v611_v2  ;;  %691 = vrot.lane.b32.xlu1 %v674_v4, %s5785_s11  ;;  %v723_v6 = vld [vmem:[#allocation4 + $0x12] sm:$0xff] }
 0x194   : > { %v1625_v3 = vld [vmem:[#allocation3 + $0x90] sm:$0xff] }
 0x195   : > { %v613_v5 = vpop.permute.xlu0 %612 }
 0x196   : > { %635 = vst.msk [vmem:[#allocation4 + $0x31] sm:$0xff] %vm578_vm0, %v613_v5  ;;  %836 = vrot.lane.b32.xlu0 %v674_v4, %s5777_s26  ;;  %v1372_v4 = vld [vmem:[#allocation3 + $0x1] sm:$0xff] }
 0x197   : > { %740 = vrot.lane.b32.xlu1 %v723_v6, %s5783_s16 }
 0x19a   : > { %v821_v17 = vld [vmem:[#allocation4 + $0x21] sm:$0xff] }
 0x19b   : > { %v772_v13 = vld [vmem:[#allocation4 + $0x20] sm:$0xff]  ;;  %838 = vrot.lane.b32.xlu0 %v821_v17, %s5777_s26 }
 0x19c   : > { %789 = vrot.lane.b32.xlu1 %v772_v13, %s5779_s25  ;;  %667 = vst.msk [vmem:[#allocation6 + $0x10] sm:$0xff] %vm578_vm0, %v772_v13  ;;  %v870_v24 = vld [vmem:[#allocation4 + $0x22] sm:$0xff] }
 0x19d   : > { %v4713_v19 = vld [vmem:[#allocation4 + $0x31] sm:$0xff] }
 0x19e   : > { %v615_v20 = vpop.permute.xlu1 %614  ;;  %v920_v21 = vld [vmem:[#allocation4 + $0x30] sm:$0xff] }
 0x19f   : > { %695 = vrot.lane.b32.xlu0 %v4713_v19, %s5785_s11  ;;  %636 = vst.msk [vmem:[#allocation4 + $0x41] sm:$0xff] %vm578_vm0, %v615_v20  ;;  %668 = vst.msk [vmem:[#allocation6 + $0x18] sm:$0xff] %vm578_vm0, %v920_v21  ;;  %v725_v7 = vld [vmem:[#allocation4 + $0x32] sm:$0xff] }
 0x1a0   : > { %693 = vrot.lane.b32.xlu1 %v821_v17, %s5785_s11 }
 0x1a1   : > { %v617_v15 = vpop.permute.xlu0 %616 }
 0x1a2   : > { %637 = vst.msk [vmem:[#allocation4 + $0x51] sm:$0xff] %vm578_vm0, %v617_v15 }
 0x1a3   : > { %887 = vrot.lane.b32.xlu0 %v870_v24, %s5775_s6 }
 0x1a4   : > { %885 = vrot.lane.b32.xlu1 %v723_v6, %s5775_s6  ;;  %v1674_v6 = vld [vmem:[#allocation3 + $0x91] sm:$0xff] }
 0x1a6   : > { %v4735_v28 = vld [vmem:[#allocation4 + $0x40] sm:$0xff] }
 0x1a7   : > { %744 = vrot.lane.b32.xlu0 %v725_v7, %s5783_s16  ;;  %669 = vst.msk [vmem:[#allocation6 + $0x20] sm:$0xff] %vm578_vm0, %v4735_v28  ;;  %v677_v44 = vld [vmem:[#allocation4 + $0x41] sm:$0xff] }
 0x1a8   : > { %742 = vrot.lane.b32.xlu1 %v870_v24, %s5783_s16  ;;  %v872_v51 = vld [vmem:[#allocation4 + $0x42] sm:$0xff] }
 0x1a9   : > { %v922_v32 = vld [vmem:[#allocation4 + $0x50] sm:$0xff] }
 0x1aa   : > { %v619_v31 = vpop.permute.xlu1 %618  ;;  %670 = vst.msk [vmem:[#allocation6 + $0x28] sm:$0xff] %vm578_vm0, %v922_v32  ;;  %v678_v50 = vld [vmem:[#allocation4 + $0x51] sm:$0xff] }
 0x1ab   : > { %937 = vrot.lane.b32.xlu0 %v920_v21, %s5789_s15  ;;  %638 = vst.msk [vmem:[#allocation4 + $0x61] sm:$0xff] %vm578_vm0, %v619_v31  ;;  %v727_v52 = vld [vmem:[#allocation4 + $0x52] sm:$0xff] }
 0x1ac   : > { %935 = vrot.lane.b32.xlu1 %v772_v13, %s5789_s15 }
 0x1ad   : > { %v621_v36 = vpop.permute.xlu0 %620 }
 0x1ae   : > { %639 = vst.msk [vmem:[#allocation4 + $0x71] sm:$0xff] %vm578_vm0, %v621_v36 }
 0x1af   : > { %793 = vrot.lane.b32.xlu0 %v4735_v28, %s5779_s25 }
 0x1b0   : > { %791 = vrot.lane.b32.xlu1 %v920_v21, %s5779_s25 }
 0x1b2   : > { %v776_v39 = vld [vmem:[#allocation4 + $0x60] sm:$0xff] }
 0x1b3   : > { %986 = vrot.lane.b32.xlu0 %v4713_v19, %s5787_s17  ;;  %671 = vst.msk [vmem:[#allocation6 + $0x30] sm:$0xff] %vm578_vm0, %v776_v39  ;;  %v679_v53 = vld [vmem:[#allocation4 + $0x61] sm:$0xff] }
 0x1b4   : > { %984 = vrot.lane.b32.xlu1 %v821_v17, %s5787_s17  ;;  %v874_v55 = vld [vmem:[#allocation4 + $0x62] sm:$0xff] }
 0x1b5   : > { %v623_v46 = vpop.permute.xlu1 %622  ;;  %v924_v47 = vld [vmem:[#allocation4 + $0x70] sm:$0xff]  ;;  %v1421_v17 = vld [vmem:[#allocation3 + $0x2] sm:$0xff] }
 0x1b6   : > { %640 = vst.msk [vmem:[#allocation4 + $0x81] sm:$0xff] %vm578_vm0, %v623_v46  ;;  %672 = vst.msk [vmem:[#allocation6 + $0x38] sm:$0xff] %vm578_vm0, %v924_v47  ;;  %v680_v54 = vld [vmem:[#allocation4 + $0x71] sm:$0xff] }
 0x1b7   : > { %697 = vrot.lane.b32.xlu0 %v677_v44, %s5785_s11  ;;  %v729_v56 = vld [vmem:[#allocation4 + $0x72] sm:$0xff] }
 0x1b8   : > { %840 = vrot.lane.b32.xlu1 %v4713_v19, %s5777_s26 }
 0x1bb   : > { %889 = vrot.lane.b32.xlu0 %v725_v7, %s5775_s6 }
 0x1bc   : > { %1033 = vrot.lane.b32.xlu1 %v870_v24, %s5773_s13 }
 0x1bd   : > { %v778_v57 = vld [vmem:[#allocation4 + $0x80] sm:$0xff] }
 0x1be   : > { %v827_v58 = vld [vmem:[#allocation4 + $0x81] sm:$0xff] }
 0x1bf   : > { %699 = vrot.lane.b32.xlu0 %v678_v50, %s5785_s11  ;;  %v876_v59 = vld [vmem:[#allocation4 + $0x82] sm:$0xff] }
 0x1c0   : > { %842 = vrot.lane.b32.xlu1 %v677_v44, %s5777_s26 }
 0x1c3   : > { %891 = vrot.lane.b32.xlu0 %v872_v51, %s5775_s6 }
 0x1c4   : > { %1035 = vrot.lane.b32.xlu1 %v725_v7, %s5773_s13 }
 0x1c7   : > { %748 = vrot.lane.b32.xlu0 %v727_v52, %s5783_s16 }
 0x1c8   : > { %746 = vrot.lane.b32.xlu1 %v872_v51, %s5783_s16 }
 0x1cb   : > { %941 = vrot.lane.b32.xlu0 %v922_v32, %s5789_s15 }
 0x1cc   : > { %939 = vrot.lane.b32.xlu1 %v4735_v28, %s5789_s15 }
 0x1cf   : > { %797 = vrot.lane.b32.xlu0 %v776_v39, %s5779_s25 }
 0x1d0   : > { %795 = vrot.lane.b32.xlu1 %v922_v32, %s5779_s25 }
 0x1d3   : > { %990 = vrot.lane.b32.xlu0 %v678_v50, %s5787_s17 }
 0x1d4   : > { %988 = vrot.lane.b32.xlu1 %v677_v44, %s5787_s17 }
 0x1d7   : > { %701 = vrot.lane.b32.xlu0 %v679_v53, %s5785_s11 }
 0x1d8   : > { %844 = vrot.lane.b32.xlu1 %v678_v50, %s5777_s26 }
 0x1db   : > { %893 = vrot.lane.b32.xlu0 %v727_v52, %s5775_s6 }
 0x1dc   : > { %1037 = vrot.lane.b32.xlu1 %v872_v51, %s5773_s13 }
 0x1df   : > { %703 = vrot.lane.b32.xlu0 %v680_v54, %s5785_s11  ;;  %s5830_s11 = smov 39  }
 0x1e0   : > { %846 = vrot.lane.b32.xlu1 %v679_v53, %s5777_s26 }
 0x1e3   : > { %895 = vrot.lane.b32.xlu0 %v874_v55, %s5775_s6 }
 0x1e4   : > { %1039 = vrot.lane.b32.xlu1 %v727_v52, %s5773_s13 }
 0x1e7   : > { %752 = vrot.lane.b32.xlu0 %v729_v56, %s5783_s16 }
 0x1e8   : > { %750 = vrot.lane.b32.xlu1 %v874_v55, %s5783_s16  ;;  %s5797_s16 = smov 118  }
 0x1eb   : > { %945 = vrot.lane.b32.xlu0 %v924_v47, %s5789_s15 }
 0x1ec   : > { %943 = vrot.lane.b32.xlu1 %v776_v39, %s5789_s15 }
 0x1ef   : > { %801 = vrot.lane.b32.xlu0 %v778_v57, %s5779_s25 }
 0x1f0   : > { %799 = vrot.lane.b32.xlu1 %v924_v47, %s5779_s25  ;;  %s5827_s25 = smov 13  }
 0x1f3   : > { %994 = vrot.lane.b32.xlu0 %v680_v54, %s5787_s17 }
 0x1f4   : > { %992 = vrot.lane.b32.xlu1 %v679_v53, %s5787_s17 }
 0x1f7   : > { %850 = vrot.lane.b32.xlu0 %v827_v58, %s5777_s26 }
 0x1f8   : > { %848 = vrot.lane.b32.xlu1 %v680_v54, %s5777_s26  ;;  %s5828_s26 = smov 26  }
 0x1fb   : > { %1043 = vrot.lane.b32.xlu0 %v729_v56, %s5773_s13 }
 0x1fc   : > { %1041 = vrot.lane.b32.xlu1 %v874_v55, %s5773_s13 }
 0x1ff   : > { %947 = vrot.lane.b32.xlu0 %v778_v57, %s5789_s15  ;;  %s5831_s15 = smov 52  }
 0x200   : > { %897 = vrot.lane.b32.xlu1 %v729_v56, %s5775_s6 }
 0x203   : > { %996 = vrot.lane.b32.xlu0 %v827_v58, %s5787_s17  ;;  %s5825_s17 = smov 78  }
 0x204   : > { %899 = vrot.lane.b32.xlu1 %v876_v59, %s5775_s6  ;;  %v788_v62 = vpop.permute.xlu0 %787  ;;  %s5829_s6 = smov 125  }
 0x205   : > { %v692_v61 = vpop.permute.xlu1 %691  ;;  %812 = vst.msk [vmem:[#allocation6] sm:$0xff] %vm811_vm9, %v788_v62 }
 0x206   : > { %715 = vst.msk [vmem:[#allocation6 + $0x8] sm:$0xff] %vm713_vm3, %v692_v61 }
 0x207   : > { %1045 = vrot.lane.b32.xlu0 %v876_v59, %s5773_s13 }
 0x208   : > { %1047 = vrot.lane.b32.xlu1 %v1024_v60, %s5773_s13  ;;  %v837_v2 = vpop.permute.xlu0 %836  ;;  %s5799_s13 = smov 24  }
 0x209   : > { %v741_v63 = vpop.permute.xlu1 %740  ;;  %861 = vst.msk [vmem:[#allocation6] sm:$0xff] %vm860_vm12, %v837_v2 }
 0x20a   : > { %764 = vst.msk [vmem:[#allocation6 + $0x8] sm:$0xff] %vm762_vm7, %v741_v63 }
 0x20b   : > { %1388 = vrot.lane.b32.xlu0 %v1372_v4, %s5809_s7 }
 0x20c   : > { %1648 = vrot.lane.b32.xlu1 %v1625_v3, %s5813_s30 }
 0x20d   : > { %v839_v5 = vpop.permute.xlu0 %838 }
 0x20e   : > { %v790_v0 = vpop.permute.xlu1 %789 }
 0x20f   : > { %813 = vst.msk [vmem:[#allocation6 + $0x8] sm:$0xff] %vm811_vm9, %v790_v0  ;;  %1437 = vrot.lane.b32.xlu0 %v1421_v17, %s5807_s9 }
 0x210   : > { %862 = vst.msk [vmem:[#allocation6 + $0x8] sm:$0xff] %vm860_vm12, %v839_v5  ;;  %1697 = vrot.lane.b32.xlu1 %v1674_v6, %s5811_s8 }
 0x211   : > { %v696_v18 = vpop.permute.xlu0 %695 }
 0x212   : > { %v694_v13 = vpop.permute.xlu1 %693  ;;  %717 = vst.msk [vmem:[#allocation6 + $0x18] sm:$0xff] %vm713_vm3, %v696_v18 }
 0x213   : > { %716 = vst.msk [vmem:[#allocation6 + $0x10] sm:$0xff] %vm713_vm3, %v694_v13 }
 0x215   : > { %v888_v19 = vpop.permute.xlu0 %887 }
 0x216   : > { %v886_v14 = vpop.permute.xlu1 %885  ;;  %911 = vst.msk [vmem:[#allocation6 + $0x8] sm:$0xff] %vm5796_vm13, %v888_v19 }
 0x217   : > { %910 = vst.msk [vmem:[#allocation6] sm:$0xff] %vm5796_vm13, %v886_v14 }
 0x219   : > { %v745_v21 = vpop.permute.xlu0 %744 }
 0x21a   : > { %v743_v20 = vpop.permute.xlu1 %742  ;;  %766 = vst.msk [vmem:[#allocation6 + $0x18] sm:$0xff] %vm762_vm7, %v745_v21  ;;  %v3634_v21 = vld [vmem:[%s5768_s2] ss:$0 sm:$0xff] }
 0x21b   : > { %765 = vst.msk [vmem:[#allocation6 + $0x10] sm:$0xff] %vm762_vm7, %v743_v20  ;;  %v1356_v20 = vld [vmem:[#allocation3] sm:$0xff] }
 0x21c   : > { %1364 = vst.msk [vmem:[#allocation5] sm:$0xff] %vm5792_vm10, %v1356_v20 }
 0x21d   : > { %v938_v23 = vpop.permute.xlu0 %937 }
 0x21e   : > { %v936_v22 = vpop.permute.xlu1 %935  ;;  %961 = vst.msk [vmem:[#allocation6 + $0x8] sm:$0xff] %vm5795_vm14, %v938_v23 }
 0x21f   : > { %960 = vst.msk [vmem:[#allocation6] sm:$0xff] %vm5795_vm14, %v936_v22 }
 0x221   : > { %v794_v24 = vpop.permute.xlu0 %793 }
 0x222   : > { %v792_v8 = vpop.permute.xlu1 %791  ;;  %815 = vst.msk [vmem:[#allocation6 + $0x18] sm:$0xff] %vm811_vm9, %v794_v24 }
 0x223   : > { %814 = vst.msk [vmem:[#allocation6 + $0x10] sm:$0xff] %vm811_vm9, %v792_v8 }
 0x225   : > { %v987_v25 = vpop.permute.xlu0 %986 }
 0x226   : > { %v985_v15 = vpop.permute.xlu1 %984  ;;  %1010 = vst.msk [vmem:[#allocation6 + $0x8] sm:$0xff] %vm5794_vm15, %v987_v25 }
 0x227   : > { %1009 = vst.msk [vmem:[#allocation6] sm:$0xff] %vm5794_vm15, %v985_v15 }
 0x229   : > { %v698_v27 = vpop.permute.xlu0 %697 }
 0x22a   : > { %v841_v26 = vpop.permute.xlu1 %840  ;;  %718 = vst.msk [vmem:[#allocation6 + $0x20] sm:$0xff] %vm713_vm3, %v698_v27 }
 0x22b   : > { %863 = vst.msk [vmem:[#allocation6 + $0x10] sm:$0xff] %vm860_vm12, %v841_v26 }
 0x22d   : > { %v890_v28 = vpop.permute.xlu0 %889 }
 0x22e   : > { %v1034_v7 = vpop.permute.xlu1 %1033  ;;  %912 = vst.msk [vmem:[#allocation6 + $0x10] sm:$0xff] %vm5796_vm13, %v890_v28 }
 0x22f   : > { %1058 = vst.msk [vmem:[#allocation6] sm:$0xff] %vm5793_vm1, %v1034_v7 }
 0x231   : > { %v700_v30 = vpop.permute.xlu0 %699 }
 0x232   : > { %v843_v29 = vpop.permute.xlu1 %842  ;;  %719 = vst.msk [vmem:[#allocation6 + $0x28] sm:$0xff] %vm713_vm3, %v700_v30 }
 0x233   : > { %864 = vst.msk [vmem:[#allocation6 + $0x18] sm:$0xff] %vm860_vm12, %v843_v29 }
 0x235   : > { %v892_v31 = vpop.permute.xlu0 %891 }
 0x236   : > { %v1036_v16 = vpop.permute.xlu1 %1035  ;;  %v1066_v32 = vld [vmem:[#allocation6] sm:$0xff]  ;;  %913 = vst.msk [vmem:[#allocation6 + $0x18] sm:$0xff] %vm5796_vm13, %v892_v31 }
 0x237   : > { %1059 = vst.msk [vmem:[#allocation6 + $0x8] sm:$0xff] %vm5793_vm1, %v1036_v16  ;;  %3866 = vmatprep.mubr.msk.f32.mxu0 %vm5791_vm2, %v1066_v32 }
 0x239   : > { %v749_v34 = vpop.permute.xlu0 %748 }
 0x23a   : > { %v747_v33 = vpop.permute.xlu1 %746  ;;  %768 = vst.msk [vmem:[#allocation6 + $0x28] sm:$0xff] %vm762_vm7, %v749_v34 }
 0x23b   : > { %767 = vst.msk [vmem:[#allocation6 + $0x20] sm:$0xff] %vm762_vm7, %v747_v33 }
 0x23d   : > { %v942_v36 = vpop.permute.xlu0 %941 }
 0x23e   : > { %v940_v35 = vpop.permute.xlu1 %939  ;;  %v1067_v9 = vld [vmem:[#allocation6 + $0x8] sm:$0xff]  ;;  %963 = vst.msk [vmem:[#allocation6 + $0x18] sm:$0xff] %vm5795_vm14, %v942_v36 }
 0x23f   : > { %962 = vst.msk [vmem:[#allocation6 + $0x10] sm:$0xff] %vm5795_vm14, %v940_v35  ;;  %3867 = vmatmul.mubr.msk.f32.vlgmr.msra.gmra.mrb[0].mxu0 %vm5791_vm2, %v1067_v9 }
 0x241   : > { %v798_v38 = vpop.permute.xlu0 %797 }
 0x242   : > { %v796_v37 = vpop.permute.xlu1 %795  ;;  %817 = vst.msk [vmem:[#allocation6 + $0x28] sm:$0xff] %vm811_vm9, %v798_v38 }
 0x243   : > { %816 = vst.msk [vmem:[#allocation6 + $0x20] sm:$0xff] %vm811_vm9, %v796_v37 }
 0x245   : > { %v991_v41 = vpop.permute.xlu0 %990 }
 0x246   : > { %v989_v39 = vpop.permute.xlu1 %988  ;;  %1012 = vst.msk [vmem:[#allocation6 + $0x18] sm:$0xff] %vm5794_vm15, %v991_v41 }
 0x247   : > { %1011 = vst.msk [vmem:[#allocation6 + $0x10] sm:$0xff] %vm5794_vm15, %v989_v39 }
 0x249   : > { %v702_v43 = vpop.permute.xlu0 %701 }
 0x24a   : > { %v845_v42 = vpop.permute.xlu1 %844  ;;  %720 = vst.msk [vmem:[#allocation6 + $0x30] sm:$0xff] %vm713_vm3, %v702_v43 }
 0x24b   : > { %865 = vst.msk [vmem:[#allocation6 + $0x20] sm:$0xff] %vm860_vm12, %v845_v42 }
 0x24d   : > { %v894_v46 = vpop.permute.xlu0 %893 }
 0x24e   : > { %v1038_v44 = vpop.permute.xlu1 %1037  ;;  %914 = vst.msk [vmem:[#allocation6 + $0x20] sm:$0xff] %vm5796_vm13, %v894_v46 }
 0x24f   : > { %1060 = vst.msk [vmem:[#allocation6 + $0x10] sm:$0xff] %vm5793_vm1, %v1038_v44 }
 0x251   : > { %v704_v48 = vpop.permute.xlu0 %703 }
 0x252   : > { %v847_v47 = vpop.permute.xlu1 %846  ;;  %721 = vst.msk [vmem:[#allocation6 + $0x38] sm:$0xff] %vm713_vm3, %v704_v48 }
 0x253   : > { %866 = vst.msk [vmem:[#allocation6 + $0x28] sm:$0xff] %vm860_vm12, %v847_v47 }
 0x255   : > { %v896_v50 = vpop.permute.xlu0 %895 }
 0x256   : > { %v1040_v11 = vpop.permute.xlu1 %1039  ;;  %v1068_v51 = vld [vmem:[#allocation6 + $0x10] sm:$0xff]  ;;  %915 = vst.msk [vmem:[#allocation6 + $0x28] sm:$0xff] %vm5796_vm13, %v896_v50 }
 0x257   : > { %1061 = vst.msk [vmem:[#allocation6 + $0x18] sm:$0xff] %vm5793_vm1, %v1040_v11  ;;  %3869 = vmatprep.mubr.msk.f32.mxu0 %vm5791_vm2, %v1068_v51 }
 0x259   : > { %v753_v53 = vpop.permute.xlu0 %752 }
 0x25a   : > { %v751_v52 = vpop.permute.xlu1 %750  ;;  %770 = vst.msk [vmem:[#allocation6 + $0x38] sm:$0xff] %vm762_vm7, %v753_v53 }
 0x25b   : > { %769 = vst.msk [vmem:[#allocation6 + $0x30] sm:$0xff] %vm762_vm7, %v751_v52 }
 0x25d   : > { %v946_v55 = vpop.permute.xlu0 %945 }
 0x25e   : > { %v944_v54 = vpop.permute.xlu1 %943  ;;  %v1069_v56 = vld [vmem:[#allocation6 + $0x18] sm:$0xff]  ;;  %965 = vst.msk [vmem:[#allocation6 + $0x28] sm:$0xff] %vm5795_vm14, %v946_v55 }
 0x25f   : > { %964 = vst.msk [vmem:[#allocation6 + $0x20] sm:$0xff] %vm5795_vm14, %v944_v54  ;;  %3870 = vmatmul.mubr.msk.f32.gmra.mrb[2].mxu0 %vm5791_vm2, %v1069_v56 }
 0x261   : > { %v802_v58 = vpop.permute.xlu0 %801 }
 0x262   : > { %v800_v57 = vpop.permute.xlu1 %799  ;;  %819 = vst.msk [vmem:[#allocation6 + $0x38] sm:$0xff] %vm811_vm9, %v802_v58 }
 0x263   : > { %818 = vst.msk [vmem:[#allocation6 + $0x30] sm:$0xff] %vm811_vm9, %v800_v57 }
 0x265   : > { %v995_v60 = vpop.permute.xlu0 %994 }
 0x266   : > { %v993_v59 = vpop.permute.xlu1 %992  ;;  %1014 = vst.msk [vmem:[#allocation6 + $0x28] sm:$0xff] %vm5794_vm15, %v995_v60 }
 0x267   : > { %1013 = vst.msk [vmem:[#allocation6 + $0x20] sm:$0xff] %vm5794_vm15, %v993_v59 }
 0x269   : > { %v851_v62 = vpop.permute.xlu0 %850 }
 0x26a   : > { %v849_v61 = vpop.permute.xlu1 %848  ;;  %868 = vst.msk [vmem:[#allocation6 + $0x38] sm:$0xff] %vm860_vm12, %v851_v62 }
 0x26b   : > { %867 = vst.msk [vmem:[#allocation6 + $0x30] sm:$0xff] %vm860_vm12, %v849_v61 }
 0x26d   : > { %v1044_v2 = vpop.permute.xlu0 %1043 }
 0x26e   : > { %v1042_v63 = vpop.permute.xlu1 %1041  ;;  %1063 = vst.msk [vmem:[#allocation6 + $0x28] sm:$0xff] %vm5793_vm1, %v1044_v2 }
 0x26f   : > { %1062 = vst.msk [vmem:[#allocation6 + $0x20] sm:$0xff] %vm5793_vm1, %v1042_v63 }
 0x271   : > { %v948_v4 = vpop.permute.xlu0 %947 }
 0x272   : > { %v898_v3 = vpop.permute.xlu1 %897 }
 0x273   : > { %916 = vst.msk [vmem:[#allocation6 + $0x30] sm:$0xff] %vm5796_vm13, %v898_v3 }
 0x274   : > { %966 = vst.msk [vmem:[#allocation6 + $0x30] sm:$0xff] %vm5795_vm14, %v948_v4 }
 0x275   : > { %v997_v5 = vpop.permute.xlu0 %996  ;;  %v1071_v17 = vld [vmem:[#allocation6 + $0x28] sm:$0xff] }
 0x276   : > { %v900_v0 = vpop.permute.xlu1 %899  ;;  %v1070_v6 = vld [vmem:[#allocation6 + $0x20] sm:$0xff]  ;;  %1015 = vst.msk [vmem:[#allocation6 + $0x30] sm:$0xff] %vm5794_vm15, %v997_v5 }
 0x277   : > { %917 = vst.msk [vmem:[#allocation6 + $0x38] sm:$0xff] %vm5796_vm13, %v900_v0  ;;  %3872 = vmatprep.mubr.msk.f32.mxu0 %vm5791_vm2, %v1070_v6  ;;  %vm5815_vm13 = vcmask 220160  }
 0x278   : > { %967 = vst.msk [vmem:[#allocation6 + $0x38] sm:$0xff] %vm5795_vm14, %v4686_v12  ;;  %3873 = vmatmul.mubr.msk.f32.gmra.mrb[4].mxu0 %vm5791_vm2, %v1071_v17  ;;  %vm5816_vm14 = vcmask 220352  }
 0x279   : > { %1016 = vst.msk [vmem:[#allocation6 + $0x38] sm:$0xff] %vm5794_vm15, %v4695_v1  ;;  %v1046_v13 = vpop.permute.xlu0 %1045  ;;  %vm5817_vm15 = vcmask 195752  }
 0x27a   : > { %v1048_v18 = vpop.permute.xlu1 %1047  ;;  %1064 = vst.msk [vmem:[#allocation6 + $0x30] sm:$0xff] %vm5793_vm1, %v1046_v13 }
 0x27b   : > { %1065 = vst.msk [vmem:[#allocation6 + $0x38] sm:$0xff] %vm5793_vm1, %v1048_v18  ;;  %vm5818_vm1 = vcmask 171152  }
 0x27d   : > { %v1389_v12 = vpop.permute.xlu0 %1388 }
 0x27e   : > { %1413 = vst.msk [vmem:[#allocation5] sm:$0xff] %vm1412_vm4, %v1389_v12  ;;  %v4958_v55 = vpop.permute.xlu1 %1648 }
 0x281   : > { %v1072_v14 = vld [vmem:[#allocation6 + $0x30] sm:$0xff]  ;;  %v1438_v1 = vpop.permute.xlu0 %1437 }
 0x282   : > { %v1073_v19 = vld [vmem:[#allocation6 + $0x38] sm:$0xff]  ;;  %3875 = vmatprep.mubr.msk.f32.mxu0 %vm5791_vm2, %v1072_v14  ;;  %1462 = vst.msk [vmem:[#allocation5] sm:$0xff] %vm1461_vm5, %v1438_v1  ;;  %v4960_v56 = vpop.permute.xlu1 %1697 }
 0x283   : > { %3876 = vmatmul.mubr.msk.f32.gmra.mrb[6].mxu0 %vm5791_vm2, %v1073_v19  ;;  %vm5045_vm2 = vmpackc.low %vm1804_vm6, %vm4388_vm11  ;;  %vm1510_vm6 = vcmask 97352   ;;  %vm1559_vm11 = vcmask 121952  }
 0x312   : > { %v3868_v22 = vpop.f32.mrb[0].mxu0 }
 0x313   : > { %v1181_v23 = vadd.f32 %v3868_v22, %v3634_v21  ;;  %v1175_v8 = vpop.f32.mrb[1].mxu0 }
 0x314   : > { %v1176_v24 = vadd.f32 %v3634_v21, %v1175_v8 }
 0x315   : > { %1312 = vrot.lane.b32.xlu1 %v1181_v23, %s5781_s23  ;;  %v3645_v7 = vmul.f32 -1.442695, %v1181_v23 }
 0x316   : > { %1310 = vrot.lane.b32.xlu0 %v1176_v24, %s5781_s23  ;;  %v3644_v29 = vmul.f32 -1.442695, %v1176_v24 }
 0x317   : > { %4103 = vpow2.f32 %v3645_v7 }
 0x318   : > { %4105 = vpow2.f32 %v3644_v29 }
 0x321   : > { %v4104_v35 = vpop.eup %4103 }
 0x322   : > { %v4106_v9 = vpop.eup %4105  ;;  %v1239_v37 = vadd.f32 1.0, %v4104_v35 }
 0x323   : > { %v1238_v38 = vadd.f32 1.0, %v4106_v9 }
 0x324   : > { %4107 = vrcp.f32 %v1239_v37 }
 0x325   : > { %4109 = vrcp.f32 %v1238_v38 }
 0x32e   : > { %v4108_v41 = vpop.eup %4107 }
 0x32f   : > { %v4110_v43 = vpop.eup %4109  ;;  %v1263_v44 = vmul.f32 2.0, %v4108_v41 }
 0x330   : > { %v1262_v46 = vmul.f32 2.0, %v4110_v43 }
 0x331   : > { %v3653_v47 = vadd.f32 -1.0, %v1263_v44 }
 0x332   : > { %v3871_v15 = vpop.f32.mrb[2].mxu0  ;;  %v3652_v48 = vadd.f32 -1.0, %v1262_v46 }
 0x333   : > { %v1191_v25 = vadd.f32 %v3871_v15, %v3634_v21  ;;  %v1185_v26 = vpop.f32.mrb[3].mxu0  ;;  %v1280_v11 = vmul.f32 1.442695, %v3653_v47 }
 0x334   : > { %v1186_v27 = vadd.f32 %v3634_v21, %v1185_v26  ;;  %v1278_v50 = vmul.f32 1.442695, %v3652_v48 }
 0x335   : > { %1316 = vrot.lane.b32.xlu1 %v1191_v25, %s5781_s23  ;;  %v3647_v39 = vmul.f32 -1.442695, %v1191_v25 }
 0x336   : > { %1314 = vrot.lane.b32.xlu0 %v1186_v27, %s5781_s23  ;;  %v3646_v42 = vmul.f32 -1.442695, %v1186_v27 }
 0x337   : > { %4111 = vpow2.f32 %v3647_v39 }
 0x338   : > { %4113 = vpow2.f32 %v3646_v42 }
 0x339   : > { %4115 = vpow2.f32 %v1280_v11 }
 0x33a   : > { %4117 = vpow2.f32 %v1278_v50 }
 0x341   : > { %v4112_v51 = vpop.eup %4111 }
 0x342   : > { %v4114_v52 = vpop.eup %4113  ;;  %v1241_v53 = vadd.f32 1.0, %v4112_v51 }
 0x343   : > { %v1240_v54 = vadd.f32 1.0, %v4114_v52  ;;  %v4116_v57 = vpop.eup %4115 }
 0x344   : > { %4119 = vrcp.f32 %v1241_v53  ;;  %v4118_v58 = vpop.eup %4117  ;;  %v1295_v61 = vmul.f32 %v4116_v57, %v4661_v10 }
 0x345   : > { %4121 = vrcp.f32 %v1240_v54  ;;  %v1294_v63 = vmul.f32 %v4118_v58, %v4653_v40 }
 0x34b   : > { %v3874_v28 = vpop.f32.mrb[4].mxu0 }
 0x34c   : > { %v1201_v30 = vadd.f32 %v3874_v28, %v3634_v21  ;;  %v1195_v16 = vpop.f32.mrb[5].mxu0 }
 0x34d   : > { %v1196_v31 = vadd.f32 %v3634_v21, %v1195_v16 }
 0x34e   : > { %1320 = vrot.lane.b32.xlu1 %v1201_v30, %s5781_s23  ;;  %v3649_v59 = vmul.f32 -1.442695, %v1201_v30  ;;  %v4120_v2 = vpop.eup %4119 }
 0x34f   : > { %1318 = vrot.lane.b32.xlu0 %v1196_v31, %s5781_s23  ;;  %v3648_v60 = vmul.f32 -1.442695, %v1196_v31  ;;  %v4122_v0 = vpop.eup %4121  ;;  %v1265_v6 = vmul.f32 2.0, %v4120_v2 }
 0x350   : > { %4123 = vpow2.f32 %v3649_v59  ;;  %v1264_v10 = vmul.f32 2.0, %v4122_v0 }
 0x351   : > { %4125 = vpow2.f32 %v3648_v60  ;;  %v3655_v17 = vadd.f32 -1.0, %v1265_v6  ;;  %v5006_v60 = vld [vmem:[#allocation2 + $0x28] sm:$0xff] }
 0x352   : > { %v3654_v13 = vadd.f32 -1.0, %v1264_v10 }
 0x354   : > { %v1282_v22 = vmul.f32 1.442695, %v3654_v13  ;;  %v1352_v13 = vld [vmem:[%s5769_s3 + $0x8] sm:$0xff] }
 0x356   : > { %v3877_v32 = vpop.f32.mrb[6].mxu0 }
 0x357   : > { %v1211_v33 = vadd.f32 %v3877_v32, %v3634_v21  ;;  %v1205_v34 = vpop.f32.mrb[7].mxu0 }
 0x358   : > { %v1206_v36 = vadd.f32 %v3634_v21, %v1205_v34  ;;  %v1284_v21 = vmul.f32 1.442695, %v3655_v17  ;;  %v1351_v17 = vld [vmem:[%s5769_s3] sm:$0xff] }
 0x359   : > { %1324 = vrot.lane.b32.xlu1 %v1211_v33, %s5781_s23  ;;  %v3651_v40 = vmul.f32 -1.442695, %v1211_v33 }
 0x35a   : > { %1322 = vrot.lane.b32.xlu0 %v1206_v36, %s5781_s23  ;;  %v3650_v18 = vmul.f32 -1.442695, %v1206_v36  ;;  %v4124_v20 = vpop.eup %4123  ;;  %s5826_s23 = smov 91  }
 0x35b   : > { %v4126_v1 = vpop.eup %4125  ;;  %4127 = vpow2.f32 %v3651_v40  ;;  %v1243_v23 = vadd.f32 1.0, %v4124_v20  ;;  %v3988_v40 = vpack.c.bf16 %v1352_v13, %v1351_v17 }
 0x35c   : > { %4129 = vpow2.f32 %v3650_v18  ;;  %v1242_v24 = vadd.f32 1.0, %v4126_v1 }
 0x35d   : > { %4131 = vpow2.f32 %v1284_v21  ;;  %3989 = vmatprep.subr.bf16.mxu1 %v3988_v40  ;;  %v5038_v21 = vld [vmem:[#allocation2 + $0x38] sm:$0xff] }
 0x35e   : > { %4133 = vpow2.f32 %v1282_v22  ;;  %3991 = vmatpush3.bf16.msra.mxu1 %v3988_v40 }
 0x35f   : > { %4135 = vrcp.f32 %v1243_v23 }
 0x360   : > { %4137 = vrcp.f32 %v1242_v24  ;;  %v5042_v24 = vld [vmem:[#allocation2 + $0x30] sm:$0xff] }
 0x365   : > { %v4128_v25 = vpop.eup %4127 }
 0x366   : > { %v4130_v26 = vpop.eup %4129  ;;  %v1245_v7 = vadd.f32 1.0, %v4128_v25 }
 0x367   : > { %v4132_v27 = vpop.eup %4131  ;;  %v1244_v29 = vadd.f32 1.0, %v4130_v26 }
 0x368   : > { %v4134_v28 = vpop.eup %4133  ;;  %4139 = vrcp.f32 %v1245_v7  ;;  %v1297_v32 = vmul.f32 %v4132_v27, %v4675_v49 }
 0x369   : > { %v4136_v30 = vpop.eup %4135  ;;  %4141 = vrcp.f32 %v1244_v29  ;;  %v1296_v35 = vmul.f32 %v4134_v28, %v4667_v45 }
 0x36a   : > { %v4138_v16 = vpop.eup %4137  ;;  %v1267_v31 = vmul.f32 2.0, %v4136_v30 }
 0x36b   : > { %v1266_v33 = vmul.f32 2.0, %v4138_v16 }
 0x36c   : > { %v3657_v38 = vadd.f32 -1.0, %v1267_v31 }
 0x36d   : > { %v3656_v39 = vadd.f32 -1.0, %v1266_v33 }
 0x36e   : > { %v1288_v41 = vmul.f32 1.442695, %v3657_v38  ;;  %v1723_v38 = vld [vmem:[#allocation3 + $0x92] sm:$0xff] }
 0x36f   : > { %v1286_v42 = vmul.f32 1.442695, %v3656_v39 }
 0x370   : > { %4143 = vpow2.f32 %v1288_v41 }
 0x371   : > { %4145 = vpow2.f32 %v1286_v42 }
 0x372   : > { %v4140_v45 = vpop.eup %4139 }
 0x373   : > { %v4142_v43 = vpop.eup %4141  ;;  %v1269_v46 = vmul.f32 2.0, %v4140_v45 }
 0x374   : > { %v1268_v48 = vmul.f32 2.0, %v4142_v43 }
 0x375   : > { %v3659_v50 = vadd.f32 -1.0, %v1269_v46 }
 0x376   : > { %v3658_v51 = vadd.f32 -1.0, %v1268_v48 }
 0x377   : > { %v1292_v53 = vmul.f32 1.442695, %v3659_v50 }
 0x378   : > { %v1290_v54 = vmul.f32 1.442695, %v3658_v51 }
 0x379   : > { %4147 = vpow2.f32 %v1292_v53 }
 0x37a   : > { %v4144_v57 = vpop.eup %4143  ;;  %4149 = vpow2.f32 %v1290_v54 }
 0x37b   : > { %v4146_v58 = vpop.eup %4145 }
 0x383   : > { %v4148_v18 = vpop.eup %4147 }
 0x384   : > { %v4150_v20 = vpop.eup %4149  ;;  %v1301_v22 = vmul.f32 %v5038_v21, %v4148_v18 }
 0x387   : > { %v1313_v62 = vpop.permute.xlu1 %1312 }
 0x388   : > { %v4964_v3 = vadd.f32 %v1313_v62, %v1295_v61  ;;  %v1311_v4 = vpop.permute.xlu0 %1310  ;;  %v1299_v61 = vmul.f32 %v5006_v60, %v4144_v57 }
 0x389   : > { %v4966_v5 = vadd.f32 %v1311_v4, %v1294_v63  ;;  %v5009_v63 = vld [vmem:[#allocation2 + $0x20] sm:$0xff] }
 0x38a   : > { %1344 = vst.msk [vmem:[#allocation3 + $0x21] sm:$0xff] %vm5792_vm10, %v4964_v3  ;;  %v1298_v2 = vmul.f32 %v5009_v63, %v4146_v58 }
 0x38b   : > { %1343 = vst.msk [vmem:[#allocation3 + $0x11] sm:$0xff] %vm5792_vm10, %v4966_v5 }
 0x391   : > { %v1471_v14 = vld [vmem:[#allocation3 + $0x20] sm:$0xff] }
 0x392   : > { %v1520_v19 = vld [vmem:[#allocation3 + $0x21] sm:$0xff]  ;;  %1488 = vrot.lane.b32.xlu1 %v1471_v14, %s5805_s12  ;;  %v1470_v12 = vld [vmem:[#allocation3 + $0x10] sm:$0xff]  ;;  %1366 = vst.msk [vmem:[#allocation5 + $0x10] sm:$0xff] %vm5792_vm10, %v1471_v14 }
 0x393   : > { %1537 = vrot.lane.b32.xlu0 %v1520_v19, %s5803_s14  ;;  %1365 = vst.msk [vmem:[#allocation5 + $0x8] sm:$0xff] %vm5792_vm10, %v1470_v12  ;;  %v1569_v8 = vld [vmem:[#allocation3 + $0x22] sm:$0xff]  ;;  %v1519_v15 = vld [vmem:[#allocation3 + $0x11] sm:$0xff] }
 0x394   : > { %v1422_v49 = vld [vmem:[#allocation3 + $0x12] sm:$0xff] }
 0x396   : > { %1392 = vrot.lane.b32.xlu1 %v1520_v19, %s5809_s7 }
 0x397   : > { %1586 = vrot.lane.b32.xlu0 %v1569_v8, %s5801_s10 }
 0x39a   : > { %1441 = vrot.lane.b32.xlu1 %v1569_v8, %s5807_s9 }
 0x39b   : > { %1486 = vrot.lane.b32.xlu0 %v1470_v12, %s5805_s12 }
 0x39e   : > { %1634 = vrot.lane.b32.xlu1 %v1471_v14, %s5813_s30  ;;  %v1353_v14 = vld [vmem:[%s5769_s3 + $0x10] sm:$0xff] }
 0x39f   : > { %1535 = vrot.lane.b32.xlu0 %v1519_v15, %s5803_s14 }
 0x3a2   : > { %1683 = vrot.lane.b32.xlu1 %v1520_v19, %s5811_s8  ;;  %v1354_v19 = vld [vmem:[%s5769_s3 + $0x18] sm:$0x7] }
 0x3a3   : > { %v3992_v12 = vpack.c.bf16 %v1354_v19, %v1353_v14 }
 0x3a5   : > { %3994 = vmatprep.subr.msk.bf16.mxu1 %vm5045_vm2, %v3992_v12 }
 0x3a6   : > { %1732 = vrot.lane.b32.xlu1 %v1569_v8, %s5799_s13  ;;  %3997 = vmatpush3.bf16.msk.msra.mxu1 %vm5045_vm2, %v3992_v12 }
 0x3a7   : > { %v1317_v34 = vpop.permute.xlu1 %1316 }
 0x3a8   : > { %v4986_v36 = vadd.f32 %v1317_v34, %v1297_v32  ;;  %v1315_v9 = vpop.permute.xlu0 %1314 }
 0x3a9   : > { %v4988_v37 = vadd.f32 %v1315_v9, %v1296_v35 }
 0x3aa   : > { %1346 = vst.msk [vmem:[#allocation3 + $0x41] sm:$0xff] %vm5792_vm10, %v4986_v36  ;;  %1390 = vrot.lane.b32.xlu1 %v1519_v15, %s5809_s7  ;;  %v1300_v15 = vmul.f32 %v5042_v24, %v4150_v20 }
 0x3ab   : > { %1345 = vst.msk [vmem:[#allocation3 + $0x31] sm:$0xff] %vm5792_vm10, %v4988_v37 }
 0x3ae   : > { %1439 = vrot.lane.b32.xlu1 %v1422_v49, %s5807_s9 }
 0x3b1   : > { %v1473_v44 = vld [vmem:[#allocation3 + $0x40] sm:$0xff] }
 0x3b2   : > { %1492 = vrot.lane.b32.xlu0 %v1473_v44, %s5805_s12  ;;  %1584 = vrot.lane.b32.xlu1 %v1422_v49, %s5801_s10  ;;  %v1619_v47 = vld [vmem:[#allocation3 + $0x30] sm:$0xff]  ;;  %1368 = vst.msk [vmem:[#allocation5 + $0x20] sm:$0xff] %vm5792_vm10, %v1473_v44  ;;  %v1376_v11 = vld [vmem:[#allocation3 + $0x41] sm:$0xff] }
 0x3b3   : > { %1367 = vst.msk [vmem:[#allocation5 + $0x18] sm:$0xff] %vm5792_vm10, %v1619_v47  ;;  %v1571_v52 = vld [vmem:[#allocation3 + $0x42] sm:$0xff]  ;;  %v1375_v59 = vld [vmem:[#allocation3 + $0x31] sm:$0xff] }
 0x3b4   : > { %v1424_v6 = vld [vmem:[#allocation3 + $0x32] sm:$0xff] }
 0x3b6   : > { %1396 = vrot.lane.b32.xlu0 %v1376_v11, %s5809_s7  ;;  %1541 = vrot.lane.b32.xlu1 %v1376_v11, %s5803_s14 }
 0x3ba   : > { %1590 = vrot.lane.b32.xlu0 %v1571_v52, %s5801_s10  ;;  %1445 = vrot.lane.b32.xlu1 %v1571_v52, %s5807_s9 }
 0x3be   : > { %1638 = vrot.lane.b32.xlu1 %v1473_v44, %s5813_s30  ;;  %1394 = vrot.lane.b32.xlu0 %v1375_v59, %s5809_s7 }
 0x3c0   : > { %v1321_v62 = vpop.permute.xlu1 %1320 }
 0x3c1   : > { %v5012_v4 = vadd.f32 %v1321_v62, %v1299_v61  ;;  %v1319_v0 = vpop.permute.xlu0 %1318 }
 0x3c2   : > { %v5014_v10 = vadd.f32 %v1319_v0, %v1298_v2  ;;  %1687 = vrot.lane.b32.xlu1 %v1376_v11, %s5811_s8  ;;  %1443 = vrot.lane.b32.xlu0 %v1424_v6, %s5807_s9 }
 0x3c3   : > { %1348 = vst.msk [vmem:[#allocation3 + $0x61] sm:$0xff] %vm5792_vm10, %v5012_v4 }
 0x3c4   : > { %1347 = vst.msk [vmem:[#allocation3 + $0x51] sm:$0xff] %vm5792_vm10, %v5014_v10 }
 0x3c6   : > { %1736 = vrot.lane.b32.xlu1 %v1571_v52, %s5799_s13  ;;  %1636 = vrot.lane.b32.xlu0 %v1619_v47, %s5813_s30 }
 0x3ca   : > { %1490 = vrot.lane.b32.xlu1 %v1619_v47, %s5805_s12  ;;  %1685 = vrot.lane.b32.xlu0 %v1375_v59, %s5811_s8  ;;  %v1475_v1 = vld [vmem:[#allocation3 + $0x60] sm:$0xff] }
 0x3cb   : > { %v1621_v23 = vld [vmem:[#allocation3 + $0x50] sm:$0xff]  ;;  %1370 = vst.msk [vmem:[#allocation5 + $0x30] sm:$0xff] %vm5792_vm10, %v1475_v1  ;;  %v1325_v8 = vpop.permute.xlu1 %1324  ;;  %v1524_v28 = vld [vmem:[#allocation3 + $0x61] sm:$0xff] }
 0x3cc   : > { %1369 = vst.msk [vmem:[#allocation5 + $0x28] sm:$0xff] %vm5792_vm10, %v1621_v23  ;;  %v5050_v26 = vadd.f32 %v1325_v8, %v1301_v22  ;;  %v1323_v27 = vpop.permute.xlu0 %1322  ;;  %v1427_v30 = vld [vmem:[#allocation3 + $0x62] sm:$0xff]  ;;  %v1377_v16 = vld [vmem:[#allocation3 + $0x51] sm:$0xff] }
 0x3cd   : > { %v5054_v7 = vadd.f32 %v1323_v27, %v1300_v15  ;;  %v1426_v31 = vld [vmem:[#allocation3 + $0x52] sm:$0xff] }
 0x3ce   : > { %1539 = vrot.lane.b32.xlu1 %v1375_v59, %s5803_s14  ;;  %1588 = vrot.lane.b32.xlu0 %v1424_v6, %s5801_s10  ;;  %1350 = vst.msk [vmem:[#allocation3 + $0x81] sm:$0xff] %vm5792_vm10, %v5050_v26 }
 0x3cf   : > { %1349 = vst.msk [vmem:[#allocation3 + $0x71] sm:$0xff] %vm5792_vm10, %v5054_v7 }
 0x3d2   : > { %1734 = vrot.lane.b32.xlu1 %v1424_v6, %s5799_s13  ;;  %1496 = vrot.lane.b32.xlu0 %v1475_v1, %s5805_s12 }
 0x3d5   : > { %v1477_v32 = vld [vmem:[#allocation3 + $0x80] sm:$0xff] }
 0x3d6   : > { %1545 = vrot.lane.b32.xlu1 %v1524_v28, %s5803_s14  ;;  %1400 = vrot.lane.b32.xlu0 %v1524_v28, %s5809_s7  ;;  %v1476_v29 = vld [vmem:[#allocation3 + $0x70] sm:$0xff]  ;;  %v1575_v33 = vld [vmem:[#allocation3 + $0x82] sm:$0xff] }
 0x3d7   : > { %1371 = vst.msk [vmem:[#allocation5 + $0x38] sm:$0xff] %vm5792_vm10, %v1476_v29  ;;  %v1526_v34 = vld [vmem:[#allocation3 + $0x81] sm:$0xff]  ;;  %v1525_v35 = vld [vmem:[#allocation3 + $0x71] sm:$0xff]  ;;  %vm1608_vm10 = vcmask 146552  }
 0x3d8   : > { %v1574_v9 = vld [vmem:[#allocation3 + $0x72] sm:$0xff] }
 0x3da   : > { %1449 = vrot.lane.b32.xlu1 %v1427_v30, %s5807_s9  ;;  %1594 = vrot.lane.b32.xlu0 %v1427_v30, %s5801_s10 }
 0x3de   : > { %1642 = vrot.lane.b32.xlu1 %v1475_v1, %s5813_s30  ;;  %1398 = vrot.lane.b32.xlu0 %v1377_v16, %s5809_s7 }
 0x3e2   : > { %1691 = vrot.lane.b32.xlu1 %v1524_v28, %s5811_s8  ;;  %1447 = vrot.lane.b32.xlu0 %v1426_v31, %s5807_s9 }
 0x3e6   : > { %1740 = vrot.lane.b32.xlu1 %v1427_v30, %s5799_s13  ;;  %1640 = vrot.lane.b32.xlu0 %v1621_v23, %s5813_s30 }
 0x3ea   : > { %1494 = vrot.lane.b32.xlu1 %v1621_v23, %s5805_s12  ;;  %1689 = vrot.lane.b32.xlu0 %v1377_v16, %s5811_s8 }
 0x3ee   : > { %1543 = vrot.lane.b32.xlu1 %v1377_v16, %s5803_s14  ;;  %1592 = vrot.lane.b32.xlu0 %v1426_v31, %s5801_s10 }
 0x3f2   : > { %1738 = vrot.lane.b32.xlu1 %v1426_v31, %s5799_s13  ;;  %1500 = vrot.lane.b32.xlu0 %v1477_v32, %s5805_s12 }
 0x3f6   : > { %1598 = vrot.lane.b32.xlu1 %v1575_v33, %s5801_s10  ;;  %1549 = vrot.lane.b32.xlu0 %v1526_v34, %s5803_s14 }
 0x3fa   : > { %1646 = vrot.lane.b32.xlu0 %v1477_v32, %s5813_s30  ;;  %1498 = vrot.lane.b32.xlu1 %v1476_v29, %s5805_s12  ;;  %s5881_s12 = smov 9  }
 0x3fe   : > { %1695 = vrot.lane.b32.xlu0 %v1526_v34, %s5811_s8  ;;  %1547 = vrot.lane.b32.xlu1 %v1525_v35, %s5803_s14 }
 0x402   : > { %1596 = vrot.lane.b32.xlu1 %v1574_v9, %s5801_s10  ;;  %1402 = vrot.lane.b32.xlu0 %v1525_v35, %s5809_s7  ;;  %s5882_s10 = smov 12  }
 0x404   : > { %v1489_v39 = vpop.permute.xlu1 %1488 }
 0x405   : > { %v1538_v49 = vpop.permute.xlu0 %1537 }
 0x406   : > { %1451 = vrot.lane.b32.xlu0 %v1574_v9, %s5807_s9  ;;  %1746 = vrot.lane.b32.xlu1 %v1723_v38, %s5799_s13 }
 0x408   : > { %v1393_v41 = vpop.permute.xlu1 %1392 }
 0x409   : > { %v1587_v45 = vpop.permute.xlu0 %1586  ;;  %1415 = vst.msk [vmem:[#allocation5 + $0x10] sm:$0xff] %vm1412_vm4, %v1393_v41 }
 0x40a   : > { %1644 = vrot.lane.b32.xlu0 %v1476_v29, %s5813_s30  ;;  %s4307_s30 = sshll.u32 %s4390_s0, 4  ;;  %s4308_s30 = int_to_ptr.vmem [resolvable:$false] %s4307_s30 }
 0x40c   : > { %v1442_v42 = vpop.permute.xlu1 %1441 }
 0x40d   : > { %v1487_v43 = vpop.permute.xlu0 %1486  ;;  %1464 = vst.msk [vmem:[#allocation5 + $0x10] sm:$0xff] %vm1461_vm5, %v1442_v42 }
 0x40e   : > { %1511 = vst.msk [vmem:[#allocation5] sm:$0xff] %vm1510_vm6, %v1487_v43  ;;  %1693 = vrot.lane.b32.xlu0 %v1525_v35, %s5811_s8  ;;  %s5886_s8 = smov 24  }
 0x410   : > { %v1635_v44 = vpop.permute.xlu1 %1634 }
 0x411   : > { %v1536_v46 = vpop.permute.xlu0 %1535 }
 0x412   : > { %1560 = vst.msk [vmem:[#allocation5] sm:$0xff] %vm1559_vm11, %v1536_v46  ;;  %1742 = vrot.lane.b32.xlu0 %v1574_v9, %s5799_s13 }
 0x414   : > { %v1684_v47 = vpop.permute.xlu1 %1683 }
 0x416   : > { %1744 = vrot.lane.b32.xlu0 %v1575_v33, %s5799_s13  ;;  %s5833_s13 = smov 104  }
 0x418   : > { %v1733_v48 = vpop.permute.xlu1 %1732 }
 0x41c   : > { %v1391_v11 = vpop.permute.xlu1 %1390 }
 0x41d   : > { %1414 = vst.msk [vmem:[#allocation5 + $0x8] sm:$0xff] %vm1412_vm4, %v1391_v11 }
 0x420   : > { %v1440_v50 = vpop.permute.xlu1 %1439 }
 0x421   : > { %1463 = vst.msk [vmem:[#allocation5 + $0x8] sm:$0xff] %vm1461_vm5, %v1440_v50 }
 0x422   : > { %1512 = vst.msk [vmem:[#allocation5 + $0x8] sm:$0xff] %vm1510_vm6, %v1489_v39 }
 0x423   : > { %1561 = vst.msk [vmem:[#allocation5 + $0x8] sm:$0xff] %vm1559_vm11, %v1538_v49 }
 0x424   : > { %v1585_v51 = vpop.permute.xlu1 %1584  ;;  %1610 = vst.msk [vmem:[#allocation5 + $0x8] sm:$0xff] %vm1608_vm10, %v1587_v45  ;;  %v1493_v52 = vpop.permute.xlu0 %1492 }
 0x425   : > { %1609 = vst.msk [vmem:[#allocation5] sm:$0xff] %vm1608_vm10, %v1585_v51 }
 0x426   : > { %1659 = vst.msk [vmem:[#allocation5] sm:$0xff] %vm5818_vm1, %v1635_v44 }
 0x427   : > { %1708 = vst.msk [vmem:[#allocation5] sm:$0xff] %vm5817_vm15, %v1684_v47 }
 0x428   : > { %1757 = vst.msk [vmem:[#allocation5] sm:$0xff] %vm5816_vm14, %v1733_v48  ;;  %v1542_v53 = vpop.permute.xlu1 %1541  ;;  %v1397_v54 = vpop.permute.xlu0 %1396 }
 0x429   : > { %1417 = vst.msk [vmem:[#allocation5 + $0x20] sm:$0xff] %vm1412_vm4, %v1397_v54 }
 0x42c   : > { %v1446_v57 = vpop.permute.xlu1 %1445  ;;  %v1591_v58 = vpop.permute.xlu0 %1590 }
 0x42d   : > { %1466 = vst.msk [vmem:[#allocation5 + $0x20] sm:$0xff] %vm1461_vm5, %v1446_v57 }
 0x42f   : > { %v1765_v59 = vld [vmem:[#allocation5] sm:$0xff] }
 0x430   : > { %v1639_v61 = vpop.permute.xlu1 %1638  ;;  %3886 = vmatprep.mubr.msk.f32.mxu1 %vm5815_vm13, %v1765_v59  ;;  %v1395_v62 = vpop.permute.xlu0 %1394 }
 0x431   : > { %1416 = vst.msk [vmem:[#allocation5 + $0x18] sm:$0xff] %vm1412_vm4, %v1395_v62 }
 0x434   : > { %v1688_v2 = vpop.permute.xlu1 %1687  ;;  %v1444_v0 = vpop.permute.xlu0 %1443 }
 0x435   : > { %1465 = vst.msk [vmem:[#allocation5 + $0x18] sm:$0xff] %vm1461_vm5, %v1444_v0 }
 0x436   : > { %1514 = vst.msk [vmem:[#allocation5 + $0x18] sm:$0xff] %vm1510_vm6, %v1493_v52 }
 0x437   : > { %1563 = vst.msk [vmem:[#allocation5 + $0x18] sm:$0xff] %vm1559_vm11, %v1542_v53 }
 0x438   : > { %v1737_v6 = vpop.permute.xlu1 %1736  ;;  %1612 = vst.msk [vmem:[#allocation5 + $0x18] sm:$0xff] %vm1608_vm10, %v1591_v58  ;;  %v1637_v17 = vpop.permute.xlu0 %1636 }
 0x439   : > { %1660 = vst.msk [vmem:[#allocation5 + $0x8] sm:$0xff] %vm5818_vm1, %v1637_v17 }
 0x43c   : > { %v1491_v13 = vpop.permute.xlu1 %1490  ;;  %v1686_v40 = vpop.permute.xlu0 %1685 }
 0x43d   : > { %1513 = vst.msk [vmem:[#allocation5 + $0x10] sm:$0xff] %vm1510_vm6, %v1491_v13 }
 0x43e   : > { %1709 = vst.msk [vmem:[#allocation5 + $0x8] sm:$0xff] %vm5817_vm15, %v1686_v40 }
 0x440   : > { %v1540_v18 = vpop.permute.xlu1 %1539  ;;  %v1589_v14 = vpop.permute.xlu0 %1588 }
 0x441   : > { %1562 = vst.msk [vmem:[#allocation5 + $0x10] sm:$0xff] %vm1559_vm11, %v1540_v18 }
 0x442   : > { %1611 = vst.msk [vmem:[#allocation5 + $0x10] sm:$0xff] %vm1608_vm10, %v1589_v14 }
 0x443   : > { %1661 = vst.msk [vmem:[#allocation5 + $0x10] sm:$0xff] %vm5818_vm1, %v1639_v61 }
 0x444   : > { %1710 = vst.msk [vmem:[#allocation5 + $0x10] sm:$0xff] %vm5817_vm15, %v1688_v2  ;;  %v1735_v19 = vpop.permute.xlu1 %1734  ;;  %v1497_v20 = vpop.permute.xlu0 %1496 }
 0x445   : > { %1759 = vst.msk [vmem:[#allocation5 + $0x10] sm:$0xff] %vm5816_vm14, %v1737_v6  ;;  %1758 = vst.msk [vmem:[#allocation5 + $0x8] sm:$0xff] %vm5816_vm14, %v1735_v19 }
 0x448   : > { %v1546_v12 = vpop.permute.xlu1 %1545  ;;  %v1401_v1 = vpop.permute.xlu0 %1400 }
 0x449   : > { %1419 = vst.msk [vmem:[#allocation5 + $0x30] sm:$0xff] %vm1412_vm4, %v1401_v1 }
 0x44c   : > { %v1450_v22 = vpop.permute.xlu1 %1449  ;;  %v1595_v23 = vpop.permute.xlu0 %1594  ;;  %v1766_v8 = vld [vmem:[#allocation5 + $0x8] sm:$0xff]  ;;  %v1767_v15 = vld [vmem:[#allocation5 + $0x10] sm:$0xff] }
 0x44d   : > { %1468 = vst.msk [vmem:[#allocation5 + $0x30] sm:$0xff] %vm1461_vm5, %v1450_v22  ;;  %3887 = vmatmul.mubr.msk.f32.vlgmr.msra.gmra.mrb[0].mxu1 %vm5815_vm13, %v1766_v8 }
 0x44e   : > { %3889 = vmatprep.mubr.msk.f32.mxu1 %vm5815_vm13, %v1767_v15 }
 0x450   : > { %v1643_v27 = vpop.permute.xlu1 %1642  ;;  %v1399_v28 = vpop.permute.xlu0 %1398 }
 0x451   : > { %1418 = vst.msk [vmem:[#allocation5 + $0x28] sm:$0xff] %vm1412_vm4, %v1399_v28 }
 0x454   : > { %v1692_v29 = vpop.permute.xlu1 %1691  ;;  %v1448_v30 = vpop.permute.xlu0 %1447 }
 0x455   : > { %1467 = vst.msk [vmem:[#allocation5 + $0x28] sm:$0xff] %vm1461_vm5, %v1448_v30 }
 0x456   : > { %1516 = vst.msk [vmem:[#allocation5 + $0x28] sm:$0xff] %vm1510_vm6, %v1497_v20 }
 0x457   : > { %1565 = vst.msk [vmem:[#allocation5 + $0x28] sm:$0xff] %vm1559_vm11, %v1546_v12 }
 0x458   : > { %v1741_v16 = vpop.permute.xlu1 %1740  ;;  %1614 = vst.msk [vmem:[#allocation5 + $0x28] sm:$0xff] %vm1608_vm10, %v1595_v23  ;;  %v1641_v31 = vpop.permute.xlu0 %1640 }
 0x459   : > { %1662 = vst.msk [vmem:[#allocation5 + $0x18] sm:$0xff] %vm5818_vm1, %v1641_v31 }
 0x45c   : > { %v1495_v32 = vpop.permute.xlu1 %1494  ;;  %v1690_v33 = vpop.permute.xlu0 %1689 }
 0x45d   : > { %1515 = vst.msk [vmem:[#allocation5 + $0x20] sm:$0xff] %vm1510_vm6, %v1495_v32 }
 0x45e   : > { %1711 = vst.msk [vmem:[#allocation5 + $0x18] sm:$0xff] %vm5817_vm15, %v1690_v33 }
 0x460   : > { %v1544_v34 = vpop.permute.xlu1 %1543  ;;  %v1593_v35 = vpop.permute.xlu0 %1592 }
 0x461   : > { %1564 = vst.msk [vmem:[#allocation5 + $0x20] sm:$0xff] %vm1559_vm11, %v1544_v34 }
 0x462   : > { %1613 = vst.msk [vmem:[#allocation5 + $0x20] sm:$0xff] %vm1608_vm10, %v1593_v35 }
 0x463   : > { %1663 = vst.msk [vmem:[#allocation5 + $0x20] sm:$0xff] %vm5818_vm1, %v1643_v27 }
 0x464   : > { %1712 = vst.msk [vmem:[#allocation5 + $0x20] sm:$0xff] %vm5817_vm15, %v1692_v29  ;;  %v1739_v9 = vpop.permute.xlu1 %1738  ;;  %v1501_v38 = vpop.permute.xlu0 %1500 }
 0x465   : > { %1761 = vst.msk [vmem:[#allocation5 + $0x20] sm:$0xff] %vm5816_vm14, %v1741_v16  ;;  %1760 = vst.msk [vmem:[#allocation5 + $0x18] sm:$0xff] %vm5816_vm14, %v1739_v9 }
 0x468   : > { %v1599_v39 = vpop.permute.xlu1 %1598  ;;  %v1550_v49 = vpop.permute.xlu0 %1549 }
 0x46c   : > { %v1499_v41 = vpop.permute.xlu1 %1498  ;;  %v1647_v45 = vpop.permute.xlu0 %1646  ;;  %v1768_v42 = vld [vmem:[#allocation5 + $0x18] sm:$0xff]  ;;  %v1769_v43 = vld [vmem:[#allocation5 + $0x20] sm:$0xff] }
 0x46d   : > { %1517 = vst.msk [vmem:[#allocation5 + $0x30] sm:$0xff] %vm1510_vm6, %v1499_v41  ;;  %3890 = vmatmul.mubr.msk.f32.gmra.mrb[2].mxu1 %vm5815_vm13, %v1768_v42 }
 0x46e   : > { %3892 = vmatprep.mubr.msk.f32.mxu1 %vm5815_vm13, %v1769_v43 }
 0x470   : > { %v1548_v44 = vpop.permute.xlu1 %1547  ;;  %v1696_v46 = vpop.permute.xlu0 %1695 }
 0x471   : > { %1566 = vst.msk [vmem:[#allocation5 + $0x30] sm:$0xff] %vm1559_vm11, %v1548_v44 }
 0x474   : > { %v1597_v47 = vpop.permute.xlu1 %1596  ;;  %v1403_v48 = vpop.permute.xlu0 %1402 }
 0x475   : > { %1615 = vst.msk [vmem:[#allocation5 + $0x30] sm:$0xff] %vm1608_vm10, %v1597_v47 }
 0x476   : > { %1420 = vst.msk [vmem:[#allocation5 + $0x38] sm:$0xff] %vm1412_vm4, %v1403_v48 }
 0x477   : > { %1665 = vst.msk [vmem:[#allocation5 + $0x30] sm:$0xff] %vm5818_vm1, %v1647_v45 }
 0x478   : > { %1714 = vst.msk [vmem:[#allocation5 + $0x30] sm:$0xff] %vm5817_vm15, %v1696_v46  ;;  %v1452_v11 = vpop.permute.xlu0 %1451  ;;  %v1747_v51 = vpop.permute.xlu1 %1746 }
 0x479   : > { %1469 = vst.msk [vmem:[#allocation5 + $0x38] sm:$0xff] %vm1461_vm5, %v1452_v11 }
 0x47a   : > { %1518 = vst.msk [vmem:[#allocation5 + $0x38] sm:$0xff] %vm1510_vm6, %v1501_v38 }
 0x47b   : > { %1567 = vst.msk [vmem:[#allocation5 + $0x38] sm:$0xff] %vm1559_vm11, %v1550_v49 }
 0x47c   : > { %1616 = vst.msk [vmem:[#allocation5 + $0x38] sm:$0xff] %vm1608_vm10, %v1599_v39  ;;  %v1645_v50 = vpop.permute.xlu0 %1644 }
 0x47d   : > { %1664 = vst.msk [vmem:[#allocation5 + $0x28] sm:$0xff] %vm5818_vm1, %v1645_v50  ;;  %1666 = vst.msk [vmem:[#allocation5 + $0x38] sm:$0xff] %vm5818_vm1, %v4958_v55  ;;  %v5172_v55 = vld [vmem:[%s5770_s4] ss:$0 sm:$0xff] }
 0x47e   : > { %1715 = vst.msk [vmem:[#allocation5 + $0x38] sm:$0xff] %vm5817_vm15, %v4960_v56 }
 0x47f   : > { %1764 = vst.msk [vmem:[#allocation5 + $0x38] sm:$0xff] %vm5816_vm14, %v1747_v51 }
 0x480   : > { %v1694_v52 = vpop.permute.xlu0 %1693 }
 0x481   : > { %1713 = vst.msk [vmem:[#allocation5 + $0x28] sm:$0xff] %vm5817_vm15, %v1694_v52  ;;  %vm5842_vm15 = vcmask 958272  }
 0x484   : > { %v1743_v53 = vpop.permute.xlu0 %1742 }
 0x485   : > { %1762 = vst.msk [vmem:[#allocation5 + $0x28] sm:$0xff] %vm5816_vm14, %v1743_v53 }
 0x486   : > { %v1772_v58 = vld [vmem:[#allocation5 + $0x38] sm:$0xff] }
 0x488   : > { %v1745_v54 = vpop.permute.xlu0 %1744 }
 0x489   : > { %1763 = vst.msk [vmem:[#allocation5 + $0x30] sm:$0xff] %vm5816_vm14, %v1745_v54  ;;  %vm5841_vm14 = vcmask 851672  }
 0x48c   : > { %v1770_v57 = vld [vmem:[#allocation5 + $0x28] sm:$0xff] }
 0x48d   : > { %3893 = vmatmul.mubr.msk.f32.gmra.mrb[4].mxu1 %vm5815_vm13, %v1770_v57 }
 0x490   : > { %v1771_v59 = vld [vmem:[#allocation5 + $0x30] sm:$0xff] }
 0x491   : > { %3895 = vmatprep.mubr.msk.f32.mxu1 %vm5815_vm13, %v1771_v59  ;;  %v2394_v59 = vld [vmem:[#allocation4 + $0x90] sm:$0xff] }
 0x492   : > { %3896 = vmatmul.mubr.msk.f32.gmra.mrb[6].mxu1 %vm5815_vm13, %v1772_v58  ;;  %vm5840_vm13 = vcmask 745072  }
 0x520   : > { %v3888_v56 = vpop.f32.mrb[0].mxu1 }
 0x521   : > { %v1880_v61 = vadd.f32 %v3888_v56, %v5172_v55  ;;  %v1874_v62 = vpop.f32.mrb[1].mxu1 }
 0x522   : > { %v1875_v0 = vadd.f32 %v5172_v55, %v1874_v62 }
 0x523   : > { %v3671_v2 = vmul.f32 -1.442695, %v1880_v61  ;;  %2043 = vrot.lane.b32.xlu0 %v1880_v61, %s5797_s16  ;;  %v2442_v61 = vld [vmem:[#allocation4 + $0x91] sm:$0xff] }
 0x524   : > { %v3670_v13 = vmul.f32 -1.442695, %v1875_v0 }
 0x525   : > { %4151 = vpow2.f32 %v3671_v2 }
 0x527   : > { %2041 = vrot.lane.b32.xlu0 %v1875_v0, %s5797_s16  ;;  %v2147_v0 = vld [vmem:[#allocation4 + $0x1] sm:$0xff] }
 0x52f   : > { %v4152_v6 = vpop.eup %4151 }
 0x530   : > { %v1938_v17 = vadd.f32 1.0, %v4152_v6 }
 0x532   : > { %4153 = vrcp.f32 %v1938_v17 }
 0x533   : > { %4155 = vpow2.f32 %v3670_v13 }
 0x53c   : > { %v4154_v40 = vpop.eup %4153 }
 0x53d   : > { %v1962_v18 = vmul.f32 2.0, %v4154_v40  ;;  %v4156_v19 = vpop.eup %4155  ;;  %v2195_v40 = vld [vmem:[#allocation4 + $0x2] sm:$0xff] }
 0x53e   : > { %v1937_v8 = vadd.f32 1.0, %v4156_v19 }
 0x53f   : > { %v3679_v14 = vadd.f32 -1.0, %v1962_v18 }
 0x540   : > { %v3891_v20 = vpop.f32.mrb[2].mxu1 }
 0x541   : > { %v1979_v12 = vmul.f32 1.442695, %v3679_v14  ;;  %v1890_v1 = vadd.f32 %v3891_v20, %v5172_v55  ;;  %v1884_v22 = vpop.f32.mrb[3].mxu1 }
 0x542   : > { %v1885_v23 = vadd.f32 %v5172_v55, %v1884_v22 }
 0x543   : > { %4157 = vpow2.f32 %v1979_v12  ;;  %v3673_v15 = vmul.f32 -1.442695, %v1890_v1  ;;  %2047 = vrot.lane.b32.xlu0 %v1890_v1, %s5797_s16 }
 0x544   : > { %v3672_v27 = vmul.f32 -1.442695, %v1885_v23 }
 0x545   : > { %4159 = vpow2.f32 %v3673_v15 }
 0x546   : > { %4161 = vpow2.f32 %v3672_v27 }
 0x547   : > { %4163 = vrcp.f32 %v1937_v8  ;;  %2045 = vrot.lane.b32.xlu0 %v1885_v23, %s5797_s16 }
 0x54d   : > { %v4158_v28 = vpop.eup %4157 }
 0x54e   : > { %2003 = vrot.lane.b32.xlu1 %v4158_v28, %s5809_s7 }
 0x54f   : > { %v4160_v29 = vpop.eup %4159 }
 0x550   : > { %v4162_v30 = vpop.eup %4161  ;;  %v1940_v16 = vadd.f32 1.0, %v4160_v29 }
 0x551   : > { %v4164_v31 = vpop.eup %4163  ;;  %v1939_v32 = vadd.f32 1.0, %v4162_v30 }
 0x552   : > { %4165 = vrcp.f32 %v1940_v16  ;;  %v1961_v33 = vmul.f32 2.0, %v4164_v31 }
 0x553   : > { %4167 = vrcp.f32 %v1939_v32 }
 0x554   : > { %v3678_v34 = vadd.f32 -1.0, %v1961_v33 }
 0x556   : > { %v1977_v9 = vmul.f32 1.442695, %v3678_v34 }
 0x558   : > { %4169 = vpow2.f32 %v1977_v9 }
 0x55c   : > { %v4166_v35 = vpop.eup %4165 }
 0x55d   : > { %v1964_v38 = vmul.f32 2.0, %v4166_v35  ;;  %v4168_v39 = vpop.eup %4167 }
 0x55e   : > { %v1963_v45 = vmul.f32 2.0, %v4168_v39 }
 0x55f   : > { %v3681_v41 = vadd.f32 -1.0, %v1964_v38 }
 0x560   : > { %v3894_v49 = vpop.f32.mrb[4].mxu1  ;;  %v3680_v11 = vadd.f32 -1.0, %v1963_v45 }
 0x561   : > { %v1900_v42 = vadd.f32 %v3894_v49, %v5172_v55  ;;  %v1894_v43 = vpop.f32.mrb[5].mxu1  ;;  %v1983_v48 = vmul.f32 1.442695, %v3681_v41 }
 0x562   : > { %v1895_v44 = vadd.f32 %v5172_v55, %v1894_v43  ;;  %v1981_v57 = vmul.f32 1.442695, %v3680_v11  ;;  %v4170_v56 = vpop.eup %4169 }
 0x563   : > { %v3675_v46 = vmul.f32 -1.442695, %v1900_v42  ;;  %2051 = vrot.lane.b32.xlu0 %v1900_v42, %s5797_s16  ;;  %v4299_v42 = vld [vmem:[#allocation2 + $0x8] sm:$0xff] }
 0x564   : > { %v3674_v47 = vmul.f32 -1.442695, %v1895_v44 }
 0x565   : > { %4171 = vpow2.f32 %v3675_v46  ;;  %v3897_v50 = vpop.f32.mrb[6].mxu1 }
 0x566   : > { %4173 = vpow2.f32 %v3674_v47  ;;  %v1910_v51 = vadd.f32 %v3897_v50, %v5172_v55  ;;  %v1904_v52 = vpop.f32.mrb[7].mxu1 }
 0x567   : > { %2049 = vrot.lane.b32.xlu0 %v1895_v44, %s5797_s16  ;;  %v1905_v53 = vadd.f32 %v5172_v55, %v1904_v52  ;;  %4175 = vpow2.f32 %v1983_v48  ;;  %v2131_v48 = vld [vmem:[#allocation4] sm:$0xff] }
 0x568   : > { %v3677_v54 = vmul.f32 -1.442695, %v1910_v51  ;;  %2055 = vrot.lane.b32.xlu1 %v1910_v51, %s5797_s16  ;;  %2139 = vst.msk [vmem:[#allocation6] sm:$0xff] %vm578_vm0, %v2131_v48  ;;  %v3691_v48 = vld [vmem:[%s5767_s1 + $0xa0] sm:$0xff] }
 0x569   : > { %v3676_v58 = vmul.f32 -1.442695, %v1905_v53 }
 0x56a   : > { %4177 = vpow2.f32 %v3677_v54  ;;  %v4300_v54 = vld [vmem:[#allocation2] sm:$0xff] }
 0x56b   : > { %4179 = vpow2.f32 %v3676_v58  ;;  %2001 = vrot.lane.b32.xlu0 %v4170_v56, %s5809_s7 }
 0x56c   : > { %2417 = vrot.lane.b32.xlu1 %v2394_v59, %s5825_s17  ;;  %4181 = vpow2.f32 %v1981_v57 }
 0x56f   : > { %v4172_v62 = vpop.eup %4171  ;;  %2053 = vrot.lane.b32.xlu0 %v1905_v53, %s5797_s16  ;;  %s5832_s16 = smov 65  }
 0x570   : > { %v4174_v55 = vpop.eup %4173  ;;  %v1942_v2 = vadd.f32 1.0, %v4172_v62  ;;  %2465 = vrot.lane.b32.xlu1 %v2442_v61, %s5826_s23 }
 0x571   : > { %v1941_v6 = vadd.f32 1.0, %v4174_v55  ;;  %v4176_v17 = vpop.eup %4175 }
 0x572   : > { %4183 = vrcp.f32 %v1942_v2  ;;  %v4301_v2 = vld [vmem:[#allocation2 + $0x18] sm:$0xff] }
 0x573   : > { %4185 = vrcp.f32 %v1941_v6  ;;  %2163 = vrot.lane.b32.xlu0 %v2147_v0, %s5827_s25 }
 0x574   : > { %v4178_v13 = vpop.eup %4177  ;;  %2007 = vrot.lane.b32.xlu1 %v4176_v17, %s5809_s7 }
 0x575   : > { %v4180_v18 = vpop.eup %4179  ;;  %v1944_v14 = vadd.f32 1.0, %v4178_v13 }
 0x576   : > { %v1943_v19 = vadd.f32 1.0, %v4180_v18  ;;  %v4182_v20 = vpop.eup %4181 }
 0x577   : > { %4187 = vrcp.f32 %v1944_v14  ;;  %2211 = vrot.lane.b32.xlu0 %v2195_v40, %s5828_s26  ;;  %v4302_v40 = vld [vmem:[#allocation2 + $0x10] sm:$0xff] }
 0x578   : > { %4189 = vrcp.f32 %v1943_v19  ;;  %2005 = vrot.lane.b32.xlu1 %v4182_v20, %s5809_s7 }
 0x57c   : > { %v4184_v12 = vpop.eup %4183 }
 0x57d   : > { %v4186_v1 = vpop.eup %4185  ;;  %v1966_v22 = vmul.f32 2.0, %v4184_v12 }
 0x57e   : > { %v1965_v23 = vmul.f32 2.0, %v4186_v1 }
 0x57f   : > { %v3683_v8 = vadd.f32 -1.0, %v1966_v22 }
 0x580   : > { %v3682_v15 = vadd.f32 -1.0, %v1965_v23 }
 0x581   : > { %v4188_v27 = vpop.eup %4187  ;;  %v1987_v28 = vmul.f32 1.442695, %v3683_v8 }
 0x582   : > { %v4190_v29 = vpop.eup %4189  ;;  %v1968_v30 = vmul.f32 2.0, %v4188_v27  ;;  %v1985_v16 = vmul.f32 1.442695, %v3682_v15 }
 0x583   : > { %4191 = vpow2.f32 %v1987_v28  ;;  %v1967_v31 = vmul.f32 2.0, %v4190_v29 }
 0x584   : > { %v3685_v32 = vadd.f32 -1.0, %v1968_v30  ;;  %4193 = vpow2.f32 %v1985_v16 }
 0x585   : > { %v3684_v34 = vadd.f32 -1.0, %v1967_v31 }
 0x586   : > { %v1991_v33 = vmul.f32 1.442695, %v3685_v32 }
 0x587   : > { %v1989_v35 = vmul.f32 1.442695, %v3684_v34 }
 0x588   : > { %4195 = vpow2.f32 %v1991_v33 }
 0x589   : > { %4197 = vpow2.f32 %v1989_v35  ;;  %v3686_v35 = vld [vmem:[%s5767_s1 + $0x78] sm:$0xff] }
 0x58d   : > { %v4192_v9 = vpop.eup %4191 }
 0x58e   : > { %2011 = vrot.lane.b32.xlu1 %v4192_v9, %s5809_s7  ;;  %v4194_v38 = vpop.eup %4193  ;;  %v3687_v9 = vld [vmem:[%s5767_s1 + $0x80] sm:$0xff] }
 0x592   : > { %2009 = vrot.lane.b32.xlu1 %v4194_v38, %s5809_s7  ;;  %v4196_v39 = vpop.eup %4195 }
 0x593   : > { %v4198_v49 = vpop.eup %4197 }
 0x595   : > { %v2044_v45 = vpop.permute.xlu0 %2043 }
 0x596   : > { %2015 = vrot.lane.b32.xlu1 %v4196_v39, %s5809_s7  ;;  %v3998_v39 = vpack.c.bf16 %v3687_v9, %v3686_v35 }
 0x598   : > { %3999 = vmatprep.subr.bf16.mxu1 %v3998_v39 }
 0x599   : > { %v2042_v46 = vpop.permute.xlu0 %2041  ;;  %4001 = vmatpush3.bf16.msra.mxu1 %v3998_v39 }
 0x59a   : > { %2013 = vrot.lane.b32.xlu1 %v4198_v49, %s5809_s7  ;;  %s5885_s7 = smov 15  }
 0x5b5   : > { %v2048_v47 = vpop.permute.xlu0 %2047 }
 0x5b9   : > { %v2046_v11 = vpop.permute.xlu0 %2045 }
 0x5c0   : > { %v2004_v41 = vpop.permute.xlu1 %2003 }
 0x5c1   : > { %v2026_v43 = vmul.f32 %v4299_v42, %v2004_v41  ;;  %v3688_v41 = vld [vmem:[%s5767_s1 + $0x88] sm:$0xff] }
 0x5c3   : > { %v5202_v44 = vadd.f32 %v2044_v45, %v2026_v43  ;;  %v3689_v45 = vld [vmem:[%s5767_s1 + $0x90] sm:$0xff] }
 0x5c4   : > { %v4002_v42 = vpack.c.bf16 %v3689_v45, %v3688_v41 }
 0x5c5   : > { %2083 = vrot.lane.b32.xlu1 %v5202_v44, %s5829_s6 }
 0x5c6   : > { %4003 = vmatprep.subr.bf16.mxu1 %v4002_v42 }
 0x5c7   : > { %4005 = vmatpush3.bf16.msra.mxu1 %v4002_v42  ;;  %v3083_v42 = vld [vmem:[#allocation3 + $0x90] sm:$0xff] }
 0x5d5   : > { %v2052_v50 = vpop.permute.xlu0 %2051 }
 0x5d9   : > { %v2050_v51 = vpop.permute.xlu0 %2049 }
 0x5da   : > { %v2056_v52 = vpop.permute.xlu1 %2055 }
 0x5dd   : > { %v2002_v53 = vpop.permute.xlu0 %2001 }
 0x5de   : > { %v2025_v57 = vmul.f32 %v4300_v54, %v2002_v53  ;;  %v5207_v58 = vpop.permute.xlu1 %2417 }
 0x5e0   : > { %v5209_v59 = vadd.f32 %v2042_v46, %v2025_v57  ;;  %v3694_v57 = vld [vmem:[%s5767_s1 + $0xb8] sm:$0xff] }
 0x5e1   : > { %v2054_v56 = vpop.permute.xlu0 %2053 }
 0x5e2   : > { %v5211_v61 = vpop.permute.xlu1 %2465  ;;  %2081 = vrot.lane.b32.xlu0 %v5209_v59, %s5829_s6 }
 0x5e5   : > { %v2164_v62 = vpop.permute.xlu0 %2163 }
 0x5e6   : > { %v2008_v55 = vpop.permute.xlu1 %2007  ;;  %2187 = vst.msk [vmem:[#allocation6] sm:$0xff] %vm713_vm3, %v2164_v62 }
 0x5e7   : > { %v2028_v0 = vmul.f32 %v4301_v2, %v2008_v55  ;;  %v3696_v2 = vld [vmem:[%s5767_s1 + $0xc8] sm:$0xff] }
 0x5e9   : > { %v5216_v6 = vadd.f32 %v2048_v47, %v2028_v0  ;;  %v2212_v17 = vpop.permute.xlu0 %2211  ;;  %v3690_v47 = vld [vmem:[%s5767_s1 + $0x98] sm:$0xff]  ;;  %v3697_v0 = vld [vmem:[%s5767_s1 + $0xd0] sm:$0xff] }
 0x5ea   : > { %v2006_v13 = vpop.permute.xlu1 %2005  ;;  %2235 = vst.msk [vmem:[#allocation6] sm:$0xff] %vm762_vm7, %v2212_v17  ;;  %v4018_v17 = vpack.c.bf16 %v3697_v0, %v3696_v2 }
 0x5eb   : > { %v2027_v18 = vmul.f32 %v4302_v40, %v2006_v13  ;;  %2087 = vrot.lane.b32.xlu1 %v5216_v6, %s5829_s6  ;;  %v3698_v40 = vld [vmem:[%s5767_s1 + $0xd8] sm:$0xff] }
 0x5ed   : > { %v5221_v14 = vadd.f32 %v2046_v11, %v2027_v18  ;;  %v4006_v11 = vpack.c.bf16 %v3691_v48, %v3690_v47  ;;  %v3699_v18 = vld [vmem:[%s5767_s1 + $0xe0] sm:$0xff] }
 0x5ee   : > { %v2836_v48 = vld [vmem:[#allocation3 + $0x1] sm:$0xff] }
 0x5ef   : > { %2085 = vrot.lane.b32.xlu0 %v5221_v14, %s5829_s6  ;;  %4007 = vmatprep.subr.bf16.mxu1 %v4006_v11 }
 0x5f0   : > { %4009 = vmatpush3.bf16.msra.mxu1 %v4006_v11 }
 0x600   : > { %v2012_v19 = vpop.permute.xlu1 %2011 }
 0x601   : > { %v2030_v20 = vmul.f32 %v5006_v60, %v2012_v19  ;;  %v4022_v19 = vpack.c.bf16 %v3699_v18, %v3698_v40 }
 0x603   : > { %v5226_v12 = vadd.f32 %v2052_v50, %v2030_v20 }
 0x604   : > { %v2010_v1 = vpop.permute.xlu1 %2009 }
 0x605   : > { %v2029_v22 = vmul.f32 %v5009_v63, %v2010_v1  ;;  %2091 = vrot.lane.b32.xlu1 %v5226_v12, %s5829_s6  ;;  %v3700_v1 = vld [vmem:[%s5767_s1 + $0xe8] sm:$0x1f] }
 0x607   : > { %v5231_v23 = vadd.f32 %v2050_v51, %v2029_v22  ;;  %v3692_v51 = vld [vmem:[%s5767_s1 + $0xa8] sm:$0xff] }
 0x608   : > { %v2016_v8 = vpop.permute.xlu1 %2015 }
 0x609   : > { %v2032_v15 = vmul.f32 %v5038_v21, %v2016_v8  ;;  %2089 = vrot.lane.b32.xlu0 %v5231_v23, %s5829_s6 }
 0x60b   : > { %v5236_v27 = vadd.f32 %v2056_v52, %v2032_v15  ;;  %v3693_v52 = vld [vmem:[%s5767_s1 + $0xb0] sm:$0xff] }
 0x60c   : > { %v2014_v28 = vpop.permute.xlu1 %2013  ;;  %v4010_v53 = vpack.c.bf16 %v3693_v52, %v3692_v51  ;;  %v2884_v51 = vld [vmem:[#allocation3 + $0x2] sm:$0xff] }
 0x60d   : > { %v2031_v60 = vmul.f32 %v5042_v24, %v2014_v28  ;;  %2095 = vrot.lane.b32.xlu1 %v5236_v27, %s5829_s6 }
 0x60e   : > { %4011 = vmatprep.subr.bf16.mxu1 %v4010_v53 }
 0x60f   : > { %v5241_v63 = vadd.f32 %v2054_v56, %v2031_v60  ;;  %v3695_v56 = vld [vmem:[%s5767_s1 + $0xc0] sm:$0xff]  ;;  %4013 = vmatpush3.bf16.msra.mxu1 %v4010_v53 }
 0x610   : > { %v4014_v62 = vpack.c.bf16 %v3695_v56, %v3694_v57 }
 0x611   : > { %2093 = vrot.lane.b32.xlu0 %v5241_v63, %s5829_s6 }
 0x612   : > { %4015 = vmatprep.subr.bf16.mxu1 %v4014_v62 }
 0x613   : > { %4017 = vmatpush3.bf16.msra.mxu1 %v4014_v62 }
 0x614   : > { %4019 = vmatprep.subr.bf16.mxu1 %v4018_v17 }
 0x617   : > { %4021 = vmatpush3.bf16.msra.mxu1 %v4018_v17 }
 0x618   : > { %4023 = vmatprep.subr.bf16.mxu1 %v4022_v19 }
 0x61b   : > { %4025 = vmatpush3.bf16.msra.mxu1 %v4022_v19 }
 0x61c   : > { %3926 = vmatprep.subr.msk.mxu1 %vm1105_vm8, %v3700_v1 }
 0x61f   : > { %3927 = vmatpush3.msk.msra.mxu1 %vm1105_vm8, %v3700_v1 }
 0x637   : > { %v2084_v29 = vpop.permute.xlu1 %2083 }
 0x638   : > { %2106 = vst.msk [vmem:[#allocation4 + $0x21] sm:$0xff] %vm578_vm0, %v2084_v29 }
 0x63f   : > { %v2244_v21 = vld [vmem:[#allocation4 + $0x20] sm:$0xff] }
 0x640   : > { %v2292_v30 = vld [vmem:[#allocation4 + $0x21] sm:$0xff]  ;;  %2261 = vrot.lane.b32.xlu1 %v2244_v21, %s5830_s11  ;;  %2141 = vst.msk [vmem:[#allocation6 + $0x10] sm:$0xff] %vm578_vm0, %v2244_v21 }
 0x641   : > { %2309 = vrot.lane.b32.xlu0 %v2292_v30, %s5831_s15  ;;  %v2340_v24 = vld [vmem:[#allocation4 + $0x22] sm:$0xff] }
 0x644   : > { %2167 = vrot.lane.b32.xlu1 %v2292_v30, %s5827_s25 }
 0x645   : > { %2357 = vrot.lane.b32.xlu0 %v2340_v24, %s5832_s16 }
 0x648   : > { %2215 = vrot.lane.b32.xlu1 %v2340_v24, %s5828_s26 }
 0x64c   : > { %2403 = vrot.lane.b32.xlu1 %v2244_v21, %s5825_s17 }
 0x650   : > { %2451 = vrot.lane.b32.xlu1 %v2292_v30, %s5826_s23 }
 0x654   : > { %2499 = vrot.lane.b32.xlu1 %v2340_v24, %s5833_s13  ;;  %v2082_v16 = vpop.permute.xlu0 %2081 }
 0x655   : > { %2105 = vst.msk [vmem:[#allocation4 + $0x11] sm:$0xff] %vm578_vm0, %v2082_v16 }
 0x65c   : > { %v2243_v31 = vld [vmem:[#allocation4 + $0x10] sm:$0xff] }
 0x65d   : > { %v2148_v32 = vld [vmem:[#allocation4 + $0x11] sm:$0xff]  ;;  %v2088_v33 = vpop.permute.xlu1 %2087  ;;  %2259 = vrot.lane.b32.xlu0 %v2243_v31, %s5830_s11  ;;  %2140 = vst.msk [vmem:[#allocation6 + $0x8] sm:$0xff] %vm578_vm0, %v2243_v31 }
 0x65e   : > { %2165 = vrot.lane.b32.xlu1 %v2148_v32, %s5827_s25  ;;  %2108 = vst.msk [vmem:[#allocation4 + $0x41] sm:$0xff] %vm578_vm0, %v2088_v33  ;;  %v2196_v34 = vld [vmem:[#allocation4 + $0x12] sm:$0xff] }
 0x661   : > { %2307 = vrot.lane.b32.xlu0 %v2148_v32, %s5831_s15  ;;  %v2086_v38 = vpop.permute.xlu0 %2085 }
 0x662   : > { %2213 = vrot.lane.b32.xlu1 %v2196_v34, %s5828_s26  ;;  %2107 = vst.msk [vmem:[#allocation4 + $0x31] sm:$0xff] %vm578_vm0, %v2086_v38  ;;  %v2490_v38 = vld [vmem:[#allocation4 + $0x92] sm:$0xff] }
 0x665   : > { %v2246_v49 = vld [vmem:[#allocation4 + $0x40] sm:$0xff] }
 0x666   : > { %2355 = vrot.lane.b32.xlu1 %v2196_v34, %s5832_s16  ;;  %2265 = vrot.lane.b32.xlu0 %v2246_v49, %s5830_s11  ;;  %2143 = vst.msk [vmem:[#allocation6 + $0x20] sm:$0xff] %vm578_vm0, %v2246_v49  ;;  %v2294_v43 = vld [vmem:[#allocation4 + $0x41] sm:$0xff] }
 0x667   : > { %v2199_v50 = vld [vmem:[#allocation4 + $0x42] sm:$0xff] }
 0x669   : > { %v2388_v46 = vld [vmem:[#allocation4 + $0x30] sm:$0xff] }
 0x66a   : > { %2313 = vrot.lane.b32.xlu1 %v2294_v43, %s5831_s15  ;;  %2171 = vrot.lane.b32.xlu0 %v2294_v43, %s5827_s25  ;;  %2142 = vst.msk [vmem:[#allocation6 + $0x18] sm:$0xff] %vm578_vm0, %v2388_v46  ;;  %v2150_v54 = vld [vmem:[#allocation4 + $0x31] sm:$0xff] }
 0x66b   : > { %v2198_v55 = vld [vmem:[#allocation4 + $0x32] sm:$0xff] }
 0x66e   : > { %2219 = vrot.lane.b32.xlu1 %v2199_v50, %s5828_s26  ;;  %2361 = vrot.lane.b32.xlu0 %v2199_v50, %s5832_s16 }
 0x672   : > { %2407 = vrot.lane.b32.xlu1 %v2246_v49, %s5825_s17  ;;  %2169 = vrot.lane.b32.xlu0 %v2150_v54, %s5827_s25 }
 0x676   : > { %2455 = vrot.lane.b32.xlu1 %v2294_v43, %s5826_s23  ;;  %2217 = vrot.lane.b32.xlu0 %v2198_v55, %s5828_s26  ;;  %v3131_v43 = vld [vmem:[#allocation3 + $0x91] sm:$0xff] }
 0x677   : > { %v2092_v13 = vpop.permute.xlu1 %2091 }
 0x678   : > { %2110 = vst.msk [vmem:[#allocation4 + $0x61] sm:$0xff] %vm578_vm0, %v2092_v13 }
 0x67a   : > { %2503 = vrot.lane.b32.xlu1 %v2199_v50, %s5833_s13  ;;  %2405 = vrot.lane.b32.xlu0 %v2388_v46, %s5825_s17 }
 0x67b   : > { %v2090_v20 = vpop.permute.xlu0 %2089 }
 0x67c   : > { %2109 = vst.msk [vmem:[#allocation4 + $0x51] sm:$0xff] %vm578_vm0, %v2090_v20 }
 0x67e   : > { %2263 = vrot.lane.b32.xlu1 %v2388_v46, %s5830_s11  ;;  %2453 = vrot.lane.b32.xlu0 %v2150_v54, %s5826_s23 }
 0x67f   : > { %v2096_v22 = vpop.permute.xlu1 %2095  ;;  %v2248_v8 = vld [vmem:[#allocation4 + $0x60] sm:$0xff] }
 0x680   : > { %2112 = vst.msk [vmem:[#allocation4 + $0x81] sm:$0xff] %vm578_vm0, %v2096_v22  ;;  %2145 = vst.msk [vmem:[#allocation6 + $0x30] sm:$0xff] %vm578_vm0, %v2248_v8  ;;  %v2296_v60 = vld [vmem:[#allocation4 + $0x61] sm:$0xff] }
 0x681   : > { %v2201_v21 = vld [vmem:[#allocation4 + $0x62] sm:$0xff] }
 0x682   : > { %2311 = vrot.lane.b32.xlu1 %v2150_v54, %s5831_s15  ;;  %2359 = vrot.lane.b32.xlu0 %v2198_v55, %s5832_s16 }
 0x683   : > { %v2094_v15 = vpop.permute.xlu0 %2093  ;;  %v2390_v28 = vld [vmem:[#allocation4 + $0x50] sm:$0xff] }
 0x684   : > { %2111 = vst.msk [vmem:[#allocation4 + $0x71] sm:$0xff] %vm578_vm0, %v2094_v15  ;;  %2144 = vst.msk [vmem:[#allocation6 + $0x28] sm:$0xff] %vm578_vm0, %v2390_v28  ;;  %v2152_v30 = vld [vmem:[#allocation4 + $0x51] sm:$0xff] }
 0x685   : > { %v2200_v24 = vld [vmem:[#allocation4 + $0x52] sm:$0xff] }
 0x686   : > { %2501 = vrot.lane.b32.xlu1 %v2198_v55, %s5833_s13  ;;  %2269 = vrot.lane.b32.xlu0 %v2248_v8, %s5830_s11 }
 0x687   : > { %v2250_v16 = vld [vmem:[#allocation4 + $0x80] sm:$0xff] }
 0x688   : > { %v2346_v31 = vld [vmem:[#allocation4 + $0x82] sm:$0xff] }
 0x689   : > { %v2298_v32 = vld [vmem:[#allocation4 + $0x81] sm:$0xff] }
 0x68a   : > { %2317 = vrot.lane.b32.xlu1 %v2296_v60, %s5831_s15  ;;  %2175 = vrot.lane.b32.xlu0 %v2296_v60, %s5827_s25 }
 0x68b   : > { %v2249_v29 = vld [vmem:[#allocation4 + $0x70] sm:$0xff] }
 0x68c   : > { %2146 = vst.msk [vmem:[#allocation6 + $0x38] sm:$0xff] %vm578_vm0, %v2249_v29  ;;  %v2297_v33 = vld [vmem:[#allocation4 + $0x71] sm:$0xff]  ;;  %vm5838_vm0 = vcmask 638472  }
 0x68d   : > { %v2345_v35 = vld [vmem:[#allocation4 + $0x72] sm:$0xff]  ;;  %vm5839_vm8 = vmmov %vm5838_vm0 }
 0x68e   : > { %2223 = vrot.lane.b32.xlu1 %v2201_v21, %s5828_s26  ;;  %2365 = vrot.lane.b32.xlu0 %v2201_v21, %s5832_s16 }
 0x692   : > { %2411 = vrot.lane.b32.xlu1 %v2248_v8, %s5825_s17  ;;  %2173 = vrot.lane.b32.xlu0 %v2152_v30, %s5827_s25 }
 0x696   : > { %2459 = vrot.lane.b32.xlu1 %v2296_v60, %s5826_s23  ;;  %2221 = vrot.lane.b32.xlu0 %v2200_v24, %s5828_s26 }
 0x69a   : > { %2507 = vrot.lane.b32.xlu1 %v2201_v21, %s5833_s13  ;;  %2409 = vrot.lane.b32.xlu0 %v2390_v28, %s5825_s17 }
 0x69e   : > { %2267 = vrot.lane.b32.xlu1 %v2390_v28, %s5830_s11  ;;  %2457 = vrot.lane.b32.xlu0 %v2152_v30, %s5826_s23 }
 0x6a2   : > { %2315 = vrot.lane.b32.xlu1 %v2152_v30, %s5831_s15  ;;  %2363 = vrot.lane.b32.xlu0 %v2200_v24, %s5832_s16 }
 0x6a6   : > { %2505 = vrot.lane.b32.xlu1 %v2200_v24, %s5833_s13  ;;  %2273 = vrot.lane.b32.xlu0 %v2250_v16, %s5830_s11 }
 0x6aa   : > { %2369 = vrot.lane.b32.xlu1 %v2346_v31, %s5832_s16  ;;  %2321 = vrot.lane.b32.xlu0 %v2298_v32, %s5831_s15 }
 0x6ae   : > { %2271 = vrot.lane.b32.xlu1 %v2249_v29, %s5830_s11  ;;  %2415 = vrot.lane.b32.xlu0 %v2250_v16, %s5825_s17 }
 0x6b2   : > { %2319 = vrot.lane.b32.xlu1 %v2297_v33, %s5831_s15  ;;  %v2262_v34 = vpop.permute.xlu1 %2261  ;;  %2463 = vrot.lane.b32.xlu0 %v2298_v32, %s5826_s23 }
 0x6b3   : > { %v2310_v41 = vpop.permute.xlu0 %2309 }
 0x6b6   : > { %2367 = vrot.lane.b32.xlu1 %v2345_v35, %s5832_s16  ;;  %v2168_v9 = vpop.permute.xlu1 %2167  ;;  %2177 = vrot.lane.b32.xlu0 %v2297_v33, %s5827_s25  ;;  %s5834_s16 = smov 18   ;;  %s5835_s25 = smov 21  }
 0x6b7   : > { %2189 = vst.msk [vmem:[#allocation6 + $0x10] sm:$0xff] %vm713_vm3, %v2168_v9  ;;  %v2358_v46 = vpop.permute.xlu0 %2357 }
 0x6ba   : > { %2513 = vrot.lane.b32.xlu1 %v2490_v38, %s5833_s13  ;;  %v2216_v39 = vpop.permute.xlu1 %2215  ;;  %2225 = vrot.lane.b32.xlu0 %v2345_v35, %s5828_s26  ;;  %s5836_s26 = smov 3  }
 0x6bb   : > { %2237 = vst.msk [vmem:[#allocation6 + $0x10] sm:$0xff] %vm762_vm7, %v2216_v39 }
 0x6be   : > { %2413 = vrot.lane.b32.xlu0 %v2249_v29, %s5825_s17  ;;  %v2404_v49 = vpop.permute.xlu1 %2403  ;;  %3106 = vrot.lane.b32.xlu1 %v3083_v42, %s5834_s16  ;;  %s5837_s17 = smov 6  }
 0x6c2   : > { %2461 = vrot.lane.b32.xlu0 %v2297_v33, %s5826_s23  ;;  %v2452_v45 = vpop.permute.xlu1 %2451  ;;  %3154 = vrot.lane.b32.xlu1 %v3131_v43, %s5835_s25 }
 0x6c6   : > { %2509 = vrot.lane.b32.xlu0 %v2345_v35, %s5833_s13  ;;  %v2500_v47 = vpop.permute.xlu1 %2499 }
 0x6ca   : > { %2511 = vrot.lane.b32.xlu0 %v2346_v31, %s5833_s13  ;;  %s4309_s13 = scalar_lea.vmem %s4308_s30, 2048 }
 0x6ce   : > { %2852 = vrot.lane.b32.xlu0 %v2836_v48, %s5836_s26 }
 0x6cf   : > { %v2260_v50 = vpop.permute.xlu0 %2259 }
 0x6d0   : > { %v2166_v11 = vpop.permute.xlu1 %2165  ;;  %2283 = vst.msk [vmem:[#allocation6] sm:$0xff] %vm811_vm9, %v2260_v50 }
 0x6d1   : > { %2188 = vst.msk [vmem:[#allocation6 + $0x8] sm:$0xff] %vm713_vm3, %v2166_v11 }
 0x6d2   : > { %2900 = vrot.lane.b32.xlu0 %v2884_v51, %s5837_s17 }
 0x6d3   : > { %v2308_v53 = vpop.permute.xlu0 %2307 }
 0x6d4   : > { %v2214_v52 = vpop.permute.xlu1 %2213  ;;  %2331 = vst.msk [vmem:[#allocation6] sm:$0xff] %vm860_vm12, %v2308_v53 }
 0x6d5   : > { %2236 = vst.msk [vmem:[#allocation6 + $0x8] sm:$0xff] %vm762_vm7, %v2214_v52 }
 0x6d6   : > { %2284 = vst.msk [vmem:[#allocation6 + $0x8] sm:$0xff] %vm811_vm9, %v2262_v34 }
 0x6d7   : > { %2332 = vst.msk [vmem:[#allocation6 + $0x8] sm:$0xff] %vm860_vm12, %v2310_v41 }
 0x6d8   : > { %2380 = vst.msk [vmem:[#allocation6 + $0x8] sm:$0xff] %vm5838_vm0, %v2358_v46  ;;  %v2356_v54 = vpop.permute.xlu1 %2355  ;;  %v2266_v57 = vpop.permute.xlu0 %2265  ;;  %vm5843_vm0 = vcmask 957440  }
 0x6d9   : > { %2379 = vst.msk [vmem:[#allocation6] sm:$0xff] %vm5839_vm8, %v2356_v54 }
 0x6da   : > { %2427 = vst.msk [vmem:[#allocation6] sm:$0xff] %vm5840_vm13, %v2404_v49  ;;  %vm5844_vm13 = vmmov %vm5839_vm8 }
 0x6db   : > { %2475 = vst.msk [vmem:[#allocation6] sm:$0xff] %vm5841_vm14, %v2452_v45  ;;  %vm5845_vm14 = vcmask 745072  }
 0x6dc   : > { %2523 = vst.msk [vmem:[#allocation6] sm:$0xff] %vm5842_vm15, %v2500_v47  ;;  %v2314_v56 = vpop.permute.xlu1 %2313  ;;  %v2172_v62 = vpop.permute.xlu0 %2171  ;;  %vm5846_vm15 = vcmask 851672  }
 0x6dd   : > { %2191 = vst.msk [vmem:[#allocation6 + $0x20] sm:$0xff] %vm713_vm3, %v2172_v62  ;;  %vm5848_vm1 = vmmov %vm5846_vm15 }
 0x6e0   : > { %v2220_v55 = vpop.permute.xlu1 %2219  ;;  %v2362_v2 = vpop.permute.xlu0 %2361 }
 0x6e1   : > { %2239 = vst.msk [vmem:[#allocation6 + $0x20] sm:$0xff] %vm762_vm7, %v2220_v55 }
 0x6e3   : > { %v2531_v0 = vld [vmem:[#allocation6] sm:$0xff] }
 0x6e4   : > { %v2408_v17 = vpop.permute.xlu1 %2407  ;;  %3928 = vmatprep.mubr.msk.f32.mxu1 %vm5843_vm0, %v2531_v0  ;;  %v2170_v13 = vpop.permute.xlu0 %2169  ;;  %vm5847_vm0 = vmmov %vm5845_vm14 }
 0x6e5   : > { %2190 = vst.msk [vmem:[#allocation6 + $0x18] sm:$0xff] %vm713_vm3, %v2170_v13 }
 0x6e8   : > { %v2456_v40 = vpop.permute.xlu1 %2455  ;;  %v2218_v18 = vpop.permute.xlu0 %2217 }
 0x6e9   : > { %2238 = vst.msk [vmem:[#allocation6 + $0x18] sm:$0xff] %vm762_vm7, %v2218_v18 }
 0x6ea   : > { %2286 = vst.msk [vmem:[#allocation6 + $0x18] sm:$0xff] %vm811_vm9, %v2266_v57 }
 0x6eb   : > { %2334 = vst.msk [vmem:[#allocation6 + $0x18] sm:$0xff] %vm860_vm12, %v2314_v56 }
 0x6ec   : > { %v2504_v19 = vpop.permute.xlu1 %2503  ;;  %2382 = vst.msk [vmem:[#allocation6 + $0x18] sm:$0xff] %vm5844_vm13, %v2362_v2  ;;  %v2406_v20 = vpop.permute.xlu0 %2405  ;;  %vm5849_vm13 = vcmask 958272  }
 0x6ed   : > { %2428 = vst.msk [vmem:[#allocation6 + $0x8] sm:$0xff] %vm5845_vm14, %v2406_v20  ;;  %vm5850_vm14 = vmmov %vm5849_vm13  ;;  %v3702_v20 = vld [vmem:[%s5768_s2 + $0x1] ss:$0 sm:$0xff] }
 0x6f0   : > { %v2264_v1 = vpop.permute.xlu1 %2263  ;;  %v2454_v22 = vpop.permute.xlu0 %2453 }
 0x6f1   : > { %2285 = vst.msk [vmem:[#allocation6 + $0x10] sm:$0xff] %vm811_vm9, %v2264_v1 }
 0x6f2   : > { %2476 = vst.msk [vmem:[#allocation6 + $0x8] sm:$0xff] %vm5846_vm15, %v2454_v22  ;;  %vm5851_vm15 = vcmask 957440  }
 0x6f4   : > { %v2312_v8 = vpop.permute.xlu1 %2311  ;;  %v2360_v15 = vpop.permute.xlu0 %2359 }
 0x6f5   : > { %2333 = vst.msk [vmem:[#allocation6 + $0x10] sm:$0xff] %vm860_vm12, %v2312_v8 }
 0x6f6   : > { %2381 = vst.msk [vmem:[#allocation6 + $0x10] sm:$0xff] %vm5839_vm8, %v2360_v15  ;;  %vm5852_vm8 = vmmov %vm5851_vm15 }
 0x6f7   : > { %2429 = vst.msk [vmem:[#allocation6 + $0x10] sm:$0xff] %vm5847_vm0, %v2408_v17 }
 0x6f8   : > { %2477 = vst.msk [vmem:[#allocation6 + $0x10] sm:$0xff] %vm5848_vm1, %v2456_v40  ;;  %v2502_v28 = vpop.permute.xlu1 %2501  ;;  %v2270_v60 = vpop.permute.xlu0 %2269  ;;  %vm5853_vm1 = vcmask 638472  }
 0x6f9   : > { %2525 = vst.msk [vmem:[#allocation6 + $0x10] sm:$0xff] %vm5849_vm13, %v2504_v19  ;;  %vm5854_vm13 = vcmask 851672  }
 0x6fa   : > { %2524 = vst.msk [vmem:[#allocation6 + $0x8] sm:$0xff] %vm5850_vm14, %v2502_v28  ;;  %vm5855_vm14 = vmmov %vm5853_vm1 }
 0x6fc   : > { %v2318_v29 = vpop.permute.xlu1 %2317  ;;  %v2176_v21 = vpop.permute.xlu0 %2175 }
 0x6fd   : > { %2193 = vst.msk [vmem:[#allocation6 + $0x30] sm:$0xff] %vm713_vm3, %v2176_v21 }
 0x700   : > { %v2224_v30 = vpop.permute.xlu1 %2223  ;;  %v2533_v16 = vld [vmem:[#allocation6 + $0x10] sm:$0xff]  ;;  %v2366_v31 = vpop.permute.xlu0 %2365 }
 0x701   : > { %v2532_v24 = vld [vmem:[#allocation6 + $0x8] sm:$0xff]  ;;  %2241 = vst.msk [vmem:[#allocation6 + $0x30] sm:$0xff] %vm762_vm7, %v2224_v30 }
 0x702   : > { %3929 = vmatmul.mubr.msk.f32.vlgmr.msra.gmra.mrb[8].mxu1 %vm5851_vm15, %v2532_v24  ;;  %vm5856_vm15 = vmmov %vm5847_vm0 }
 0x703   : > { %3931 = vmatprep.mubr.msk.f32.mxu1 %vm5852_vm8, %v2533_v16  ;;  %vm5857_vm8 = vmmov %vm5854_vm13 }
 0x704   : > { %v2412_v32 = vpop.permute.xlu1 %2411  ;;  %v2174_v33 = vpop.permute.xlu0 %2173 }
 0x705   : > { %2192 = vst.msk [vmem:[#allocation6 + $0x28] sm:$0xff] %vm713_vm3, %v2174_v33 }
 0x708   : > { %v2460_v34 = vpop.permute.xlu1 %2459  ;;  %v2222_v35 = vpop.permute.xlu0 %2221 }
 0x709   : > { %2240 = vst.msk [vmem:[#allocation6 + $0x28] sm:$0xff] %vm762_vm7, %v2222_v35 }
 0x70a   : > { %2288 = vst.msk [vmem:[#allocation6 + $0x28] sm:$0xff] %vm811_vm9, %v2270_v60 }
 0x70b   : > { %2336 = vst.msk [vmem:[#allocation6 + $0x28] sm:$0xff] %vm860_vm12, %v2318_v29 }
 0x70c   : > { %v2508_v9 = vpop.permute.xlu1 %2507  ;;  %2384 = vst.msk [vmem:[#allocation6 + $0x28] sm:$0xff] %vm5853_vm1, %v2366_v31  ;;  %v2410_v38 = vpop.permute.xlu0 %2409  ;;  %vm5858_vm1 = vcmask 958272  }
 0x70d   : > { %2430 = vst.msk [vmem:[#allocation6 + $0x18] sm:$0xff] %vm5847_vm0, %v2410_v38  ;;  %vm5859_vm0 = vmmov %vm5858_vm1 }
 0x710   : > { %v2268_v39 = vpop.permute.xlu1 %2267  ;;  %v2458_v49 = vpop.permute.xlu0 %2457 }
 0x711   : > { %2287 = vst.msk [vmem:[#allocation6 + $0x20] sm:$0xff] %vm811_vm9, %v2268_v39 }
 0x712   : > { %2478 = vst.msk [vmem:[#allocation6 + $0x18] sm:$0xff] %vm5854_vm13, %v2458_v49  ;;  %vm5860_vm13 = vcmask 957440  }
 0x714   : > { %v2316_v41 = vpop.permute.xlu1 %2315  ;;  %v2364_v45 = vpop.permute.xlu0 %2363 }
 0x715   : > { %2335 = vst.msk [vmem:[#allocation6 + $0x20] sm:$0xff] %vm860_vm12, %v2316_v41 }
 0x716   : > { %2383 = vst.msk [vmem:[#allocation6 + $0x20] sm:$0xff] %vm5855_vm14, %v2364_v45  ;;  %vm5861_vm14 = vmmov %vm5860_vm13 }
 0x717   : > { %2431 = vst.msk [vmem:[#allocation6 + $0x20] sm:$0xff] %vm5856_vm15, %v2412_v32  ;;  %vm5862_vm15 = vcmask 638472  }
 0x718   : > { %2479 = vst.msk [vmem:[#allocation6 + $0x20] sm:$0xff] %vm5857_vm8, %v2460_v34  ;;  %v2506_v42 = vpop.permute.xlu1 %2505  ;;  %v2274_v43 = vpop.permute.xlu0 %2273  ;;  %vm5863_vm8 = vcmask 745072  }
 0x719   : > { %2527 = vst.msk [vmem:[#allocation6 + $0x20] sm:$0xff] %vm5858_vm1, %v2508_v9  ;;  %vm5864_vm1 = vcmask 851672  }
 0x71a   : > { %2526 = vst.msk [vmem:[#allocation6 + $0x18] sm:$0xff] %vm5859_vm0, %v2506_v42  ;;  %vm5865_vm0 = vmmov %vm5862_vm15 }
 0x71c   : > { %v2370_v46 = vpop.permute.xlu1 %2369  ;;  %v2322_v47 = vpop.permute.xlu0 %2321 }
 0x720   : > { %v2272_v48 = vpop.permute.xlu1 %2271  ;;  %v2535_v50 = vld [vmem:[#allocation6 + $0x20] sm:$0xff]  ;;  %v2416_v51 = vpop.permute.xlu0 %2415 }
 0x721   : > { %v2534_v11 = vld [vmem:[#allocation6 + $0x18] sm:$0xff]  ;;  %2289 = vst.msk [vmem:[#allocation6 + $0x30] sm:$0xff] %vm811_vm9, %v2272_v48 }
 0x722   : > { %3932 = vmatmul.mubr.msk.f32.gmra.mrb[10].mxu1 %vm5860_vm13, %v2534_v11  ;;  %vm5866_vm13 = vmmov %vm5863_vm8 }
 0x723   : > { %3934 = vmatprep.mubr.msk.f32.mxu1 %vm5861_vm14, %v2535_v50  ;;  %vm5867_vm14 = vmmov %vm5863_vm8 }
 0x724   : > { %v2320_v52 = vpop.permute.xlu1 %2319  ;;  %v2464_v53 = vpop.permute.xlu0 %2463 }
 0x725   : > { %2337 = vst.msk [vmem:[#allocation6 + $0x30] sm:$0xff] %vm860_vm12, %v2320_v52 }
 0x728   : > { %v2368_v54 = vpop.permute.xlu1 %2367  ;;  %v2178_v57 = vpop.permute.xlu0 %2177 }
 0x729   : > { %2385 = vst.msk [vmem:[#allocation6 + $0x30] sm:$0xff] %vm5862_vm15, %v2368_v54  ;;  %vm5869_vm15 = vcmask 958272  }
 0x72a   : > { %2433 = vst.msk [vmem:[#allocation6 + $0x30] sm:$0xff] %vm5863_vm8, %v2416_v51  ;;  %vm5873_vm8 = vcmask 957440  }
 0x72b   : > { %2194 = vst.msk [vmem:[#allocation6 + $0x38] sm:$0xff] %vm713_vm3, %v2178_v57  ;;  %vm5868_vm3 = vmmov %vm5864_vm1 }
 0x72c   : > { %2481 = vst.msk [vmem:[#allocation6 + $0x30] sm:$0xff] %vm5864_vm1, %v2464_v53  ;;  %v2226_v56 = vpop.permute.xlu0 %2225  ;;  %v2514_v55 = vpop.permute.xlu1 %2513 }
 0x72d   : > { %2242 = vst.msk [vmem:[#allocation6 + $0x38] sm:$0xff] %vm762_vm7, %v2226_v56  ;;  %vm5870_vm7 = vmmov %vm5864_vm1 }
 0x72e   : > { %2290 = vst.msk [vmem:[#allocation6 + $0x38] sm:$0xff] %vm811_vm9, %v2274_v43  ;;  %vm5871_vm9 = vmmov %vm5869_vm15 }
 0x72f   : > { %2338 = vst.msk [vmem:[#allocation6 + $0x38] sm:$0xff] %vm860_vm12, %v2322_v47  ;;  %vm5872_vm12 = vmmov %vm5871_vm9 }
 0x730   : > { %2386 = vst.msk [vmem:[#allocation6 + $0x38] sm:$0xff] %vm5865_vm0, %v2370_v46  ;;  %v2414_v62 = vpop.permute.xlu0 %2413  ;;  %vm5874_vm1 = vmmov %vm5873_vm8  ;;  %v5457_v56 = vpop.permute.xlu1 %3106 }
 0x731   : > { %2432 = vst.msk [vmem:[#allocation6 + $0x28] sm:$0xff] %vm5866_vm13, %v2414_v62  ;;  %vm5875_vm0 = vmmov %vm5874_vm1  ;;  %vm5876_vm13 = vcmask 23552  }
 0x732   : > { %2434 = vst.msk [vmem:[#allocation6 + $0x38] sm:$0xff] %vm5867_vm14, %v5207_v58  ;;  %v2820_v58 = vld [vmem:[#allocation3] sm:$0xff]  ;;  %vm5877_vm14 = vmmov %vm5876_vm13 }
 0x733   : > { %2482 = vst.msk [vmem:[#allocation6 + $0x38] sm:$0xff] %vm5868_vm3, %v5211_v61  ;;  %vm5878_vm3 = vmmov %vm5876_vm13 }
 0x734   : > { %2530 = vst.msk [vmem:[#allocation6 + $0x38] sm:$0xff] %vm5869_vm15, %v2514_v55  ;;  %v2462_v2 = vpop.permute.xlu0 %2461  ;;  %vm5879_vm15 = vmmov %vm5878_vm3 }
 0x735   : > { %2480 = vst.msk [vmem:[#allocation6 + $0x28] sm:$0xff] %vm5870_vm7, %v2462_v2  ;;  %v5459_v2 = vpop.permute.xlu1 %3154  ;;  %vm5880_vm7 = vmmov %vm5878_vm3 }
 0x736   : > { %2828 = vst.msk [vmem:[#allocation5] sm:$0xff] %vm5876_vm13, %v2820_v58 }
 0x738   : > { %v2510_v0 = vpop.permute.xlu0 %2509 }
 0x739   : > { %2528 = vst.msk [vmem:[#allocation6 + $0x28] sm:$0xff] %vm5871_vm9, %v2510_v0  ;;  %vm5883_vm9 = vmmov %vm5878_vm3 }
 0x73b   : > { %v2538_v40 = vld [vmem:[#allocation6 + $0x38] sm:$0xff] }
 0x73c   : > { %v2512_v17 = vpop.permute.xlu0 %2511 }
 0x73d   : > { %2529 = vst.msk [vmem:[#allocation6 + $0x30] sm:$0xff] %vm5872_vm12, %v2512_v17  ;;  %vm5884_vm12 = vmmov %vm5878_vm3 }
 0x740   : > { %v2536_v13 = vld [vmem:[#allocation6 + $0x28] sm:$0xff]  ;;  %v2853_v61 = vpop.permute.xlu0 %2852 }
 0x741   : > { %3935 = vmatmul.mubr.msk.f32.gmra.mrb[12].mxu1 %vm5873_vm8, %v2536_v13  ;;  %2876 = vst.msk [vmem:[#allocation5] sm:$0xff] %vm1412_vm4, %v2853_v61  ;;  %vm5887_vm8 = vmmov %vm5878_vm3 }
 0x744   : > { %v2537_v18 = vld [vmem:[#allocation6 + $0x30] sm:$0xff]  ;;  %v2901_v19 = vpop.permute.xlu0 %2900 }
 0x745   : > { %3937 = vmatprep.mubr.msk.f32.mxu1 %vm5874_vm1, %v2537_v18  ;;  %2924 = vst.msk [vmem:[#allocation5] sm:$0xff] %vm1461_vm5, %v2901_v19  ;;  %vm5888_vm1 = vmmov %vm5878_vm3 }
 0x746   : > { %3938 = vmatmul.mubr.msk.f32.gmra.mrb[14].mxu1 %vm5875_vm0, %v2538_v40  ;;  %vm5889_vm0 = vmmov %vm5888_vm1 }
 0x747   : > { %vm5890_vm13 = vmmov %vm5889_vm0 }
 0x7d5   : > { %v3930_v1 = vpop.f32.mrb[8].mxu1 }
 0x7d6   : > { %v2644_v22 = vadd.f32 %v3930_v1, %v3702_v20  ;;  %v2638_v8 = vpop.f32.mrb[9].mxu1 }
 0x7d7   : > { %v2639_v15 = vadd.f32 %v3702_v20, %v2638_v8 }
 0x7d8   : > { %2775 = vrot.lane.b32.xlu1 %v2644_v22, %s5829_s6  ;;  %v3713_v30 = vmul.f32 -1.442695, %v2644_v22 }
 0x7d9   : > { %2773 = vrot.lane.b32.xlu0 %v2639_v15, %s5829_s6  ;;  %v3712_v24 = vmul.f32 -1.442695, %v2639_v15 }
 0x7da   : > { %4199 = vpow2.f32 %v3713_v30 }
 0x7db   : > { %4201 = vpow2.f32 %v3712_v24 }
 0x7e4   : > { %v4200_v35 = vpop.eup %4199 }
 0x7e5   : > { %v4202_v39 = vpop.eup %4201  ;;  %v2702_v41 = vadd.f32 1.0, %v4200_v35 }
 0x7e6   : > { %v2701_v45 = vadd.f32 1.0, %v4202_v39 }
 0x7e7   : > { %4203 = vrcp.f32 %v2702_v41 }
 0x7e8   : > { %4205 = vrcp.f32 %v2701_v45 }
 0x7f1   : > { %v4204_v42 = vpop.eup %4203 }
 0x7f2   : > { %v4206_v43 = vpop.eup %4205  ;;  %v2726_v48 = vmul.f32 2.0, %v4204_v42 }
 0x7f3   : > { %v2725_v11 = vmul.f32 2.0, %v4206_v43 }
 0x7f4   : > { %v3721_v50 = vadd.f32 -1.0, %v2726_v48 }
 0x7f5   : > { %v3933_v28 = vpop.f32.mrb[10].mxu1  ;;  %v3720_v51 = vadd.f32 -1.0, %v2725_v11 }
 0x7f6   : > { %v2654_v60 = vadd.f32 %v3933_v28, %v3702_v20  ;;  %v2648_v29 = vpop.f32.mrb[11].mxu1  ;;  %v2743_v52 = vmul.f32 1.442695, %v3721_v50 }
 0x7f7   : > { %v2649_v21 = vadd.f32 %v3702_v20, %v2648_v29  ;;  %v2741_v53 = vmul.f32 1.442695, %v3720_v51 }
 0x7f8   : > { %2779 = vrot.lane.b32.xlu1 %v2654_v60, %s5829_s6  ;;  %v3715_v46 = vmul.f32 -1.442695, %v2654_v60 }
 0x7f9   : > { %2777 = vrot.lane.b32.xlu0 %v2649_v21, %s5829_s6  ;;  %v3714_v47 = vmul.f32 -1.442695, %v2649_v21 }
 0x7fa   : > { %4207 = vpow2.f32 %v3715_v46 }
 0x7fb   : > { %4209 = vpow2.f32 %v3714_v47 }
 0x7fc   : > { %4211 = vpow2.f32 %v2743_v52 }
 0x7fd   : > { %4213 = vpow2.f32 %v2741_v53 }
 0x804   : > { %v4208_v54 = vpop.eup %4207 }
 0x805   : > { %v4210_v57 = vpop.eup %4209  ;;  %v2704_v62 = vadd.f32 1.0, %v4208_v54 }
 0x806   : > { %v2703_v55 = vadd.f32 1.0, %v4210_v57  ;;  %v4212_v0 = vpop.eup %4211 }
 0x807   : > { %4215 = vrcp.f32 %v2704_v62  ;;  %v4214_v17 = vpop.eup %4213  ;;  %v2758_v13 = vmul.f32 %v4212_v0, %v4964_v3 }
 0x808   : > { %4217 = vrcp.f32 %v2703_v55  ;;  %v2757_v18 = vmul.f32 %v4214_v17, %v4966_v5 }
 0x814   : > { %v3936_v16 = vpop.f32.mrb[12].mxu1 }
 0x815   : > { %v2664_v31 = vadd.f32 %v3936_v16, %v3702_v20  ;;  %v2658_v32 = vpop.f32.mrb[13].mxu1 }
 0x816   : > { %v2659_v33 = vadd.f32 %v3702_v20, %v2658_v32 }
 0x817   : > { %2783 = vrot.lane.b32.xlu0 %v2664_v31, %s5829_s6  ;;  %v3717_v3 = vmul.f32 -1.442695, %v2664_v31 }
 0x818   : > { %2781 = vrot.lane.b32.xlu1 %v2659_v33, %s5829_s6  ;;  %v3716_v5 = vmul.f32 -1.442695, %v2659_v33 }
 0x819   : > { %v3939_v34 = vpop.f32.mrb[14].mxu1  ;;  %4219 = vpow2.f32 %v3717_v3 }
 0x81a   : > { %v2674_v9 = vadd.f32 %v3939_v34, %v3702_v20  ;;  %v2668_v38 = vpop.f32.mrb[15].mxu1  ;;  %4221 = vpow2.f32 %v3716_v5 }
 0x81b   : > { %v2669_v49 = vadd.f32 %v3702_v20, %v2668_v38  ;;  %v4216_v20 = vpop.eup %4215 }
 0x81c   : > { %2787 = vrot.lane.b32.xlu1 %v2674_v9, %s5829_s6  ;;  %v4218_v1 = vpop.eup %4217  ;;  %v2728_v22 = vmul.f32 2.0, %v4216_v20  ;;  %v3719_v28 = vmul.f32 -1.442695, %v2674_v9 }
 0x81d   : > { %2785 = vrot.lane.b32.xlu0 %v2669_v49, %s5829_s6  ;;  %s215_s6 = sand.u32 1, %s4357_s19   ;;  %v2727_v8 = vmul.f32 2.0, %v4218_v1  ;;  %v3718_v30 = vmul.f32 -1.442695, %v2669_v49 }
 0x81e   : > { %s3623_s11 = sshll.u32 %s215_s6, 6  ;;  %v3723_v15 = vadd.f32 -1.0, %v2728_v22  ;;  %4223 = vpow2.f32 %v3719_v28 }
 0x81f   : > { %s5466_s15 = scalar_lea.vmem [#allocation7], %s3623_s11  ;;  %v3722_v21 = vadd.f32 -1.0, %v2727_v8  ;;  %4225 = vpow2.f32 %v3718_v30 }
 0x820   : > { %v2747_v16 = vmul.f32 1.442695, %v3723_v15 }
 0x821   : > { %v2745_v32 = vmul.f32 1.442695, %v3722_v21 }
 0x822   : > { %4227 = vpow2.f32 %v2747_v16 }
 0x823   : > { %v4220_v33 = vpop.eup %4219  ;;  %4229 = vpow2.f32 %v2745_v32 }
 0x824   : > { %v4222_v34 = vpop.eup %4221  ;;  %v2706_v35 = vadd.f32 1.0, %v4220_v33 }
 0x825   : > { %v2705_v38 = vadd.f32 1.0, %v4222_v34  ;;  %v3729_v34 = vld [vmem:[%s5769_s3 + $0x28] sm:$0xff] }
 0x826   : > { %4231 = vrcp.f32 %v2706_v35 }
 0x827   : > { %4233 = vrcp.f32 %v2705_v38 }
 0x828   : > { %v4224_v39 = vpop.eup %4223 }
 0x829   : > { %v4226_v49 = vpop.eup %4225  ;;  %v2708_v41 = vadd.f32 1.0, %v4224_v39 }
 0x82a   : > { %v2707_v42 = vadd.f32 1.0, %v4226_v49 }
 0x82b   : > { %4235 = vrcp.f32 %v2708_v41 }
 0x82c   : > { %v4228_v45 = vpop.eup %4227  ;;  %4237 = vrcp.f32 %v2707_v42 }
 0x82d   : > { %v4230_v43 = vpop.eup %4229  ;;  %v2760_v46 = vmul.f32 %v4228_v45, %v4986_v36 }
 0x82e   : > { %v2759_v48 = vmul.f32 %v4230_v43, %v4988_v37 }
 0x830   : > { %v4232_v52 = vpop.eup %4231 }
 0x831   : > { %v4234_v53 = vpop.eup %4233  ;;  %v2730_v54 = vmul.f32 2.0, %v4232_v52 }
 0x832   : > { %v2729_v37 = vmul.f32 2.0, %v4234_v53 }
 0x833   : > { %v3725_v0 = vadd.f32 -1.0, %v2730_v54 }
 0x835   : > { %v4236_v57 = vpop.eup %4235 }
 0x836   : > { %v4238_v62 = vpop.eup %4237 }
 0x84a   : > { %v2776_v40 = vpop.permute.xlu1 %2775 }
 0x84b   : > { %v2798_v58 = vadd.f32 %v2776_v40, %v2758_v13  ;;  %v2774_v61 = vpop.permute.xlu0 %2773  ;;  %v3724_v13 = vadd.f32 -1.0, %v2729_v37  ;;  %v2732_v40 = vmul.f32 2.0, %v4236_v57 }
 0x84c   : > { %v2797_v19 = vadd.f32 %v2774_v61, %v2757_v18  ;;  %v2731_v18 = vmul.f32 2.0, %v4238_v62 }
 0x84d   : > { %3527 = vst.msk [vmem:[%s5466_s15 + $0x8] sm:$0xff] %vm5877_vm14, %v2798_v58  ;;  %vm5891_vm14 = vmmov %vm5889_vm0  ;;  %v2749_v20 = vmul.f32 1.442695, %v3724_v13  ;;  %v3727_v1 = vadd.f32 -1.0, %v2732_v40 }
 0x84e   : > { %2806 = vst.msk [vmem:[#allocation3 + $0x21] sm:$0xff] %vm5878_vm3, %v2798_v58  ;;  %vm5892_vm3 = vmmov %vm5889_vm0  ;;  %v3726_v3 = vadd.f32 -1.0, %v2731_v18 }
 0x84f   : > { %3526 = vst.msk [vmem:[%s5466_s15] sm:$0xff] %vm5879_vm15, %v2797_v19  ;;  %v2755_v22 = vmul.f32 1.442695, %v3727_v1  ;;  %vm5893_vm15 = vmmov %vm5889_vm0 }
 0x850   : > { %2805 = vst.msk [vmem:[#allocation3 + $0x11] sm:$0xff] %vm5880_vm7, %v2797_v19  ;;  %v2751_v19 = vmul.f32 1.442695, %v3725_v0  ;;  %v2753_v5 = vmul.f32 1.442695, %v3726_v3  ;;  %vm5894_vm7 = vmmov %vm5889_vm0 }
 0x852   : > { %4239 = vpow2.f32 %v2751_v19 }
 0x853   : > { %4241 = vpow2.f32 %v2749_v20 }
 0x854   : > { %4243 = vpow2.f32 %v2755_v22 }
 0x855   : > { %v2933_v60 = vld [vmem:[#allocation3 + $0x20] sm:$0xff]  ;;  %4245 = vpow2.f32 %v2753_v5 }
 0x856   : > { %v2981_v29 = vld [vmem:[#allocation3 + $0x21] sm:$0xff]  ;;  %2950 = vrot.lane.b32.xlu1 %v2933_v60, %s5881_s12  ;;  %2830 = vst.msk [vmem:[#allocation5 + $0x10] sm:$0xff] %vm5883_vm9, %v2933_v60  ;;  %vm5895_vm9 = vmmov %vm5889_vm0 }
 0x857   : > { %2998 = vrot.lane.b32.xlu0 %v2981_v29, %s5882_s10  ;;  %v2932_v24 = vld [vmem:[#allocation3 + $0x10] sm:$0xff]  ;;  %v3029_v31 = vld [vmem:[#allocation3 + $0x22] sm:$0xff] }
 0x858   : > { %2829 = vst.msk [vmem:[#allocation5 + $0x8] sm:$0xff] %vm5884_vm12, %v2932_v24  ;;  %v2980_v9 = vld [vmem:[#allocation3 + $0x11] sm:$0xff]  ;;  %vm5896_vm12 = vmmov %vm5889_vm0 }
 0x859   : > { %v2885_v36 = vld [vmem:[#allocation3 + $0x12] sm:$0xff] }
 0x85a   : > { %2856 = vrot.lane.b32.xlu1 %v2981_v29, %s5836_s26 }
 0x85b   : > { %3046 = vrot.lane.b32.xlu0 %v3029_v31, %s5885_s7 }
 0x85c   : > { %v4240_v15 = vpop.eup %4239 }
 0x85d   : > { %v4242_v28 = vpop.eup %4241 }
 0x85e   : > { %2904 = vrot.lane.b32.xlu1 %v3029_v31, %s5837_s17  ;;  %v2761_v30 = vmul.f32 %v4242_v28, %v5014_v10  ;;  %v3728_v10 = vld [vmem:[%s5769_s3 + $0x20] sm:$0xff] }
 0x85f   : > { %2948 = vrot.lane.b32.xlu0 %v2932_v24, %s5881_s12  ;;  %v4244_v24 = vpop.eup %4243  ;;  %v4026_v38 = vpack.c.bf16 %v3729_v34, %v3728_v10 }
 0x860   : > { %v4246_v32 = vpop.eup %4245 }
 0x861   : > { %4027 = vmatprep.subr.bf16.mxu0 %v4026_v38  ;;  %4036 = vmatprep.subr.bf16.mxu1 %v4026_v38 }
 0x862   : > { %3092 = vrot.lane.b32.xlu1 %v2933_v60, %s5834_s16  ;;  %4029 = vmatpush3.bf16.msra.mxu0 %v4026_v38 }
 0x863   : > { %2996 = vrot.lane.b32.xlu0 %v2980_v9, %s5882_s10  ;;  %4038 = vmatpush3.bf16.msra.mxu1 %v4026_v38 }
 0x866   : > { %3140 = vrot.lane.b32.xlu1 %v2981_v29, %s5835_s25  ;;  %v2762_v29 = vmul.f32 %v4240_v15, %v5012_v4  ;;  %v2764_v4 = vmul.f32 %v4244_v24, %v5050_v26  ;;  %v3730_v26 = vld [vmem:[%s5769_s3 + $0x30] sm:$0xff] }
 0x86a   : > { %3188 = vrot.lane.b32.xlu1 %v3029_v31, %s5886_s8  ;;  %v2780_v47 = vpop.permute.xlu1 %2779 }
 0x86b   : > { %v2800_v11 = vadd.f32 %v2780_v47, %v2760_v46  ;;  %v2778_v50 = vpop.permute.xlu0 %2777 }
 0x86c   : > { %v2799_v51 = vadd.f32 %v2778_v50, %v2759_v48 }
 0x86d   : > { %3529 = vst.msk [vmem:[%s5466_s15 + $0x18] sm:$0xff] %vm5887_vm8, %v2800_v11  ;;  %vm5897_vm8 = vmmov %vm5889_vm0 }
 0x86e   : > { %2808 = vst.msk [vmem:[#allocation3 + $0x41] sm:$0xff] %vm5888_vm1, %v2800_v11  ;;  %2854 = vrot.lane.b32.xlu1 %v2980_v9, %s5836_s26  ;;  %v2763_v9 = vmul.f32 %v4246_v32, %v5054_v7  ;;  %vm5898_vm1 = vmmov %vm5889_vm0  ;;  %v3731_v7 = vld [vmem:[%s5769_s3 + $0x38] sm:$0x7] }
 0x86f   : > { %3528 = vst.msk [vmem:[%s5466_s15 + $0x10] sm:$0xff] %vm5889_vm0, %v2799_v51  ;;  %v4030_v45 = vpack.c.bf16 %v3731_v7, %v3730_v26 }
 0x870   : > { %2807 = vst.msk [vmem:[#allocation3 + $0x31] sm:$0xff] %vm5890_vm13, %v2799_v51  ;;  %vm5899_vm13 = vmmov %vm5889_vm0 }
 0x871   : > { %4032 = vmatprep.subr.msk.bf16.mxu0 %vm5045_vm2, %v4030_v45  ;;  %4037 = vmatprep.subr.msk.bf16.mxu1 %vm5045_vm2, %v4030_v45 }
 0x872   : > { %2902 = vrot.lane.b32.xlu1 %v2885_v36, %s5837_s17  ;;  %4035 = vmatpush3.bf16.msk.msra.mxu0 %vm5045_vm2, %v4030_v45 }
 0x873   : > { %4039 = vmatpush3.bf16.msk.msra.mxu1 %vm5045_vm2, %v4030_v45  ;;  %vm5903_vm2 = vcmask 171152  }
 0x875   : > { %v2935_v55 = vld [vmem:[#allocation3 + $0x40] sm:$0xff] }
 0x876   : > { %2954 = vrot.lane.b32.xlu0 %v2935_v55, %s5881_s12  ;;  %3044 = vrot.lane.b32.xlu1 %v2885_v36, %s5885_s7  ;;  %2832 = vst.msk [vmem:[#allocation5 + $0x20] sm:$0xff] %vm5891_vm14, %v2935_v55  ;;  %v2840_v58 = vld [vmem:[#allocation3 + $0x41] sm:$0xff]  ;;  %vm5900_vm14 = vmmov %vm5889_vm0 }
 0x877   : > { %v5498_v17 = vld [vmem:[#allocation3 + $0x30] sm:$0xff]  ;;  %v2888_v61 = vld [vmem:[#allocation3 + $0x42] sm:$0xff] }
 0x878   : > { %2831 = vst.msk [vmem:[#allocation5 + $0x18] sm:$0xff] %vm5892_vm3, %v5498_v17  ;;  %v2982_v8 = vld [vmem:[#allocation3 + $0x31] sm:$0xff]  ;;  %vm5901_vm3 = vmmov %vm5889_vm0 }
 0x879   : > { %v3030_v60 = vld [vmem:[#allocation3 + $0x32] sm:$0xff] }
 0x87a   : > { %2860 = vrot.lane.b32.xlu0 %v2840_v58, %s5836_s26  ;;  %2908 = vrot.lane.b32.xlu1 %v2888_v61, %s5837_s17 }
 0x87e   : > { %3002 = vrot.lane.b32.xlu0 %v2840_v58, %s5882_s10  ;;  %3050 = vrot.lane.b32.xlu1 %v2888_v61, %s5885_s7 }
 0x882   : > { %3096 = vrot.lane.b32.xlu0 %v2935_v55, %s5834_s16  ;;  %2952 = vrot.lane.b32.xlu1 %v5498_v17, %s5881_s12 }
 0x886   : > { %3144 = vrot.lane.b32.xlu0 %v2840_v58, %s5835_s25  ;;  %3000 = vrot.lane.b32.xlu1 %v2982_v8, %s5882_s10 }
 0x889   : > { %v2784_v21 = vpop.permute.xlu0 %2783 }
 0x88a   : > { %3192 = vrot.lane.b32.xlu0 %v2888_v61, %s5886_s8  ;;  %3048 = vrot.lane.b32.xlu1 %v3030_v60, %s5885_s7  ;;  %v2802_v16 = vadd.f32 %v2784_v21, %v2762_v29  ;;  %v2782_v31 = vpop.permute.xlu1 %2781 }
 0x88b   : > { %v2801_v33 = vadd.f32 %v2782_v31, %v2761_v30 }
 0x88c   : > { %3531 = vst.msk [vmem:[%s5466_s15 + $0x28] sm:$0xff] %vm5893_vm15, %v2802_v16  ;;  %vm5902_vm15 = vmmov %vm5889_vm0 }
 0x88d   : > { %2810 = vst.msk [vmem:[#allocation3 + $0x61] sm:$0xff] %vm5894_vm7, %v2802_v16  ;;  %vm5904_vm7 = vcmask 195752  }
 0x88e   : > { %2858 = vrot.lane.b32.xlu0 %v2982_v8, %s5836_s26  ;;  %3530 = vst.msk [vmem:[%s5466_s15 + $0x20] sm:$0xff] %vm5895_vm9, %v2801_v33  ;;  %v2788_v35 = vpop.permute.xlu1 %2787  ;;  %vm5905_vm9 = vcmask 220352  }
 0x88f   : > { %2809 = vst.msk [vmem:[#allocation3 + $0x51] sm:$0xff] %vm5896_vm12, %v2801_v33  ;;  %v2804_v39 = vadd.f32 %v2788_v35, %v2764_v4  ;;  %v2786_v49 = vpop.permute.xlu0 %2785  ;;  %vm5906_vm12 = vcmask 220160  }
 0x890   : > { %v2803_v41 = vadd.f32 %v2786_v49, %v2763_v9 }
 0x891   : > { %3533 = vst.msk [vmem:[%s5466_s15 + $0x38] sm:$0xff] %vm5897_vm8, %v2804_v39  ;;  %vm5907_vm8 = vmmov %vm5903_vm2 }
 0x892   : > { %2906 = vrot.lane.b32.xlu0 %v3030_v60, %s5837_s17  ;;  %2812 = vst.msk [vmem:[#allocation3 + $0x81] sm:$0xff] %vm5898_vm1, %v2804_v39  ;;  %vm5908_vm1 = vmmov %vm5904_vm7 }
 0x893   : > { %3532 = vst.msk [vmem:[%s5466_s15 + $0x30] sm:$0xff] %vm5889_vm0, %v2803_v41  ;;  %vm5909_vm0 = vmmov %vm5905_vm9 }
 0x894   : > { %2811 = vst.msk [vmem:[#allocation3 + $0x71] sm:$0xff] %vm5899_vm13, %v2803_v41  ;;  %v2842_v42 = vld [vmem:[#allocation3 + $0x61] sm:$0xff]  ;;  %vm5910_vm13 = vmmov %vm5903_vm2 }
 0x895   : > { %v2937_v43 = vld [vmem:[#allocation3 + $0x60] sm:$0xff]  ;;  %2864 = vrot.lane.b32.xlu1 %v2842_v42, %s5836_s26 }
 0x896   : > { %3094 = vrot.lane.b32.xlu0 %v5498_v17, %s5834_s16  ;;  %v2936_v46 = vld [vmem:[#allocation3 + $0x50] sm:$0xff]  ;;  %2834 = vst.msk [vmem:[#allocation5 + $0x30] sm:$0xff] %vm5900_vm14, %v2937_v43  ;;  %v2890_v48 = vld [vmem:[#allocation3 + $0x62] sm:$0xff]  ;;  %vm5911_vm14 = vmmov %vm5908_vm1 }
 0x897   : > { %2833 = vst.msk [vmem:[#allocation5 + $0x28] sm:$0xff] %vm5901_vm3, %v2936_v46  ;;  %v2841_v11 = vld [vmem:[#allocation3 + $0x51] sm:$0xff]  ;;  %vm5912_vm3 = vmmov %vm5909_vm0 }
 0x898   : > { %v2889_v25 = vld [vmem:[#allocation3 + $0x52] sm:$0xff] }
 0x899   : > { %2958 = vrot.lane.b32.xlu1 %v2937_v43, %s5881_s12  ;;  %v2939_v50 = vld [vmem:[#allocation3 + $0x80] sm:$0xff]  ;;  %v3179_v17 = vld [vmem:[#allocation3 + $0x92] sm:$0xff] }
 0x89a   : > { %3142 = vrot.lane.b32.xlu0 %v2982_v8, %s5835_s25  ;;  %v2987_v51 = vld [vmem:[#allocation3 + $0x81] sm:$0xff] }
 0x89b   : > { %v2938_v47 = vld [vmem:[#allocation3 + $0x70] sm:$0xff]  ;;  %v3035_v36 = vld [vmem:[#allocation3 + $0x82] sm:$0xff] }
 0x89c   : > { %2835 = vst.msk [vmem:[#allocation5 + $0x38] sm:$0xff] %vm5902_vm15, %v2938_v47  ;;  %v2843_v52 = vld [vmem:[#allocation3 + $0x71] sm:$0xff]  ;;  %vm5913_vm15 = vmmov %vm5906_vm12 }
 0x89d   : > { %3006 = vrot.lane.b32.xlu1 %v2842_v42, %s5882_s10  ;;  %v2891_v53 = vld [vmem:[#allocation3 + $0x72] sm:$0xff] }
 0x89e   : > { %3190 = vrot.lane.b32.xlu0 %v3030_v60, %s5886_s8 }
 0x8a1   : > { %2862 = vrot.lane.b32.xlu1 %v2841_v11, %s5836_s26 }
 0x8a2   : > { %2912 = vrot.lane.b32.xlu0 %v2890_v48, %s5837_s17 }
 0x8a5   : > { %2910 = vrot.lane.b32.xlu1 %v2889_v25, %s5837_s17 }
 0x8a6   : > { %3054 = vrot.lane.b32.xlu0 %v2890_v48, %s5885_s7 }
 0x8a9   : > { %2956 = vrot.lane.b32.xlu1 %v2936_v46, %s5881_s12 }
 0x8aa   : > { %3100 = vrot.lane.b32.xlu0 %v2937_v43, %s5834_s16 }
 0x8ad   : > { %3098 = vrot.lane.b32.xlu1 %v2936_v46, %s5834_s16 }
 0x8ae   : > { %3148 = vrot.lane.b32.xlu0 %v2842_v42, %s5835_s25 }
 0x8b1   : > { %3004 = vrot.lane.b32.xlu1 %v2841_v11, %s5882_s10 }
 0x8b2   : > { %3196 = vrot.lane.b32.xlu0 %v2890_v48, %s5886_s8 }
 0x8b5   : > { %3146 = vrot.lane.b32.xlu1 %v2841_v11, %s5835_s25 }
 0x8b6   : > { %2962 = vrot.lane.b32.xlu0 %v2939_v50, %s5881_s12 }
 0x8b9   : > { %3052 = vrot.lane.b32.xlu1 %v2889_v25, %s5885_s7 }
 0x8ba   : > { %3010 = vrot.lane.b32.xlu0 %v2987_v51, %s5882_s10 }
 0x8bd   : > { %3194 = vrot.lane.b32.xlu1 %v2889_v25, %s5886_s8 }
 0x8be   : > { %2866 = vrot.lane.b32.xlu0 %v2843_v52, %s5836_s26 }
 0x8c1   : > { %3058 = vrot.lane.b32.xlu1 %v3035_v36, %s5885_s7 }
 0x8c2   : > { %2914 = vrot.lane.b32.xlu0 %v2891_v53, %s5837_s17  ;;  %s5934_s17 = smov 118  }
 0x8c5   : > { %3104 = vrot.lane.b32.xlu1 %v2939_v50, %s5834_s16 }
 0x8c6   : > { %2960 = vrot.lane.b32.xlu0 %v2938_v47, %s5881_s12  ;;  %s3557_s12 = sshll.u32 %s5466_s15, 4  ;;  %s5716_s12 = int_to_ptr.vmem [resolvable:$true] %s3557_s12 }
 0x8c7   : > { %s4303_s9 = scalar_lea.vmem %s5716_s12, 1024  ;;  %p4310_p0 = scmp.lt.s32.totalorder %s5716_s12, %s4308_s30 }
 0x8c8   : > { %v2951_v54 = vpop.permute.xlu1 %2950  ;;  %p4304_p11 = scmp.ne.s32.totalorder %s5716_s12, %s4303_s9  ;;  %p4311_p1 = scmp.lt.s32.totalorder %s4309_s13, %s4303_s9 }
 0x8c9   : > { %v2999_v37 = vpop.permute.xlu0 %2998  ;;  %3152 = vrot.lane.b32.xlu1 %v2987_v51, %s5835_s25 }
 0x8ca   : > { %3008 = vrot.lane.b32.xlu0 %v2843_v52, %s5882_s10  ;;  %p4305_p12 = pnand %p4304_p11, %p4460_p5  ;;  %p4312_p2 = por %p4311_p1, %p4310_p0 }
 0x8cc   : > { %v2857_v57 = vpop.permute.xlu1 %2856  ;;  %p4306_p13 = pneg %p4305_p12 }
 0x8cd   : > { %v3047_v62 = vpop.permute.xlu0 %3046  ;;  %2878 = vst.msk [vmem:[#allocation5 + $0x10] sm:$0xff] %vm1412_vm4, %v2857_v57  ;;  %3200 = vrot.lane.b32.xlu1 %v3035_v36, %s5886_s8 }
 0x8ce   : > { %3056 = vrot.lane.b32.xlu0 %v2891_v53, %s5885_s7  ;;  %p4313_p3 = pnand %p4312_p2, %p4306_p13 }
 0x8d0   : > { %v2905_v55 = vpop.permute.xlu1 %2904 }
 0x8d1   : > { %v2949_v0 = vpop.permute.xlu0 %2948  ;;  %2926 = vst.msk [vmem:[#allocation5 + $0x10] sm:$0xff] %vm1461_vm5, %v2905_v55  ;;  %3202 = vrot.lane.b32.xlu1 %v3179_v17, %s5886_s8 }
 0x8d2   : > { %2972 = vst.msk [vmem:[#allocation5] sm:$0xff] %vm1510_vm6, %v2949_v0  ;;  %3102 = vrot.lane.b32.xlu0 %v2938_v47, %s5834_s16 }
 0x8d4   : > { %v3093_v13 = vpop.permute.xlu1 %3092 }
 0x8d5   : > { %v2997_v40 = vpop.permute.xlu0 %2996 }
 0x8d6   : > { %3020 = vst.msk [vmem:[#allocation5] sm:$0xff] %vm1559_vm11, %v2997_v40  ;;  %3150 = vrot.lane.b32.xlu0 %v2843_v52, %s5835_s25 }
 0x8d8   : > { %v3141_v18 = vpop.permute.xlu1 %3140 }
 0x8da   : > { %3198 = vrot.lane.b32.xlu0 %v2891_v53, %s5886_s8 }
 0x8dc   : > { %v3189_v58 = vpop.permute.xlu1 %3188 }
 0x8e0   : > { %v2855_v61 = vpop.permute.xlu1 %2854 }
 0x8e1   : > { %2877 = vst.msk [vmem:[#allocation5 + $0x8] sm:$0xff] %vm1412_vm4, %v2855_v61 }
 0x8e4   : > { %v2903_v19 = vpop.permute.xlu1 %2902 }
 0x8e5   : > { %2925 = vst.msk [vmem:[#allocation5 + $0x8] sm:$0xff] %vm1461_vm5, %v2903_v19 }
 0x8e6   : > { %2973 = vst.msk [vmem:[#allocation5 + $0x8] sm:$0xff] %vm1510_vm6, %v2951_v54 }
 0x8e7   : > { %3021 = vst.msk [vmem:[#allocation5 + $0x8] sm:$0xff] %vm1559_vm11, %v2999_v37 }
 0x8e8   : > { %v3045_v20 = vpop.permute.xlu1 %3044  ;;  %3069 = vst.msk [vmem:[#allocation5 + $0x8] sm:$0xff] %vm1608_vm10, %v3047_v62  ;;  %v2955_v1 = vpop.permute.xlu0 %2954 }
 0x8e9   : > { %3068 = vst.msk [vmem:[#allocation5] sm:$0xff] %vm1608_vm10, %v3045_v20  ;;  %v3733_v20 = vld [vmem:[%s5770_s4 + $0x1] ss:$0 sm:$0xff] }
 0x8ea   : > { %3116 = vst.msk [vmem:[#allocation5] sm:$0xff] %vm5903_vm2, %v3093_v13  ;;  %vm5914_vm2 = vmmov %vm5906_vm12 }
 0x8eb   : > { %3164 = vst.msk [vmem:[#allocation5] sm:$0xff] %vm5904_vm7, %v3141_v18  ;;  %vm5915_vm7 = vmmov %vm5907_vm8 }
 0x8ec   : > { %3212 = vst.msk [vmem:[#allocation5] sm:$0xff] %vm5905_vm9, %v3189_v58  ;;  %v2909_v3 = vpop.permute.xlu1 %2908  ;;  %v2861_v22 = vpop.permute.xlu0 %2860  ;;  %vm5916_vm9 = vmmov %vm5908_vm1 }
 0x8ed   : > { %2880 = vst.msk [vmem:[#allocation5 + $0x20] sm:$0xff] %vm1412_vm4, %v2861_v22 }
 0x8ee   : > { %2928 = vst.msk [vmem:[#allocation5 + $0x20] sm:$0xff] %vm1461_vm5, %v2909_v3 }
 0x8f0   : > { %v3051_v5 = vpop.permute.xlu1 %3050  ;;  %v3003_v8 = vpop.permute.xlu0 %3002 }
 0x8f3   : > { %v3220_v15 = vld [vmem:[#allocation5] sm:$0xff] }
 0x8f4   : > { %v2953_v28 = vpop.permute.xlu1 %2952  ;;  %3948 = vmatprep.mubr.msk.f32.mxu0 %vm5906_vm12, %v3220_v15  ;;  %v3097_v60 = vpop.permute.xlu0 %3096  ;;  %vm5917_vm12 = vmmov %vm5915_vm7 }
 0x8f5   : > { %2974 = vst.msk [vmem:[#allocation5 + $0x10] sm:$0xff] %vm1510_vm6, %v2953_v28 }
 0x8f8   : > { %v3001_v29 = vpop.permute.xlu1 %3000  ;;  %v3145_v21 = vpop.permute.xlu0 %3144 }
 0x8f9   : > { %3022 = vst.msk [vmem:[#allocation5 + $0x10] sm:$0xff] %vm1559_vm11, %v3001_v29 }
 0x8fc   : > { %v3049_v30 = vpop.permute.xlu1 %3048  ;;  %v3193_v24 = vpop.permute.xlu0 %3192 }
 0x8fd   : > { %3070 = vst.msk [vmem:[#allocation5 + $0x10] sm:$0xff] %vm1608_vm10, %v3049_v30 }
 0x8fe   : > { %3118 = vst.msk [vmem:[#allocation5 + $0x10] sm:$0xff] %vm5907_vm8, %v3097_v60  ;;  %vm5918_vm8 = vmmov %vm5908_vm1 }
 0x8ff   : > { %3166 = vst.msk [vmem:[#allocation5 + $0x10] sm:$0xff] %vm5908_vm1, %v3145_v21  ;;  %vm5919_vm1 = vmmov %vm5909_vm0 }
 0x900   : > { %3214 = vst.msk [vmem:[#allocation5 + $0x10] sm:$0xff] %vm5909_vm0, %v3193_v24  ;;  %v2859_v16 = vpop.permute.xlu0 %2858 }
 0x901   : > { %2879 = vst.msk [vmem:[#allocation5 + $0x18] sm:$0xff] %vm1412_vm4, %v2859_v16 }
 0x904   : > { %v2907_v31 = vpop.permute.xlu0 %2906 }
 0x905   : > { %2927 = vst.msk [vmem:[#allocation5 + $0x18] sm:$0xff] %vm1461_vm5, %v2907_v31 }
 0x906   : > { %2975 = vst.msk [vmem:[#allocation5 + $0x18] sm:$0xff] %vm1510_vm6, %v2955_v1 }
 0x907   : > { %3023 = vst.msk [vmem:[#allocation5 + $0x18] sm:$0xff] %vm1559_vm11, %v3003_v8  ;;  %v2865_v33 = vpop.permute.xlu1 %2864  ;;  %v3222_v26 = vld [vmem:[#allocation5 + $0x10] sm:$0xff] }
 0x908   : > { %v3095_v32 = vpop.permute.xlu0 %3094  ;;  %3071 = vst.msk [vmem:[#allocation5 + $0x18] sm:$0xff] %vm1608_vm10, %v3051_v5 }
 0x909   : > { %3117 = vst.msk [vmem:[#allocation5 + $0x8] sm:$0xff] %vm5910_vm13, %v3095_v32  ;;  %vm5920_vm13 = vmmov %vm5915_vm7 }
 0x90a   : > { %2882 = vst.msk [vmem:[#allocation5 + $0x30] sm:$0xff] %vm1412_vm4, %v2865_v33 }
 0x90b   : > { %v2959_v10 = vpop.permute.xlu1 %2958 }
 0x90c   : > { %v3143_v4 = vpop.permute.xlu0 %3142 }
 0x90d   : > { %3165 = vst.msk [vmem:[#allocation5 + $0x8] sm:$0xff] %vm5911_vm14, %v3143_v4  ;;  %vm5922_vm14 = vmmov %vm5914_vm2 }
 0x90f   : > { %v3007_v35 = vpop.permute.xlu1 %3006 }
 0x910   : > { %v3191_v34 = vpop.permute.xlu0 %3190 }
 0x911   : > { %3213 = vst.msk [vmem:[#allocation5 + $0x8] sm:$0xff] %vm5912_vm3, %v3191_v34  ;;  %vm5924_vm3 = vmmov %vm5915_vm7 }
 0x913   : > { %v2863_v38 = vpop.permute.xlu1 %2862 }
 0x914   : > { %v2913_v9 = vpop.permute.xlu0 %2912  ;;  %2881 = vst.msk [vmem:[#allocation5 + $0x28] sm:$0xff] %vm1412_vm4, %v2863_v38 }
 0x915   : > { %2930 = vst.msk [vmem:[#allocation5 + $0x30] sm:$0xff] %vm1461_vm5, %v2913_v9 }
 0x917   : > { %v2911_v41 = vpop.permute.xlu1 %2910 }
 0x918   : > { %v3055_v39 = vpop.permute.xlu0 %3054  ;;  %v3221_v49 = vld [vmem:[#allocation5 + $0x8] sm:$0xff]  ;;  %2929 = vst.msk [vmem:[#allocation5 + $0x28] sm:$0xff] %vm1461_vm5, %v2911_v41 }
 0x919   : > { %3949 = vmatmul.mubr.msk.f32.vlgmr.msra.gmra.mrb[8].mxu0 %vm5913_vm15, %v3221_v49  ;;  %2977 = vst.msk [vmem:[#allocation5 + $0x28] sm:$0xff] %vm1510_vm6, %v2959_v10  ;;  %vm5926_vm15 = vmmov %vm5909_vm0 }
 0x91a   : > { %3951 = vmatprep.mubr.msk.f32.mxu0 %vm5914_vm2, %v3222_v26  ;;  %3025 = vst.msk [vmem:[#allocation5 + $0x28] sm:$0xff] %vm1559_vm11, %v3007_v35 }
 0x91b   : > { %3073 = vst.msk [vmem:[#allocation5 + $0x28] sm:$0xff] %vm1608_vm10, %v3055_v39  ;;  %v2957_v45 = vpop.permute.xlu1 %2956 }
 0x91c   : > { %v3101_v7 = vpop.permute.xlu0 %3100  ;;  %2976 = vst.msk [vmem:[#allocation5 + $0x20] sm:$0xff] %vm1510_vm6, %v2957_v45 }
 0x91f   : > { %v3099_v43 = vpop.permute.xlu1 %3098 }
 0x920   : > { %v3149_v42 = vpop.permute.xlu0 %3148  ;;  %3119 = vst.msk [vmem:[#allocation5 + $0x18] sm:$0xff] %vm5915_vm7, %v3099_v43  ;;  %vm5928_vm7 = vmmov %vm5909_vm0 }
 0x923   : > { %v3005_v47 = vpop.permute.xlu1 %3004 }
 0x924   : > { %v3197_v46 = vpop.permute.xlu0 %3196  ;;  %3024 = vst.msk [vmem:[#allocation5 + $0x20] sm:$0xff] %vm1559_vm11, %v3005_v47 }
 0x927   : > { %v3147_v11 = vpop.permute.xlu1 %3146 }
 0x928   : > { %v2963_v48 = vpop.permute.xlu0 %2962  ;;  %3167 = vst.msk [vmem:[#allocation5 + $0x18] sm:$0xff] %vm5916_vm9, %v3147_v11 }
 0x92b   : > { %v3053_v50 = vpop.permute.xlu1 %3052 }
 0x92c   : > { %v3011_v25 = vpop.permute.xlu0 %3010  ;;  %3072 = vst.msk [vmem:[#allocation5 + $0x20] sm:$0xff] %vm1608_vm10, %v3053_v50 }
 0x92d   : > { %3120 = vst.msk [vmem:[#allocation5 + $0x20] sm:$0xff] %vm5917_vm12, %v3101_v7 }
 0x92e   : > { %3168 = vst.msk [vmem:[#allocation5 + $0x20] sm:$0xff] %vm5918_vm8, %v3149_v42 }
 0x92f   : > { %3216 = vst.msk [vmem:[#allocation5 + $0x20] sm:$0xff] %vm5919_vm1, %v3197_v46  ;;  %v3195_v52 = vpop.permute.xlu1 %3194  ;;  %vm3534_vm1 = vcmask 130072  }
 0x930   : > { %v2867_v51 = vpop.permute.xlu0 %2866  ;;  %3215 = vst.msk [vmem:[#allocation5 + $0x18] sm:$0xff] %vm5909_vm0, %v3195_v52 }
 0x931   : > { %2883 = vst.msk [vmem:[#allocation5 + $0x38] sm:$0xff] %vm1412_vm4, %v2867_v51  ;;  %vm5921_vm4 = vmmov %vm5918_vm8 }
 0x932   : > { %vm5929_vm9 = vmmov %vm5921_vm4 }
 0x933   : > { %v3059_v36 = vpop.permute.xlu1 %3058 }
 0x934   : > { %v2915_v53 = vpop.permute.xlu0 %2914 }
 0x935   : > { %2931 = vst.msk [vmem:[#allocation5 + $0x38] sm:$0xff] %vm1461_vm5, %v2915_v53  ;;  %vm5923_vm5 = vmmov %vm5914_vm2 }
 0x936   : > { %2979 = vst.msk [vmem:[#allocation5 + $0x38] sm:$0xff] %vm1510_vm6, %v2963_v48  ;;  %v3224_v62 = vld [vmem:[#allocation5 + $0x20] sm:$0xff]  ;;  %vm5927_vm2 = vmmov %vm5924_vm3 }
 0x937   : > { %3027 = vst.msk [vmem:[#allocation5 + $0x38] sm:$0xff] %vm1559_vm11, %v3011_v25  ;;  %v3105_v37 = vpop.permute.xlu1 %3104  ;;  %v3223_v57 = vld [vmem:[#allocation5 + $0x18] sm:$0xff]  ;;  %vm5932_vm12 = vmmov %vm5923_vm5 }
 0x938   : > { %3075 = vst.msk [vmem:[#allocation5 + $0x38] sm:$0xff] %vm1608_vm10, %v3059_v36  ;;  %v2961_v54 = vpop.permute.xlu0 %2960  ;;  %3952 = vmatmul.mubr.msk.f32.gmra.mrb[10].mxu0 %vm5922_vm14, %v3223_v57  ;;  %vm5933_vm8 = vmmov %vm5923_vm5 }
 0x939   : > { %3123 = vst.msk [vmem:[#allocation5 + $0x38] sm:$0xff] %vm5920_vm13, %v5457_v56  ;;  %3954 = vmatprep.mubr.msk.f32.mxu0 %vm5923_vm5, %v3224_v62 }
 0x93a   : > { %2978 = vst.msk [vmem:[#allocation5 + $0x30] sm:$0xff] %vm1510_vm6, %v2961_v54  ;;  %vm5925_vm6 = vmmov %vm5921_vm4 }
 0x93b   : > { %3171 = vst.msk [vmem:[#allocation5 + $0x38] sm:$0xff] %vm5921_vm4, %v5459_v2  ;;  %v3153_v0 = vpop.permute.xlu1 %3152 }
 0x93c   : > { %v3009_v55 = vpop.permute.xlu0 %3008 }
 0x93d   : > { %3026 = vst.msk [vmem:[#allocation5 + $0x30] sm:$0xff] %vm1559_vm11, %v3009_v55  ;;  %vm5930_vm11 = vmmov %vm5923_vm5 }
 0x93f   : > { %v3201_v56 = vpop.permute.xlu1 %3200 }
 0x940   : > { %v3057_v17 = vpop.permute.xlu0 %3056 }
 0x941   : > { %3074 = vst.msk [vmem:[#allocation5 + $0x30] sm:$0xff] %vm1608_vm10, %v3057_v17  ;;  %vm5931_vm10 = vmmov %vm5909_vm0 }
 0x942   : > { %3122 = vst.msk [vmem:[#allocation5 + $0x30] sm:$0xff] %vm5924_vm3, %v3105_v37 }
 0x943   : > { %3170 = vst.msk [vmem:[#allocation5 + $0x30] sm:$0xff] %vm5925_vm6, %v3153_v0  ;;  %v3203_v13 = vpop.permute.xlu1 %3202 }
 0x944   : > { %3218 = vst.msk [vmem:[#allocation5 + $0x30] sm:$0xff] %vm5926_vm15, %v3201_v56  ;;  %v3103_v2 = vpop.permute.xlu0 %3102 }
 0x945   : > { %3121 = vst.msk [vmem:[#allocation5 + $0x28] sm:$0xff] %vm5927_vm2, %v3103_v2 }
 0x946   : > { %3219 = vst.msk [vmem:[#allocation5 + $0x38] sm:$0xff] %vm5928_vm7, %v3203_v13 }
 0x948   : > { %v3151_v40 = vpop.permute.xlu0 %3150 }
 0x949   : > { %3169 = vst.msk [vmem:[#allocation5 + $0x28] sm:$0xff] %vm5929_vm9, %v3151_v40 }
 0x94b   : > { %v3226_v18 = vld [vmem:[#allocation5 + $0x30] sm:$0xff] }
 0x94c   : > { %3957 = vmatprep.mubr.msk.f32.mxu1 %vm5930_vm11, %v3226_v18  ;;  %v3199_v58 = vpop.permute.xlu0 %3198 }
 0x94d   : > { %3217 = vst.msk [vmem:[#allocation5 + $0x28] sm:$0xff] %vm5931_vm10, %v3199_v58  ;;  %v3227_v61 = vld [vmem:[#allocation5 + $0x38] sm:$0xff] }
 0x94e   : > { %3958 = vmatmul.mubr.msk.f32.vlgmr.msra.gmra.mrb[16].mxu1 %vm5932_vm12, %v3227_v61 }
 0x954   : > { %v3225_v19 = vld [vmem:[#allocation5 + $0x28] sm:$0xff] }
 0x955   : > { %3955 = vmatmul.mubr.msk.f32.gmra.mrb[12].mxu0 %vm5933_vm8, %v3225_v19 }
 0x9ec   : > { %v3950_v1 = vpop.f32.mrb[8].mxu0 }
 0x9ed   : > { %v3333_v3 = vadd.f32 %v3950_v1, %v3733_v20  ;;  %v3327_v22 = vpop.f32.mrb[9].mxu0 }
 0x9ee   : > { %v3328_v5 = vadd.f32 %v3733_v20, %v3327_v22 }
 0x9ef   : > { %3496 = vrot.lane.b32.xlu1 %v3333_v3, %s5934_s17  ;;  %v3744_v8 = vmul.f32 -1.442695, %v3333_v3 }
 0x9f0   : > { %3494 = vrot.lane.b32.xlu0 %v3328_v5, %s5934_s17  ;;  %v3743_v15 = vmul.f32 -1.442695, %v3328_v5 }
 0x9f1   : > { %4247 = vpow2.f32 %v3744_v8 }
 0x9f2   : > { %4249 = vpow2.f32 %v3743_v15 }
 0x9fb   : > { %v4248_v28 = vpop.eup %4247 }
 0x9fc   : > { %v4250_v60 = vpop.eup %4249  ;;  %v3391_v29 = vadd.f32 1.0, %v4248_v28 }
 0x9fd   : > { %v3390_v21 = vadd.f32 1.0, %v4250_v60 }
 0x9fe   : > { %4251 = vrcp.f32 %v3391_v29 }
 0x9ff   : > { %4253 = vrcp.f32 %v3390_v21 }
 0xa08   : > { %v4252_v4 = vpop.eup %4251 }
 0xa09   : > { %v4254_v10 = vpop.eup %4253  ;;  %v3415_v34 = vmul.f32 2.0, %v4252_v4 }
 0xa0a   : > { %v3414_v35 = vmul.f32 2.0, %v4254_v10 }
 0xa0b   : > { %v3953_v30 = vpop.f32.mrb[10].mxu0  ;;  %v3752_v38 = vadd.f32 -1.0, %v3415_v34 }
 0xa0c   : > { %v3343_v24 = vadd.f32 %v3953_v30, %v3733_v20  ;;  %v3337_v16 = vpop.f32.mrb[11].mxu0  ;;  %v3751_v49 = vadd.f32 -1.0, %v3414_v35 }
 0xa0d   : > { %v3338_v31 = vadd.f32 %v3733_v20, %v3337_v16  ;;  %v3432_v7 = vmul.f32 1.442695, %v3752_v38 }
 0xa0e   : > { %v3746_v32 = vmul.f32 -1.442695, %v3343_v24  ;;  %3500 = vrot.lane.b32.xlu1 %v3343_v24, %s5934_s17  ;;  %v3430_v45 = vmul.f32 1.442695, %v3751_v49 }
 0xa0f   : > { %v3745_v33 = vmul.f32 -1.442695, %v3338_v31  ;;  %3498 = vrot.lane.b32.xlu0 %v3338_v31, %s5934_s17 }
 0xa10   : > { %4255 = vpow2.f32 %v3746_v32 }
 0xa11   : > { %4257 = vpow2.f32 %v3745_v33 }
 0xa1a   : > { %v4256_v9 = vpop.eup %4255 }
 0xa1b   : > { %v4258_v39 = vpop.eup %4257  ;;  %v3393_v41 = vadd.f32 1.0, %v4256_v9 }
 0xa1c   : > { %v3392_v26 = vadd.f32 1.0, %v4258_v39 }
 0xa1d   : > { %4259 = vrcp.f32 %v3393_v41 }
 0xa1e   : > { %4261 = vrcp.f32 %v3392_v26 }
 0xa1f   : > { %4263 = vpow2.f32 %v3432_v7 }
 0xa20   : > { %4265 = vpow2.f32 %v3430_v45 }
 0xa21   : > { %v3959_v42 = vpop.f32.mrb[16].mxu1 }
 0xa22   : > { %v5669_v43 = vadd.f32 %v3959_v42, %v3733_v20  ;;  %v3357_v46 = vpop.f32.mrb[17].mxu1 }
 0xa23   : > { %v5671_v47 = vadd.f32 %v3733_v20, %v3357_v46 }
 0xa24   : > { %v3750_v48 = vmul.f32 -1.442695, %v5669_v43 }
 0xa25   : > { %v3749_v11 = vmul.f32 -1.442695, %v5671_v47 }
 0xa26   : > { %4267 = vpow2.f32 %v3750_v48 }
 0xa27   : > { %4269 = vpow2.f32 %v3749_v11  ;;  %v4260_v50 = vpop.eup %4259 }
 0xa28   : > { %v3956_v25 = vpop.f32.mrb[12].mxu0  ;;  %v4262_v53 = vpop.eup %4261  ;;  %v3417_v36 = vmul.f32 2.0, %v4260_v50 }
 0xa29   : > { %v3353_v51 = vadd.f32 %v3956_v25, %v3733_v20  ;;  %v3347_v52 = vpop.f32.mrb[13].mxu0  ;;  %v3416_v37 = vmul.f32 2.0, %v4262_v53  ;;  %v4264_v17 = vpop.eup %4263 }
 0xa2a   : > { %v3348_v54 = vadd.f32 %v3733_v20, %v3347_v52  ;;  %v3754_v62 = vadd.f32 -1.0, %v3417_v36  ;;  %v4266_v2 = vpop.eup %4265 }
 0xa2b   : > { %v3748_v57 = vmul.f32 -1.442695, %v3353_v51  ;;  %3504 = vrot.lane.b32.xlu1 %v3353_v51, %s5934_s17  ;;  %v3753_v0 = vadd.f32 -1.0, %v3416_v37 }
 0xa2c   : > { %v3747_v55 = vmul.f32 -1.442695, %v3348_v54  ;;  %3502 = vrot.lane.b32.xlu0 %v3348_v54, %s5934_s17  ;;  %v3436_v56 = vmul.f32 1.442695, %v3754_v62 }
 0xa2d   : > { %4271 = vpow2.f32 %v3748_v57  ;;  %v3434_v13 = vmul.f32 1.442695, %v3753_v0 }
 0xa2e   : > { %4273 = vpow2.f32 %v3747_v55 }
 0xa2f   : > { %3456 = vrot.lane.b32.xlu1 %v4264_v17, %s5836_s26  ;;  %4275 = vpow2.f32 %v3436_v56 }
 0xa30   : > { %v4268_v40 = vpop.eup %4267  ;;  %3454 = vrot.lane.b32.xlu0 %v4266_v2, %s5836_s26  ;;  %4277 = vpow2.f32 %v3434_v13 }
 0xa31   : > { %v4270_v18 = vpop.eup %4269  ;;  %v3397_v58 = vadd.f32 1.0, %v4268_v40 }
 0xa32   : > { %v3396_v61 = vadd.f32 1.0, %v4270_v18 }
 0xa33   : > { %4279 = vrcp.f32 %v3397_v58 }
 0xa34   : > { %4281 = vrcp.f32 %v3396_v61 }
 0xa37   : > { %v4272_v19 = vpop.eup %4271 }
 0xa38   : > { %v4274_v20 = vpop.eup %4273  ;;  %v3395_v1 = vadd.f32 1.0, %v4272_v19 }
 0xa39   : > { %v3394_v3 = vadd.f32 1.0, %v4274_v20  ;;  %v4276_v22 = vpop.eup %4275 }
 0xa3a   : > { %4283 = vrcp.f32 %v3395_v1  ;;  %v4278_v5 = vpop.eup %4277  ;;  %3460 = vrot.lane.b32.xlu1 %v4276_v22, %s5836_s26 }
 0xa3b   : > { %4285 = vrcp.f32 %v3394_v3  ;;  %3458 = vrot.lane.b32.xlu0 %v4278_v5, %s5836_s26 }
 0xa3d   : > { %v4280_v8 = vpop.eup %4279 }
 0xa3e   : > { %v4282_v15 = vpop.eup %4281  ;;  %v3421_v28 = vmul.f32 2.0, %v4280_v8 }
 0xa3f   : > { %v3420_v60 = vmul.f32 2.0, %v4282_v15 }
 0xa40   : > { %v3758_v24 = vadd.f32 -1.0, %v3421_v28 }
 0xa41   : > { %v3757_v31 = vadd.f32 -1.0, %v3420_v60 }
 0xa42   : > { %v3444_v10 = vmul.f32 1.442695, %v3758_v24 }
 0xa43   : > { %v3442_v35 = vmul.f32 1.442695, %v3757_v31 }
 0xa44   : > { %v4284_v29 = vpop.eup %4283 }
 0xa45   : > { %v4286_v21 = vpop.eup %4285  ;;  %v3419_v30 = vmul.f32 2.0, %v4284_v29 }
 0xa46   : > { %v3418_v16 = vmul.f32 2.0, %v4286_v21 }
 0xa47   : > { %v3756_v32 = vadd.f32 -1.0, %v3419_v30 }
 0xa48   : > { %v3755_v33 = vadd.f32 -1.0, %v3418_v16 }
 0xa49   : > { %v3440_v4 = vmul.f32 1.442695, %v3756_v32 }
 0xa4a   : > { %v3438_v34 = vmul.f32 1.442695, %v3755_v33 }
 0xa4b   : > { %4287 = vpow2.f32 %v3440_v4 }
 0xa4c   : > { %4289 = vpow2.f32 %v3438_v34 }
 0xa4d   : > { %4291 = vpow2.f32 %v3444_v10 }
 0xa4e   : > { %4293 = vpow2.f32 %v3442_v35 }
 0xa55   : > { %v4288_v9 = vpop.eup %4287 }
 0xa56   : > { %v4290_v38 = vpop.eup %4289  ;;  %3464 = vrot.lane.b32.xlu1 %v4288_v9, %s5836_s26 }
 0xa57   : > { %v4292_v39 = vpop.eup %4291  ;;  %3462 = vrot.lane.b32.xlu0 %v4290_v38, %s5836_s26 }
 0xa58   : > { %v4294_v49 = vpop.eup %4293 }
 0xa5a   : > { %3468 = vrot.lane.b32.xlu1 %v4292_v39, %s5836_s26 }
 0xa5b   : > { %3466 = vrot.lane.b32.xlu0 %v4294_v49, %s5836_s26  ;;  %s3765_s26 = sshll.u32 %s4443_s22, 10  ;;  %s5724_s22 = scalar_lea.sflag [#allocation8], %s215_s6 }
 0xa5c   : > { %s5714_s8 = scalar_lea.hbm %s5771_s5, %s3765_s26 }
 0xa5e   : > { %3508 = vrot.lane.b32.xlu1 %v5669_v43, %s5934_s17 }
 0xa5f   : > { %3506 = vrot.lane.b32.xlu0 %v5671_v47, %s5934_s17 }
 0xa61   : > { %v3497_v41 = vpop.permute.xlu1 %3496 }
 0xa62   : > { %v3495_v26 = vpop.permute.xlu0 %3494 }
 0xa80   : > { %v3501_v7 = vpop.permute.xlu1 %3500 }
 0xa81   : > { %v3499_v45 = vpop.permute.xlu0 %3498 }
 0xa9d   : > { %v3505_v42 = vpop.permute.xlu1 %3504 }
 0xa9e   : > { %v3503_v46 = vpop.permute.xlu0 %3502 }
 0xaa1   : > { %v3457_v48 = vpop.permute.xlu1 %3456 }
 0xaa2   : > { %v3479_v11 = vmul.f32 %v3457_v48, %v5202_v44  ;;  %v3455_v25 = vpop.permute.xlu0 %3454 }
 0xaa3   : > { %v3478_v50 = vmul.f32 %v3455_v25, %v5209_v59 }
 0xaa4   : > { %v3519_v43 = vadd.f32 %v3497_v41, %v3479_v11 }
 0xaa5   : > { %v3518_v51 = vadd.f32 %v3495_v26, %v3478_v50 }
 0xaa6   : > { %3536 = vst.msk [vmem:[%s5466_s15 + $0x8] sm:$0xff] %vm3534_vm1, %v3519_v43 }
 0xaa7   : > { %3535 = vst.msk [vmem:[%s5466_s15] sm:$0xff] %vm3534_vm1, %v3518_v51 }
 0xaac   : > { %v3461_v47 = vpop.permute.xlu1 %3460 }
 0xaad   : > { %v3481_v52 = vmul.f32 %v3461_v47, %v5216_v6  ;;  %v3459_v53 = vpop.permute.xlu0 %3458 }
 0xaae   : > { %v3480_v36 = vmul.f32 %v3459_v53, %v5221_v14 }
 0xaaf   : > { %v3521_v44 = vadd.f32 %v3501_v7, %v3481_v52 }
 0xab0   : > { %v3520_v54 = vadd.f32 %v3499_v45, %v3480_v36 }
 0xab1   : > { %3538 = vst.msk [vmem:[%s5466_s15 + $0x18] sm:$0xff] %vm3534_vm1, %v3521_v44 }
 0xab2   : > { %3537 = vst.msk [vmem:[%s5466_s15 + $0x10] sm:$0xff] %vm3534_vm1, %v3520_v54 }
 0xac8   : > { %v3465_v59 = vpop.permute.xlu1 %3464 }
 0xac9   : > { %v3483_v37 = vmul.f32 %v3465_v59, %v5226_v12  ;;  %v3463_v57 = vpop.permute.xlu0 %3462 }
 0xaca   : > { %v3482_v62 = vmul.f32 %v3463_v57, %v5231_v23 }
 0xacb   : > { %v3523_v55 = vadd.f32 %v3505_v42, %v3483_v37 }
 0xacc   : > { %v3522_v6 = vadd.f32 %v3503_v46, %v3482_v62  ;;  %v3469_v0 = vpop.permute.xlu1 %3468 }
 0xacd   : > { %3540 = vst.msk [vmem:[%s5466_s15 + $0x28] sm:$0xff] %vm3534_vm1, %v3523_v55  ;;  %v3467_v14 = vpop.permute.xlu0 %3466  ;;  %v3485_v17 = vmul.f32 %v3469_v0, %v5236_v27 }
 0xace   : > { %3539 = vst.msk [vmem:[%s5466_s15 + $0x20] sm:$0xff] %vm3534_vm1, %v3522_v6  ;;  %v3484_v12 = vmul.f32 %v3467_v14, %v5241_v63 }
 0xad0   : > { %v3509_v56 = vpop.permute.xlu1 %3508 }
 0xad1   : > { %v3525_v23 = vadd.f32 %v3509_v56, %v3485_v17  ;;  %v3507_v2 = vpop.permute.xlu0 %3506 }
 0xad2   : > { %v3524_v13 = vadd.f32 %v3507_v2, %v3484_v12 }
 0xad3   : > { %3542 = vst.msk [vmem:[%s5466_s15 + $0x38] sm:$0xff] %vm3534_vm1, %v3525_v23 }
 0xad4   : > { %3541 = vst.msk [vmem:[%s5466_s15 + $0x30] sm:$0xff] %vm3534_vm1, %v3524_v13 }
 0xad5   : > { %4316 = shalt.err (!%p4313_p3)
}
 0xad6   : > { %s4317_s6 = scalar_lea.hbm %s5714_s8, 1024  ;;  %s4321_s11 = scalar_lea.hbm %s5771_s5, 2048 }
 0xad7   : > { %p4318_p4 = scmp.ne.s32.totalorder %s5714_s8, %s4317_s6  ;;  %p4322_p9 = scmp.lt.u32.totalorder %s5714_s8, %s5771_s5 }
 0xad8   : > { %p4323_p10 = scmp.lt.u32.totalorder %s4321_s11, %s4317_s6  ;;  %p4325_p12 = scmp.lt.u32.totalorder %s4317_s6, %s5714_s8 }
 0xad9   : > { %p4319_p7 = pnand %p4318_p4, %p4460_p5 }
 0xada   : > { %p4324_p11 = por %p4323_p10, %p4322_p9 }
 0xadb   : > { %p4320_p8 = pneg %p4319_p7 }
 0xadc   : > { %p4326_p13 = por %p4325_p12, %p4324_p11 }
 0xade   : > { %p4327_p0 = pnand %p4326_p13, %p4320_p8 }
 0xae0   : > { %4330 = shalt.err (!%p4327_p0)
}
 0xae1   : > { %s4391_s25 = smov 128   ;;  %s5935_s17 = smov 8  }
 0xae2   : > { %4040 = dma.vmem_to_hbm [thread:$0]  (%p4460_p5), %s5716_s12, 1024, %s5714_s8, %s5724_s22, %s4391_s25, %s4391_s25, %s5935_s17  }
 0xae3 PF: > { %p4046_p1 = scmp.ge.s32.totalorder %s4365_s21, 2  ;;  %s3572_s26 = sand.u32 1, %s4353_s18  }
 0xae4   : > { %s3573_s10 = scalar_lea.sflag [#allocation8], %s3572_s26 }
 0xae5   : > { %p4043_p2 = pnand %p4046_p1, %p4464_p6 }
 0xae7   : > { %4348 = dma.done.wait (!%p4043_p2), %s3573_s10, 1024  }
 0xae8   : > { %4350 = vsyncadd (!%p4043_p2), %s3573_s10, 4294966272  ;;  %p15_p3 = scmp.ge.s32.totalorder %s4447_s24, 4   ;;  %s5936_s18 = smov %s4357_s19 }
 0xae9   : > { %s5937_s19 = smov %s4361_s20  ;;  %s5938_s20 = smov %s4458_s27 }
 0xaea   : > { %s5939_s21 = smov %s4447_s24  ;;  %17 = sbr.rel (!%p15_p3) target bundleno = 5 (0x5), region = 84 }
 0xaf1   :  { %3578 = vsyncpa [#allocation8], 1 }
 0xaf2   :  { %3580 = vsyncpa [#allocation8 + $0x1], 1 }

</bundles_post_ra>
